<compile_context>
chip_gen: v6e
topology: v6e:2x2x1
jax: 0.10.0
libtpu: 0.0.40
codegen_flags: <defaults>
</compile_context>

<pallas_src>
import functools

import jax
import jax.numpy as jnp
import numpy as np
from jax.experimental import pallas as pl
from jax.experimental.pallas import tpu as pltpu

LEAK = 0.2
_HI = jax.lax.Precision.HIGHEST


def _lrelu(x):
    return jnp.where(x > 0, x, LEAK * x)


def _bf(x):
    return x.astype(jnp.bfloat16)


def _dot(a, b):
    """Standard (M,P)@(P,N) matmul, bf16 operands, f32 accumulation."""
    return jnp.dot(a, b, preferred_element_type=jnp.float32)


def _dot_nt(a, b):
    """(M,P) @ (N,P)^T -> (M,N): contraction over the minor dim of both."""
    return jax.lax.dot_general(a, b, (((1,), (1,)), ((), ())),
                               preferred_element_type=jnp.float32)


def _dot_tn(a, b):
    """(P,M)^T @ (P,N) -> (M,N): contraction over the major dim of both."""
    return jax.lax.dot_general(a, b, (((0,), (0,)), ((), ())),
                               preferred_element_type=jnp.float32)


# ---- torch `.view` flat reshapes as strided VMEM accesses (no MXU work) ------
def _scatter_kc_to_ck(src_kc, ck_ref, C, K):
    """Flat reshape (K, C) -> (C, K): ck_ref[i*q + b, k] = src[i, b*K + k].

    One sublane-strided store per b (q total); covers every row of ck_ref.
    """
    q = C // K
    for b in range(q):
        ck_ref[pl.ds(b, K, stride=q), :] = src_kc[:, b * K:(b + 1) * K]


def _gather_ck_to_kc(src_ck, ck_ref, kc_ref, col0, C, K):
    """Flat reshape (C, K) -> (K, C) into kc_ref[:, col0:col0+C].

    out[a, b*K + k] = src[a*q + b, k]; one sublane-strided load per b.
    """
    q = C // K
    ck_ref[...] = src_ck
    for b in range(q):
        kc_ref[:, col0 + b * K:col0 + (b + 1) * K] = \
            ck_ref[pl.ds(b, K, stride=q), :]


# --------------------------- fused forward kernel ----------------------------
def m_gcn_kernel(x_ref, wfc_ref, wct_ref, bct_ref,
                 wcg_ref, bcg_ref, bns_ref, bnb_ref,
                 wc1a_ref, wc1b_ref, bc1_ref,
                 wla_ref, wlat_ref, wlw_ref, blw_ref,
                 w3w_ref, w3u_ref, b3_ref,
                 w4_ref, b4_ref,
                 wll_ref, bll_ref, mm_ref,
                 out_ref, ck_scr, kc2_scr, *, C, K):
    x = _bf(x_ref[0])                                    # (C_feat, HW), cast once

    # ---- SAM + semantic-confidence scores (out1) -----------------------------
    # s in (K, HW): standard MXU orientation (no major x major contraction over
    # the big activation); the sigmoid below is lane-dense in HW.
    s = _dot(wfc_ref[...], x)                            # (K, HW) f32
    out1_col = jnp.max(s, axis=-1, keepdims=True)        # (K, 1)  topk(1).mean == max
    sam_mask = jax.nn.sigmoid(s)                         # (K, HW)
    xt = _dot(wct_ref[...], x) + bct_ref[...]            # (C, HW) f32
    v = _dot_nt(_bf(xt), _bf(sam_mask))                  # (C, K) = xt @ mask^T
    v_bf = _bf(v)

    # ---- MemoryGraph: short memory -------------------------------------------
    xg = jnp.mean(v, axis=-1, keepdims=True)             # GAP over nodes (C, 1)
    xg = _dot(wcg_ref[...], _bf(xg)) + bcg_ref[...]      # conv_global (matvec)
    xg = _lrelu(xg * bns_ref[...] + bnb_ref[...])        # BN (eval) + LeakyReLU
    # conv1(cat([expand(xg), v])) == broadcast(w_c1a @ xg) + w_c1b @ v + b_c1
    short = jax.nn.sigmoid(_dot(wc1a_ref[...], _bf(xg))
                           + _dot(wc1b_ref[...], v_bf)
                           + bc1_ref[...])               # (C, K)

    # ---- MemoryGraph: long memory heads --------------------------------------
    long_a3 = _lrelu(_dot_nt(wla_ref[...], v_bf))                       # (K, C)
    long_w3 = _lrelu(_dot(wlw_ref[...], _bf(short)) + blw_ref[...])     # (C, K)

    # ---- torch `.view` flat reshapes (strided VMEM loads/stores) -------------
    _scatter_kc_to_ck(long_a3, ck_scr, C, K)
    long_a = ck_scr[...]                                 # (C, K) f32
    long_a_bf = _bf(long_a)
    _gather_ck_to_kc(short, ck_scr, kc2_scr, 0, C, K)    # x_w   -> kc2[:, :C]
    _gather_ck_to_kc(long_w3, ck_scr, kc2_scr, C, C, K)  # long_w -> kc2[:, C:]
    kc2 = kc2_scr[...]                                   # (K, 2C) f32
    x_w, long_w = kc2[:, :C], kc2[:, C:]

    # ---- GRU-like gates (eq3 / eq4) -------------------------------------------
    # eq3: K is not lane-aligned -> keep two dots, but fold b3w+b3u at init.
    av = jnp.tanh(_dot(v_bf, w3w_ref[...]) + _dot(long_a_bf, w3u_ref[...])
                  + b3_ref[...])                         # (C, K)
    # eq4: single fused matmul [x_w | long_w] @ [w4w_t; w4u_t] + (b4w + b4u);
    # the concat is free (both views were packed into kc2_scr).
    wv = jnp.tanh(_dot(_bf(kc2), w4_ref[...]) + b4_ref[...])            # (K, C)
    x_a_new = v + av * long_a                            # (C, K)
    x_w_new = x_w + wv * long_w                          # (K, C)

    _gather_ck_to_kc(x_a_new, ck_scr, kc2_scr, 0, C, K)
    x_a_r = kc2_scr[:, :C]                               # (K, C)
    _scatter_kc_to_ck(x_w_new, ck_scr, C, K)
    x_w_r = ck_scr[...]                                  # (C, K)

    # ---- long graph features ---------------------------------------------------
    # TODO(synk): major x major contraction over the (small) node axis; audit the
    # Mosaic dump at real sizes and pre-orient x_a_r if a large vxpose appears.
    adjT = _lrelu(_dot_tn(_bf(x_a_r), wlat_ref[...]))                   # (C, K)
    wgt = _lrelu(_dot(wlw_ref[...], _bf(x_w_r)) + blw_ref[...])         # (C, K)
    z = jax.nn.sigmoid(adjT * (v + short) * wgt)                        # (C, K)

    # ---- head: last_linear + mask_mat (general, not diag-only) ----------------
    z2 = z + v
    full = _dot(wll_ref[...], _bf(z2)) + bll_ref[...]                   # (K, K)
    out2_col = jnp.sum(full * mm_ref[...], axis=-1, keepdims=True)      # (K, 1)

    # single merged, relayout-free store: column 0 = out1, column 1 = out2
    out_ref[...] = jnp.concatenate([out1_col, out2_col], axis=1)[None]  # (1, K, 2)


# ------------------------------- driver ---------------------------------------
def _vmem_limit_bytes():
    # Re-derive per generation (review): ~3/4 of physical VMEM leaves headroom
    # for compiler-internal scratch -> v5e/v6e (128 MiB) ~96 MiB, v7x (64 MiB)
    # ~48 MiB.  Falls back to the v7x-safe value if the query is unavailable.
    try:
        cap = int(pltpu.get_tpu_info().vmem_capacity_bytes)
        return int(min(max(cap * 3 // 4, 32 << 20), 100 << 20))
    except Exception:
        return 48 << 20


@functools.partial(jax.jit, static_argnames=("single_buffer_weights",))
def m_gcn_forward(x, p, single_buffer_weights=True):
    B, C_feat, H, W = x.shape
    K = p["w_fc"].shape[0]                 # num_classes (= num_nodes)
    C = p["w_ct"].shape[0]                 # intermediate channels (1024 at real size)
    assert C % K == 0                      # see TODO(synk) on the `.view` helpers
    x_flat = x.reshape(B, C_feat, H * W).astype(jnp.float32)

    weights = [p["w_fc"], p["w_ct"], p["b_ct"],
               p["w_cg"], p["b_cg"], p["bn_scale"], p["bn_shift"],
               p["w_c1a"], p["w_c1b"], p["b_c1"],
               p["w_la"], p["w_la_t"], p["w_lw"], p["b_lw"],
               p["w3w_t"], p["w3u_t"], p["b3"],
               p["w4_st"], p["b4"],
               p["w_ll"], p["b_ll"], p["mask_mat"]]

    def w_spec(arr):
        r, c = arr.shape
        if single_buffer_weights:
            # Grid-invariant index_map: double buffering buys nothing, so keep a
            # single VMEM copy (halves weight residency; needed on v7x at real sizes).
            return pl.BlockSpec((r, c), lambda b: (0, 0),
                                pipeline_mode=pl.Buffered(1))
        return pl.BlockSpec((r, c), lambda b: (0, 0))

    out = pl.pallas_call(
        functools.partial(m_gcn_kernel, C=C, K=K),
        out_shape=jax.ShapeDtypeStruct((B, K, 2), jnp.float32),
        grid=(B,),
        in_specs=[pl.BlockSpec((1, C_feat, H * W), lambda b: (b, 0, 0))]
                 + [w_spec(a) for a in weights],
        out_specs=pl.BlockSpec((1, K, 2), lambda b: (b, 0, 0)),
        scratch_shapes=[pltpu.VMEM((C, K), jnp.float32),     # `.view` staging
                        pltpu.VMEM((K, 2 * C), jnp.float32)],  # [x_w | long_w] pack
        compiler_params=pltpu.CompilerParams(
            dimension_semantics=("parallel",),   # >=2 steps keeps both v7x TCs busy
            vmem_limit_bytes=_vmem_limit_bytes()),
    )(x_flat, *weights)
    return out[:, :, 0], out[:, :, 1]


# ---------------------- deterministic parameter init --------------------------
def init_params(key, C_feat, C_mid, K):
    ks = jax.random.split(key, 24)
    nrm = lambda k, s: jax.random.normal(k, s, jnp.float32) * 0.05
    bf = jnp.bfloat16
    p = {}
    # SAM / classification_ss
    p["w_fc"] = nrm(ks[0], (K, C_feat)).astype(bf)            # fc (no bias)
    p["w_ct"] = nrm(ks[1], (C_mid, C_feat)).astype(bf)        # conv_transform
    p["b_ct"] = nrm(ks[2], (C_mid, 1))
    # MemoryGraph: short
    p["w_cg"] = nrm(ks[3], (C_mid, C_mid)).astype(bf)         # conv_global
    p["b_cg"] = nrm(ks[4], (C_mid, 1))
    p["bn_scale"] = jnp.full((C_mid, 1), 1.0 / np.sqrt(1.0 + 1e-5), jnp.float32)
    p["bn_shift"] = jnp.zeros((C_mid, 1), jnp.float32)
    p["w_c1a"] = nrm(ks[5], (C_mid, C_mid)).astype(bf)        # conv1 split halves
    p["w_c1b"] = nrm(ks[6], (C_mid, C_mid)).astype(bf)
    p["b_c1"] = nrm(ks[7], (C_mid, 1))
    # MemoryGraph: long
    w_la = nrm(ks[8], (K, K))                                 # long_adj (no bias)
    p["w_la"] = w_la.astype(bf)
    p["w_la_t"] = w_la.T.astype(bf)
    p["w_lw"] = nrm(ks[9], (C_mid, C_mid)).astype(bf)         # long_weight
    p["b_lw"] = nrm(ks[10], (C_mid, 1))
    # gates (Linear weights pre-transposed once here)
    p["w3w_t"] = nrm(ks[11], (K, K)).astype(bf)               # fc_eq3_w
    p["b3w"] = nrm(ks[12], (1, K))
    p["w3u_t"] = nrm(ks[13], (K, K)).astype(bf)               # fc_eq3_u
    p["b3u"] = nrm(ks[14], (1, K))
    w4w_t = nrm(ks[15], (C_mid, C_mid))                       # fc_eq4_w
    p["b4w"] = nrm(ks[16], (1, C_mid))
    w4u_t = nrm(ks[17], (C_mid, C_mid))                       # fc_eq4_u
    p["b4u"] = nrm(ks[18], (1, C_mid))
    p["w4w_t"] = w4w_t.astype(bf)
    p["w4u_t"] = w4u_t.astype(bf)
    # fused-gate parameters for the kernel (stacked / summed ONCE at init)
    p["b3"] = p["b3w"] + p["b3u"]
    p["w4_st"] = jnp.concatenate([w4w_t, w4u_t], axis=0).astype(bf)   # (2C, C)
    p["b4"] = p["b4w"] + p["b4u"]
    # head
    p["w_ll"] = nrm(ks[19], (K, C_mid)).astype(bf)            # last_linear
    p["b_ll"] = nrm(ks[20], (K, 1))
    p["mask_mat"] = jnp.eye(K, dtype=jnp.float32)             # torch init value
    return p


# -------------- pure-JAX reference (literal graph, same bf16 rounding) ---------
def reference_forward(x, p):
    hp = functools.partial(jnp.einsum, precision=_HI)
    bfq = lambda a: a.astype(jnp.bfloat16).astype(jnp.float32)  # dot-operand rounding
    B, C_feat, H, W = x.shape
    K = p["w_fc"].shape[0]
    C = p["w_ct"].shape[0]
    xf = bfq(x.reshape(B, C_feat, H * W))
    s = hp("kc,bcp->bkp", bfq(p["w_fc"]), xf)
    out1 = s.max(-1)
    mask = jax.nn.sigmoid(s)
    xt = hp("oc,bcp->bop", bfq(p["w_ct"]), xf) + p["b_ct"][None]
    v = hp("bop,bkp->bok", bfq(xt), bfq(mask))
    xg = v.mean(-1, keepdims=True)
    xg = hp("oc,bcn->bon", bfq(p["w_cg"]), bfq(xg)) + p["b_cg"][None]
    xg = _lrelu(xg * p["bn_scale"][None] + p["bn_shift"][None])
    xg_b = jnp.broadcast_to(xg, v.shape)
    short = jax.nn.sigmoid(hp("oc,bcn->bon", bfq(p["w_c1a"]), bfq(xg_b))
                           + hp("oc,bcn->bon", bfq(p["w_c1b"]), bfq(v))
                           + p["b_c1"][None])
    long_a3 = _lrelu(hp("km,bcm->bkc", bfq(p["w_la"]), bfq(v)))
    long_w3 = _lrelu(hp("oc,bcn->bon", bfq(p["w_lw"]), bfq(short)) + p["b_lw"][None])
    long_a = long_a3.reshape(B, C, K)           # torch .view semantics (NOT transpose)
    long_w = long_w3.reshape(B, K, C)
    x_a, x_w = v, short.reshape(B, K, C)
    av = jnp.tanh(hp("bcn,nm->bcm", bfq(x_a), bfq(p["w3w_t"])) + p["b3w"][None]
                  + hp("bcn,nm->bcm", bfq(long_a), bfq(p["w3u_t"])) + p["b3u"][None])
    wv = jnp.tanh(hp("bnc,cd->bnd", bfq(x_w), bfq(p["w4w_t"])) + p["b4w"][None]
                  + hp("bnc,cd->bnd", bfq(long_w), bfq(p["w4u_t"])) + p["b4u"][None])
    x_a_r = (x_a + av * long_a).reshape(B, K, C)
    x_w_r = (x_w + wv * long_w).reshape(B, C, K)
    adj = _lrelu(hp("km,bmc->bkc", bfq(p["w_la"]), bfq(x_a_r)))
    wgt = _lrelu(hp("oc,bcn->bon", bfq(p["w_lw"]), bfq(x_w_r)) + p["b_lw"][None])
    z = jax.nn.sigmoid(jnp.transpose(adj, (0, 2, 1)) * (v + short) * wgt)
    z2 = z + v
    full = hp("kc,bcn->bkn", bfq(p["w_ll"]), bfq(z2)) + p["b_ll"][None]
    out2 = (full * p["mask_mat"][None]).sum(-1)
    return out1, out2


if __name__ == "__main__":
    B, C_feat, H, W = 2, 64, 8, 8      # backbone feature map (stand-in for 2048 ch)
    C_mid, K = 32, 8                   # stand-in for 1024 channels, num_classes

    key = jax.random.PRNGKey(0)
    kx, kp = jax.random.split(key)
    x = jax.random.normal(kx, (B, C_feat, H, W), jnp.float32)
    params = init_params(kp, C_feat, C_mid, K)

    try:
        out1, out2 = m_gcn_forward(x, params, single_buffer_weights=True)
        jax.block_until_ready((out1, out2))
    except Exception:
        # pl.Buffered(1) single-buffering unavailable in this JAX build; fall
        # back to default (double-buffered) weight BlockSpecs.  Same kernel body.
        out1, out2 = m_gcn_forward(x, params, single_buffer_weights=False)
        jax.block_until_ready((out1, out2))

    r1, r2 = reference_forward(x, params)
    np.testing.assert_allclose(np.asarray(out1), np.asarray(r1), rtol=5e-3, atol=1e-3)
    np.testing.assert_allclose(np.asarray(out2), np.asarray(r2), rtol=5e-3, atol=1e-3)

    print("KERNEL_OK")
</pallas_src>

<mosaic_0001>
module attributes {stable_mosaic.version = 11 : i64} {
  func.func @m_gcn_kernel(%arg0: i32, %arg1: memref<1x64x64xf32, #tpu.memory_space<vmem>>, %arg2: memref<8x64xbf16, #tpu.memory_space<vmem>>, %arg3: memref<32x64xbf16, #tpu.memory_space<vmem>>, %arg4: memref<32x1xf32, #tpu.memory_space<vmem>>, %arg5: memref<32x32xbf16, #tpu.memory_space<vmem>>, %arg6: memref<32x1xf32, #tpu.memory_space<vmem>>, %arg7: memref<32x1xf32, #tpu.memory_space<vmem>>, %arg8: memref<32x1xf32, #tpu.memory_space<vmem>>, %arg9: memref<32x32xbf16, #tpu.memory_space<vmem>>, %arg10: memref<32x32xbf16, #tpu.memory_space<vmem>>, %arg11: memref<32x1xf32, #tpu.memory_space<vmem>>, %arg12: memref<8x8xbf16, #tpu.memory_space<vmem>>, %arg13: memref<8x8xbf16, #tpu.memory_space<vmem>>, %arg14: memref<32x32xbf16, #tpu.memory_space<vmem>>, %arg15: memref<32x1xf32, #tpu.memory_space<vmem>>, %arg16: memref<8x8xbf16, #tpu.memory_space<vmem>>, %arg17: memref<8x8xbf16, #tpu.memory_space<vmem>>, %arg18: memref<1x8xf32, #tpu.memory_space<vmem>>, %arg19: memref<64x32xbf16, #tpu.memory_space<vmem>>, %arg20: memref<1x32xf32, #tpu.memory_space<vmem>>, %arg21: memref<8x32xbf16, #tpu.memory_space<vmem>>, %arg22: memref<8x1xf32, #tpu.memory_space<vmem>>, %arg23: memref<8x8xf32, #tpu.memory_space<vmem>>, %arg24: memref<1x8x2xf32, #tpu.memory_space<vmem>>, %arg25: memref<32x8xf32, #tpu.memory_space<vmem>>, %arg26: memref<8x64xf32, #tpu.memory_space<vmem>>) attributes {dimension_semantics = [#tpu.dimension_semantics<parallel>], iteration_bounds = array<i64: 2>, scalar_prefetch = 0 : i64, scratch_operands = 2 : i64, tpu.core_type = #tpu.core_type<tc>, window_params = [{transform_indices = @transform_0, window_bounds = array<i64: 1, 64, 64>}, {pipeline_mode = #tpu.pipeline_mode<synchronous>, transform_indices = @transform_1, window_bounds = array<i64: 8, 64>}, {pipeline_mode = #tpu.pipeline_mode<synchronous>, transform_indices = @transform_2, window_bounds = array<i64: 32, 64>}, {pipeline_mode = #tpu.pipeline_mode<synchronous>, transform_indices = @transform_3, window_bounds = array<i64: 32, 1>}, {pipeline_mode = #tpu.pipeline_mode<synchronous>, transform_indices = @transform_4, window_bounds = array<i64: 32, 32>}, {pipeline_mode = #tpu.pipeline_mode<synchronous>, transform_indices = @transform_5, window_bounds = array<i64: 32, 1>}, {pipeline_mode = #tpu.pipeline_mode<synchronous>, transform_indices = @transform_6, window_bounds = array<i64: 32, 1>}, {pipeline_mode = #tpu.pipeline_mode<synchronous>, transform_indices = @transform_7, window_bounds = array<i64: 32, 1>}, {pipeline_mode = #tpu.pipeline_mode<synchronous>, transform_indices = @transform_8, window_bounds = array<i64: 32, 32>}, {pipeline_mode = #tpu.pipeline_mode<synchronous>, transform_indices = @transform_9, window_bounds = array<i64: 32, 32>}, {pipeline_mode = #tpu.pipeline_mode<synchronous>, transform_indices = @transform_10, window_bounds = array<i64: 32, 1>}, {pipeline_mode = #tpu.pipeline_mode<synchronous>, transform_indices = @transform_11, window_bounds = array<i64: 8, 8>}, {pipeline_mode = #tpu.pipeline_mode<synchronous>, transform_indices = @transform_12, window_bounds = array<i64: 8, 8>}, {pipeline_mode = #tpu.pipeline_mode<synchronous>, transform_indices = @transform_13, window_bounds = array<i64: 32, 32>}, {pipeline_mode = #tpu.pipeline_mode<synchronous>, transform_indices = @transform_14, window_bounds = array<i64: 32, 1>}, {pipeline_mode = #tpu.pipeline_mode<synchronous>, transform_indices = @transform_15, window_bounds = array<i64: 8, 8>}, {pipeline_mode = #tpu.pipeline_mode<synchronous>, transform_indices = @transform_16, window_bounds = array<i64: 8, 8>}, {pipeline_mode = #tpu.pipeline_mode<synchronous>, transform_indices = @transform_17, window_bounds = array<i64: 1, 8>}, {pipeline_mode = #tpu.pipeline_mode<synchronous>, transform_indices = @transform_18, window_bounds = array<i64: 64, 32>}, {pipeline_mode = #tpu.pipeline_mode<synchronous>, transform_indices = @transform_19, window_bounds = array<i64: 1, 32>}, {pipeline_mode = #tpu.pipeline_mode<synchronous>, transform_indices = @transform_20, window_bounds = array<i64: 8, 32>}, {pipeline_mode = #tpu.pipeline_mode<synchronous>, transform_indices = @transform_21, window_bounds = array<i64: 8, 1>}, {pipeline_mode = #tpu.pipeline_mode<synchronous>, transform_indices = @transform_22, window_bounds = array<i64: 8, 8>}, {transform_indices = @transform_23, window_bounds = array<i64: 1, 8, 2>}]} {
    %c0 = arith.constant 0 : index
    %c0_0 = arith.constant 0 : index
    %c0_1 = arith.constant 0 : index
    %0 = vector.load %arg1[%c0, %c0_0, %c0_1] : memref<1x64x64xf32, #tpu.memory_space<vmem>>, vector<1x64x64xf32>
    %1 = vector.shape_cast %0 : vector<1x64x64xf32> to vector<64x64xf32>
    %2 = arith.truncf %1 : vector<64x64xf32> to vector<64x64xbf16>
    %c0_2 = arith.constant 0 : index
    %c0_3 = arith.constant 0 : index
    %3 = vector.load %arg2[%c0_2, %c0_3] : memref<8x64xbf16, #tpu.memory_space<vmem>>, vector<8x64xbf16>
    %cst = arith.constant dense<0.000000e+00> : vector<8x64xf32>
    %4 = tpu.matmul %3, %2, %cst {dimension_numbers = #tpu.dot_dimension_numbers<[1], [0], [0], [1], [0, 0, 1, 1], [], []>} : vector<8x64xbf16>, vector<64x64xbf16>, vector<8x64xf32> -> vector<8x64xf32>
    %cst_4 = arith.constant dense<0xFF800000> : vector<8xf32>
    %5 = vector.multi_reduction <maximumf>, %4, %cst_4 [1] : vector<8x64xf32> to vector<8xf32>
    %6 = vector.shape_cast %5 : vector<8xf32> to vector<8x1xf32>
    %7 = arith.negf %4 : vector<8x64xf32>
    %8 = math.exp %7 : vector<8x64xf32>
    %cst_5 = arith.constant 1.000000e+00 : f32
    %9 = vector.broadcast %cst_5 : f32 to vector<8x64xf32>
    %10 = arith.addf %9, %8 : vector<8x64xf32>
    %11 = arith.divf %9, %10 : vector<8x64xf32>
    %c0_6 = arith.constant 0 : index
    %c0_7 = arith.constant 0 : index
    %12 = vector.load %arg3[%c0_6, %c0_7] : memref<32x64xbf16, #tpu.memory_space<vmem>>, vector<32x64xbf16>
    %cst_8 = arith.constant dense<0.000000e+00> : vector<32x64xf32>
    %13 = tpu.matmul %12, %2, %cst_8 {dimension_numbers = #tpu.dot_dimension_numbers<[1], [0], [0], [1], [0, 0, 1, 1], [], []>} : vector<32x64xbf16>, vector<64x64xbf16>, vector<32x64xf32> -> vector<32x64xf32>
    %c0_9 = arith.constant 0 : index
    %c0_10 = arith.constant 0 : index
    %14 = vector.load %arg4[%c0_9, %c0_10] : memref<32x1xf32, #tpu.memory_space<vmem>>, vector<32x1xf32>
    %15 = vector.broadcast %14 : vector<32x1xf32> to vector<32x64xf32>
    %16 = arith.addf %13, %15 : vector<32x64xf32>
    %17 = arith.truncf %16 : vector<32x64xf32> to vector<32x64xbf16>
    %18 = arith.truncf %11 : vector<8x64xf32> to vector<8x64xbf16>
    %cst_11 = arith.constant dense<0.000000e+00> : vector<32x8xf32>
    %19 = tpu.matmul %17, %18, %cst_11 {dimension_numbers = #tpu.dot_dimension_numbers<[1], [1], [0], [0], [0, 0, 1, 0], [], []>} : vector<32x64xbf16>, vector<8x64xbf16>, vector<32x8xf32> -> vector<32x8xf32>
    %20 = arith.truncf %19 : vector<32x8xf32> to vector<32x8xbf16>
    %cst_12 = arith.constant dense<0.000000e+00> : vector<32xf32>
    %21 = vector.multi_reduction <add>, %19, %cst_12 [1] : vector<32x8xf32> to vector<32xf32>
    %22 = vector.shape_cast %21 : vector<32xf32> to vector<32x1xf32>
    %cst_13 = arith.constant 8.000000e+00 : f32
    %23 = vector.broadcast %cst_13 : f32 to vector<32x1xf32>
    %24 = arith.divf %22, %23 : vector<32x1xf32>
    %c0_14 = arith.constant 0 : index
    %c0_15 = arith.constant 0 : index
    %25 = vector.load %arg5[%c0_14, %c0_15] : memref<32x32xbf16, #tpu.memory_space<vmem>>, vector<32x32xbf16>
    %26 = arith.truncf %24 : vector<32x1xf32> to vector<32x1xbf16>
    %cst_16 = arith.constant dense<0.000000e+00> : vector<32x1xf32>
    %27 = tpu.matmul %25, %26, %cst_16 {dimension_numbers = #tpu.dot_dimension_numbers<[1], [0], [0], [1], [0, 0, 1, 1], [], []>} : vector<32x32xbf16>, vector<32x1xbf16>, vector<32x1xf32> -> vector<32x1xf32>
    %c0_17 = arith.constant 0 : index
    %c0_18 = arith.constant 0 : index
    %28 = vector.load %arg6[%c0_17, %c0_18] : memref<32x1xf32, #tpu.memory_space<vmem>>, vector<32x1xf32>
    %29 = arith.addf %27, %28 : vector<32x1xf32>
    %c0_19 = arith.constant 0 : index
    %c0_20 = arith.constant 0 : index
    %30 = vector.load %arg7[%c0_19, %c0_20] : memref<32x1xf32, #tpu.memory_space<vmem>>, vector<32x1xf32>
    %31 = arith.mulf %29, %30 : vector<32x1xf32>
    %c0_21 = arith.constant 0 : index
    %c0_22 = arith.constant 0 : index
    %32 = vector.load %arg8[%c0_21, %c0_22] : memref<32x1xf32, #tpu.memory_space<vmem>>, vector<32x1xf32>
    %33 = arith.addf %31, %32 : vector<32x1xf32>
    %cst_23 = arith.constant 0.000000e+00 : f32
    %34 = vector.broadcast %cst_23 : f32 to vector<32x1xf32>
    %35 = arith.cmpf ogt, %33, %34 : vector<32x1xf32>
    %cst_24 = arith.constant 2.000000e-01 : f32
    %36 = vector.broadcast %cst_24 : f32 to vector<32x1xf32>
    %37 = arith.mulf %36, %33 : vector<32x1xf32>
    %38 = arith.select %35, %33, %37 : vector<32x1xi1>, vector<32x1xf32>
    %c0_25 = arith.constant 0 : index
    %c0_26 = arith.constant 0 : index
    %39 = vector.load %arg9[%c0_25, %c0_26] : memref<32x32xbf16, #tpu.memory_space<vmem>>, vector<32x32xbf16>
    %40 = arith.truncf %38 : vector<32x1xf32> to vector<32x1xbf16>
    %cst_27 = arith.constant dense<0.000000e+00> : vector<32x1xf32>
    %41 = tpu.matmul %39, %40, %cst_27 {dimension_numbers = #tpu.dot_dimension_numbers<[1], [0], [0], [1], [0, 0, 1, 1], [], []>} : vector<32x32xbf16>, vector<32x1xbf16>, vector<32x1xf32> -> vector<32x1xf32>
    %c0_28 = arith.constant 0 : index
    %c0_29 = arith.constant 0 : index
    %42 = vector.load %arg10[%c0_28, %c0_29] : memref<32x32xbf16, #tpu.memory_space<vmem>>, vector<32x32xbf16>
    %cst_30 = arith.constant dense<0.000000e+00> : vector<32x8xf32>
    %43 = tpu.matmul %42, %20, %cst_30 {dimension_numbers = #tpu.dot_dimension_numbers<[1], [0], [0], [1], [0, 0, 1, 1], [], []>} : vector<32x32xbf16>, vector<32x8xbf16>, vector<32x8xf32> -> vector<32x8xf32>
    %44 = vector.broadcast %41 : vector<32x1xf32> to vector<32x8xf32>
    %45 = arith.addf %44, %43 : vector<32x8xf32>
    %c0_31 = arith.constant 0 : index
    %c0_32 = arith.constant 0 : index
    %46 = vector.load %arg11[%c0_31, %c0_32] : memref<32x1xf32, #tpu.memory_space<vmem>>, vector<32x1xf32>
    %47 = vector.broadcast %46 : vector<32x1xf32> to vector<32x8xf32>
    %48 = arith.addf %45, %47 : vector<32x8xf32>
    %49 = arith.negf %48 : vector<32x8xf32>
    %50 = math.exp %49 : vector<32x8xf32>
    %cst_33 = arith.constant 1.000000e+00 : f32
    %51 = vector.broadcast %cst_33 : f32 to vector<32x8xf32>
    %52 = arith.addf %51, %50 : vector<32x8xf32>
    %53 = arith.divf %51, %52 : vector<32x8xf32>
    %c0_34 = arith.constant 0 : index
    %c0_35 = arith.constant 0 : index
    %54 = vector.load %arg12[%c0_34, %c0_35] : memref<8x8xbf16, #tpu.memory_space<vmem>>, vector<8x8xbf16>
    %cst_36 = arith.constant dense<0.000000e+00> : vector<8x32xf32>
    %55 = tpu.matmul %54, %20, %cst_36 {dimension_numbers = #tpu.dot_dimension_numbers<[1], [1], [0], [0], [0, 0, 1, 0], [], []>} : vector<8x8xbf16>, vector<32x8xbf16>, vector<8x32xf32> -> vector<8x32xf32>
    %cst_37 = arith.constant 0.000000e+00 : f32
    %56 = vector.broadcast %cst_37 : f32 to vector<8x32xf32>
    %57 = arith.cmpf ogt, %55, %56 : vector<8x32xf32>
    %cst_38 = arith.constant 2.000000e-01 : f32
    %58 = vector.broadcast %cst_38 : f32 to vector<8x32xf32>
    %59 = arith.mulf %58, %55 : vector<8x32xf32>
    %60 = arith.select %57, %55, %59 : vector<8x32xi1>, vector<8x32xf32>
    %c0_39 = arith.constant 0 : index
    %c0_40 = arith.constant 0 : index
    %61 = vector.load %arg14[%c0_39, %c0_40] : memref<32x32xbf16, #tpu.memory_space<vmem>>, vector<32x32xbf16>
    %62 = arith.truncf %53 : vector<32x8xf32> to vector<32x8xbf16>
    %cst_41 = arith.constant dense<0.000000e+00> : vector<32x8xf32>
    %63 = tpu.matmul %61, %62, %cst_41 {dimension_numbers = #tpu.dot_dimension_numbers<[1], [0], [0], [1], [0, 0, 1, 1], [], []>} : vector<32x32xbf16>, vector<32x8xbf16>, vector<32x8xf32> -> vector<32x8xf32>
    %c0_42 = arith.constant 0 : index
    %c0_43 = arith.constant 0 : index
    %64 = vector.load %arg15[%c0_42, %c0_43] : memref<32x1xf32, #tpu.memory_space<vmem>>, vector<32x1xf32>
    %65 = vector.broadcast %64 : vector<32x1xf32> to vector<32x8xf32>
    %66 = arith.addf %63, %65 : vector<32x8xf32>
    %cst_44 = arith.constant 0.000000e+00 : f32
    %67 = vector.broadcast %cst_44 : f32 to vector<32x8xf32>
    %68 = arith.cmpf ogt, %66, %67 : vector<32x8xf32>
    %cst_45 = arith.constant 2.000000e-01 : f32
    %69 = vector.broadcast %cst_45 : f32 to vector<32x8xf32>
    %70 = arith.mulf %69, %66 : vector<32x8xf32>
    %71 = arith.select %68, %66, %70 : vector<32x8xi1>, vector<32x8xf32>
    %72 = vector.extract_strided_slice %60 {offsets = [0, 0], sizes = [8, 8], strides = [1, 1]} : vector<8x32xf32> to vector<8x8xf32>
    %c0_46 = arith.constant 0 : index
    %c0_47 = arith.constant 0 : index
    %73 = tpu.strided_load %arg25[%c0_46, %c0_47] {strides = array<i32: 4, 1>} : memref<32x8xf32, #tpu.memory_space<vmem>>, vector<8x8xf32>
    tpu.strided_store %arg25[%c0_46, %c0_47], %72 {strides = array<i32: 4, 1>} : memref<32x8xf32, #tpu.memory_space<vmem>>, vector<8x8xf32>
    %74 = vector.extract_strided_slice %60 {offsets = [0, 8], sizes = [8, 8], strides = [1, 1]} : vector<8x32xf32> to vector<8x8xf32>
    %c1 = arith.constant 1 : index
    %c0_48 = arith.constant 0 : index
    %75 = tpu.strided_load %arg25[%c1, %c0_48] {strides = array<i32: 4, 1>} : memref<32x8xf32, #tpu.memory_space<vmem>>, vector<8x8xf32>
    tpu.strided_store %arg25[%c1, %c0_48], %74 {strides = array<i32: 4, 1>} : memref<32x8xf32, #tpu.memory_space<vmem>>, vector<8x8xf32>
    %76 = vector.extract_strided_slice %60 {offsets = [0, 16], sizes = [8, 8], strides = [1, 1]} : vector<8x32xf32> to vector<8x8xf32>
    %c2 = arith.constant 2 : index
    %c0_49 = arith.constant 0 : index
    %77 = tpu.strided_load %arg25[%c2, %c0_49] {strides = array<i32: 4, 1>} : memref<32x8xf32, #tpu.memory_space<vmem>>, vector<8x8xf32>
    tpu.strided_store %arg25[%c2, %c0_49], %76 {strides = array<i32: 4, 1>} : memref<32x8xf32, #tpu.memory_space<vmem>>, vector<8x8xf32>
    %78 = vector.extract_strided_slice %60 {offsets = [0, 24], sizes = [8, 8], strides = [1, 1]} : vector<8x32xf32> to vector<8x8xf32>
    %c3 = arith.constant 3 : index
    %c0_50 = arith.constant 0 : index
    %79 = tpu.strided_load %arg25[%c3, %c0_50] {strides = array<i32: 4, 1>} : memref<32x8xf32, #tpu.memory_space<vmem>>, vector<8x8xf32>
    tpu.strided_store %arg25[%c3, %c0_50], %78 {strides = array<i32: 4, 1>} : memref<32x8xf32, #tpu.memory_space<vmem>>, vector<8x8xf32>
    %c0_51 = arith.constant 0 : index
    %c0_52 = arith.constant 0 : index
    %80 = vector.load %arg25[%c0_51, %c0_52] : memref<32x8xf32, #tpu.memory_space<vmem>>, vector<32x8xf32>
    %81 = arith.truncf %80 : vector<32x8xf32> to vector<32x8xbf16>
    %c0_53 = arith.constant 0 : index
    %c0_54 = arith.constant 0 : index
    %82 = vector.load %arg25[%c0_53, %c0_54] : memref<32x8xf32, #tpu.memory_space<vmem>>, vector<32x8xf32>
    tpu.vector_store %arg25[%c0_53, %c0_54], %53 {strides = array<i32>} : memref<32x8xf32, #tpu.memory_space<vmem>>, vector<32x8xf32>,
    %c0_55 = arith.constant 0 : index
    %c0_56 = arith.constant 0 : index
    %83 = tpu.strided_load %arg25[%c0_55, %c0_56] {strides = array<i32: 4, 1>} : memref<32x8xf32, #tpu.memory_space<vmem>>, vector<8x8xf32>
    %c0_57 = arith.constant 0 : index
    %c0_58 = arith.constant 0 : index
    %84 = vector.load %arg26[%c0_57, %c0_58] : memref<8x64xf32, #tpu.memory_space<vmem>>, vector<8x8xf32>
    tpu.vector_store %arg26[%c0_57, %c0_58], %83 {strides = array<i32>} : memref<8x64xf32, #tpu.memory_space<vmem>>, vector<8x8xf32>,
    %c1_59 = arith.constant 1 : index
    %c0_60 = arith.constant 0 : index
    %85 = tpu.strided_load %arg25[%c1_59, %c0_60] {strides = array<i32: 4, 1>} : memref<32x8xf32, #tpu.memory_space<vmem>>, vector<8x8xf32>
    %c0_61 = arith.constant 0 : index
    %c8 = arith.constant 8 : index
    %86 = vector.load %arg26[%c0_61, %c8] : memref<8x64xf32, #tpu.memory_space<vmem>>, vector<8x8xf32>
    tpu.vector_store %arg26[%c0_61, %c8], %85 {strides = array<i32>} : memref<8x64xf32, #tpu.memory_space<vmem>>, vector<8x8xf32>,
    %c2_62 = arith.constant 2 : index
    %c0_63 = arith.constant 0 : index
    %87 = tpu.strided_load %arg25[%c2_62, %c0_63] {strides = array<i32: 4, 1>} : memref<32x8xf32, #tpu.memory_space<vmem>>, vector<8x8xf32>
    %c0_64 = arith.constant 0 : index
    %c16 = arith.constant 16 : index
    %88 = vector.load %arg26[%c0_64, %c16] : memref<8x64xf32, #tpu.memory_space<vmem>>, vector<8x8xf32>
    tpu.vector_store %arg26[%c0_64, %c16], %87 {strides = array<i32>} : memref<8x64xf32, #tpu.memory_space<vmem>>, vector<8x8xf32>,
    %c3_65 = arith.constant 3 : index
    %c0_66 = arith.constant 0 : index
    %89 = tpu.strided_load %arg25[%c3_65, %c0_66] {strides = array<i32: 4, 1>} : memref<32x8xf32, #tpu.memory_space<vmem>>, vector<8x8xf32>
    %c0_67 = arith.constant 0 : index
    %c24 = arith.constant 24 : index
    %90 = vector.load %arg26[%c0_67, %c24] : memref<8x64xf32, #tpu.memory_space<vmem>>, vector<8x8xf32>
    tpu.vector_store %arg26[%c0_67, %c24], %89 {strides = array<i32>} : memref<8x64xf32, #tpu.memory_space<vmem>>, vector<8x8xf32>,
    %c0_68 = arith.constant 0 : index
    %c0_69 = arith.constant 0 : index
    %91 = vector.load %arg25[%c0_68, %c0_69] : memref<32x8xf32, #tpu.memory_space<vmem>>, vector<32x8xf32>
    tpu.vector_store %arg25[%c0_68, %c0_69], %71 {strides = array<i32>} : memref<32x8xf32, #tpu.memory_space<vmem>>, vector<32x8xf32>,
    %c0_70 = arith.constant 0 : index
    %c0_71 = arith.constant 0 : index
    %92 = tpu.strided_load %arg25[%c0_70, %c0_71] {strides = array<i32: 4, 1>} : memref<32x8xf32, #tpu.memory_space<vmem>>, vector<8x8xf32>
    %c0_72 = arith.constant 0 : index
    %c32 = arith.constant 32 : index
    %93 = vector.load %arg26[%c0_72, %c32] : memref<8x64xf32, #tpu.memory_space<vmem>>, vector<8x8xf32>
    tpu.vector_store %arg26[%c0_72, %c32], %92 {strides = array<i32>} : memref<8x64xf32, #tpu.memory_space<vmem>>, vector<8x8xf32>,
    %c1_73 = arith.constant 1 : index
    %c0_74 = arith.constant 0 : index
    %94 = tpu.strided_load %arg25[%c1_73, %c0_74] {strides = array<i32: 4, 1>} : memref<32x8xf32, #tpu.memory_space<vmem>>, vector<8x8xf32>
    %c0_75 = arith.constant 0 : index
    %c40 = arith.constant 40 : index
    %95 = vector.load %arg26[%c0_75, %c40] : memref<8x64xf32, #tpu.memory_space<vmem>>, vector<8x8xf32>
    tpu.vector_store %arg26[%c0_75, %c40], %94 {strides = array<i32>} : memref<8x64xf32, #tpu.memory_space<vmem>>, vector<8x8xf32>,
    %c2_76 = arith.constant 2 : index
    %c0_77 = arith.constant 0 : index
    %96 = tpu.strided_load %arg25[%c2_76, %c0_77] {strides = array<i32: 4, 1>} : memref<32x8xf32, #tpu.memory_space<vmem>>, vector<8x8xf32>
    %c0_78 = arith.constant 0 : index
    %c48 = arith.constant 48 : index
    %97 = vector.load %arg26[%c0_78, %c48] : memref<8x64xf32, #tpu.memory_space<vmem>>, vector<8x8xf32>
    tpu.vector_store %arg26[%c0_78, %c48], %96 {strides = array<i32>} : memref<8x64xf32, #tpu.memory_space<vmem>>, vector<8x8xf32>,
    %c3_79 = arith.constant 3 : index
    %c0_80 = arith.constant 0 : index
    %98 = tpu.strided_load %arg25[%c3_79, %c0_80] {strides = array<i32: 4, 1>} : memref<32x8xf32, #tpu.memory_space<vmem>>, vector<8x8xf32>
    %c0_81 = arith.constant 0 : index
    %c56 = arith.constant 56 : index
    %99 = vector.load %arg26[%c0_81, %c56] : memref<8x64xf32, #tpu.memory_space<vmem>>, vector<8x8xf32>
    tpu.vector_store %arg26[%c0_81, %c56], %98 {strides = array<i32>} : memref<8x64xf32, #tpu.memory_space<vmem>>, vector<8x8xf32>,
    %c0_82 = arith.constant 0 : index
    %c0_83 = arith.constant 0 : index
    %100 = vector.load %arg26[%c0_82, %c0_83] : memref<8x64xf32, #tpu.memory_space<vmem>>, vector<8x64xf32>
    %101 = vector.extract_strided_slice %100 {offsets = [0, 0], sizes = [8, 32], strides = [1, 1]} : vector<8x64xf32> to vector<8x32xf32>
    %102 = vector.extract_strided_slice %100 {offsets = [0, 32], sizes = [8, 32], strides = [1, 1]} : vector<8x64xf32> to vector<8x32xf32>
    %c0_84 = arith.constant 0 : index
    %c0_85 = arith.constant 0 : index
    %103 = vector.load %arg16[%c0_84, %c0_85] : memref<8x8xbf16, #tpu.memory_space<vmem>>, vector<8x8xbf16>
    %cst_86 = arith.constant dense<0.000000e+00> : vector<32x8xf32>
    %104 = tpu.matmul %20, %103, %cst_86 {dimension_numbers = #tpu.dot_dimension_numbers<[1], [0], [0], [1], [0, 0, 1, 1], [], []>} : vector<32x8xbf16>, vector<8x8xbf16>, vector<32x8xf32> -> vector<32x8xf32>
    %c0_87 = arith.constant 0 : index
    %c0_88 = arith.constant 0 : index
    %105 = vector.load %arg17[%c0_87, %c0_88] : memref<8x8xbf16, #tpu.memory_space<vmem>>, vector<8x8xbf16>
    %cst_89 = arith.constant dense<0.000000e+00> : vector<32x8xf32>
    %106 = tpu.matmul %81, %105, %cst_89 {dimension_numbers = #tpu.dot_dimension_numbers<[1], [0], [0], [1], [0, 0, 1, 1], [], []>} : vector<32x8xbf16>, vector<8x8xbf16>, vector<32x8xf32> -> vector<32x8xf32>
    %107 = arith.addf %104, %106 : vector<32x8xf32>
    %c0_90 = arith.constant 0 : index
    %c0_91 = arith.constant 0 : index
    %108 = vector.load %arg18[%c0_90, %c0_91] : memref<1x8xf32, #tpu.memory_space<vmem>>, vector<1x8xf32>
    %109 = vector.broadcast %108 : vector<1x8xf32> to vector<32x8xf32>
    %110 = arith.addf %107, %109 : vector<32x8xf32>
    %111 = math.tanh %110 : vector<32x8xf32>
    %112 = arith.truncf %100 : vector<8x64xf32> to vector<8x64xbf16>
    %c0_92 = arith.constant 0 : index
    %c0_93 = arith.constant 0 : index
    %113 = vector.load %arg19[%c0_92, %c0_93] : memref<64x32xbf16, #tpu.memory_space<vmem>>, vector<64x32xbf16>
    %cst_94 = arith.constant dense<0.000000e+00> : vector<8x32xf32>
    %114 = tpu.matmul %112, %113, %cst_94 {dimension_numbers = #tpu.dot_dimension_numbers<[1], [0], [0], [1], [0, 0, 1, 1], [], []>} : vector<8x64xbf16>, vector<64x32xbf16>, vector<8x32xf32> -> vector<8x32xf32>
    %c0_95 = arith.constant 0 : index
    %c0_96 = arith.constant 0 : index
    %115 = vector.load %arg20[%c0_95, %c0_96] : memref<1x32xf32, #tpu.memory_space<vmem>>, vector<1x32xf32>
    %116 = vector.broadcast %115 : vector<1x32xf32> to vector<8x32xf32>
    %117 = arith.addf %114, %116 : vector<8x32xf32>
    %118 = math.tanh %117 : vector<8x32xf32>
    %119 = arith.mulf %111, %80 : vector<32x8xf32>
    %120 = arith.addf %19, %119 : vector<32x8xf32>
    %121 = arith.mulf %118, %102 : vector<8x32xf32>
    %122 = arith.addf %101, %121 : vector<8x32xf32>
    %c0_97 = arith.constant 0 : index
    %c0_98 = arith.constant 0 : index
    %123 = vector.load %arg25[%c0_97, %c0_98] : memref<32x8xf32, #tpu.memory_space<vmem>>, vector<32x8xf32>
    tpu.vector_store %arg25[%c0_97, %c0_98], %120 {strides = array<i32>} : memref<32x8xf32, #tpu.memory_space<vmem>>, vector<32x8xf32>,
    %c0_99 = arith.constant 0 : index
    %c0_100 = arith.constant 0 : index
    %124 = tpu.strided_load %arg25[%c0_99, %c0_100] {strides = array<i32: 4, 1>} : memref<32x8xf32, #tpu.memory_space<vmem>>, vector<8x8xf32>
    %c0_101 = arith.constant 0 : index
    %c0_102 = arith.constant 0 : index
    %125 = vector.load %arg26[%c0_101, %c0_102] : memref<8x64xf32, #tpu.memory_space<vmem>>, vector<8x8xf32>
    tpu.vector_store %arg26[%c0_101, %c0_102], %124 {strides = array<i32>} : memref<8x64xf32, #tpu.memory_space<vmem>>, vector<8x8xf32>,
    %c1_103 = arith.constant 1 : index
    %c0_104 = arith.constant 0 : index
    %126 = tpu.strided_load %arg25[%c1_103, %c0_104] {strides = array<i32: 4, 1>} : memref<32x8xf32, #tpu.memory_space<vmem>>, vector<8x8xf32>
    %c0_105 = arith.constant 0 : index
    %c8_106 = arith.constant 8 : index
    %127 = vector.load %arg26[%c0_105, %c8_106] : memref<8x64xf32, #tpu.memory_space<vmem>>, vector<8x8xf32>
    tpu.vector_store %arg26[%c0_105, %c8_106], %126 {strides = array<i32>} : memref<8x64xf32, #tpu.memory_space<vmem>>, vector<8x8xf32>,
    %c2_107 = arith.constant 2 : index
    %c0_108 = arith.constant 0 : index
    %128 = tpu.strided_load %arg25[%c2_107, %c0_108] {strides = array<i32: 4, 1>} : memref<32x8xf32, #tpu.memory_space<vmem>>, vector<8x8xf32>
    %c0_109 = arith.constant 0 : index
    %c16_110 = arith.constant 16 : index
    %129 = vector.load %arg26[%c0_109, %c16_110] : memref<8x64xf32, #tpu.memory_space<vmem>>, vector<8x8xf32>
    tpu.vector_store %arg26[%c0_109, %c16_110], %128 {strides = array<i32>} : memref<8x64xf32, #tpu.memory_space<vmem>>, vector<8x8xf32>,
    %c3_111 = arith.constant 3 : index
    %c0_112 = arith.constant 0 : index
    %130 = tpu.strided_load %arg25[%c3_111, %c0_112] {strides = array<i32: 4, 1>} : memref<32x8xf32, #tpu.memory_space<vmem>>, vector<8x8xf32>
    %c0_113 = arith.constant 0 : index
    %c24_114 = arith.constant 24 : index
    %131 = vector.load %arg26[%c0_113, %c24_114] : memref<8x64xf32, #tpu.memory_space<vmem>>, vector<8x8xf32>
    tpu.vector_store %arg26[%c0_113, %c24_114], %130 {strides = array<i32>} : memref<8x64xf32, #tpu.memory_space<vmem>>, vector<8x8xf32>,
    %c0_115 = arith.constant 0 : index
    %c0_116 = arith.constant 0 : index
    %132 = vector.load %arg26[%c0_115, %c0_116] : memref<8x64xf32, #tpu.memory_space<vmem>>, vector<8x32xf32>
    %133 = vector.extract_strided_slice %122 {offsets = [0, 0], sizes = [8, 8], strides = [1, 1]} : vector<8x32xf32> to vector<8x8xf32>
    %c0_117 = arith.constant 0 : index
    %c0_118 = arith.constant 0 : index
    %134 = tpu.strided_load %arg25[%c0_117, %c0_118] {strides = array<i32: 4, 1>} : memref<32x8xf32, #tpu.memory_space<vmem>>, vector<8x8xf32>
    tpu.strided_store %arg25[%c0_117, %c0_118], %133 {strides = array<i32: 4, 1>} : memref<32x8xf32, #tpu.memory_space<vmem>>, vector<8x8xf32>
    %135 = vector.extract_strided_slice %122 {offsets = [0, 8], sizes = [8, 8], strides = [1, 1]} : vector<8x32xf32> to vector<8x8xf32>
    %c1_119 = arith.constant 1 : index
    %c0_120 = arith.constant 0 : index
    %136 = tpu.strided_load %arg25[%c1_119, %c0_120] {strides = array<i32: 4, 1>} : memref<32x8xf32, #tpu.memory_space<vmem>>, vector<8x8xf32>
    tpu.strided_store %arg25[%c1_119, %c0_120], %135 {strides = array<i32: 4, 1>} : memref<32x8xf32, #tpu.memory_space<vmem>>, vector<8x8xf32>
    %137 = vector.extract_strided_slice %122 {offsets = [0, 16], sizes = [8, 8], strides = [1, 1]} : vector<8x32xf32> to vector<8x8xf32>
    %c2_121 = arith.constant 2 : index
    %c0_122 = arith.constant 0 : index
    %138 = tpu.strided_load %arg25[%c2_121, %c0_122] {strides = array<i32: 4, 1>} : memref<32x8xf32, #tpu.memory_space<vmem>>, vector<8x8xf32>
    tpu.strided_store %arg25[%c2_121, %c0_122], %137 {strides = array<i32: 4, 1>} : memref<32x8xf32, #tpu.memory_space<vmem>>, vector<8x8xf32>
    %139 = vector.extract_strided_slice %122 {offsets = [0, 24], sizes = [8, 8], strides = [1, 1]} : vector<8x32xf32> to vector<8x8xf32>
    %c3_123 = arith.constant 3 : index
    %c0_124 = arith.constant 0 : index
    %140 = tpu.strided_load %arg25[%c3_123, %c0_124] {strides = array<i32: 4, 1>} : memref<32x8xf32, #tpu.memory_space<vmem>>, vector<8x8xf32>
    tpu.strided_store %arg25[%c3_123, %c0_124], %139 {strides = array<i32: 4, 1>} : memref<32x8xf32, #tpu.memory_space<vmem>>, vector<8x8xf32>
    %c0_125 = arith.constant 0 : index
    %c0_126 = arith.constant 0 : index
    %141 = vector.load %arg25[%c0_125, %c0_126] : memref<32x8xf32, #tpu.memory_space<vmem>>, vector<32x8xf32>
    %142 = arith.truncf %132 : vector<8x32xf32> to vector<8x32xbf16>
    %c0_127 = arith.constant 0 : index
    %c0_128 = arith.constant 0 : index
    %143 = vector.load %arg13[%c0_127, %c0_128] : memref<8x8xbf16, #tpu.memory_space<vmem>>, vector<8x8xbf16>
    %cst_129 = arith.constant dense<0.000000e+00> : vector<32x8xf32>
    %144 = tpu.matmul %142, %143, %cst_129 {dimension_numbers = #tpu.dot_dimension_numbers<[0], [0], [1], [1], [0, 1, 1, 1], [], []>} : vector<8x32xbf16>, vector<8x8xbf16>, vector<32x8xf32> -> vector<32x8xf32>
    %cst_130 = arith.constant 0.000000e+00 : f32
    %145 = vector.broadcast %cst_130 : f32 to vector<32x8xf32>
    %146 = arith.cmpf ogt, %144, %145 : vector<32x8xf32>
    %cst_131 = arith.constant 2.000000e-01 : f32
    %147 = vector.broadcast %cst_131 : f32 to vector<32x8xf32>
    %148 = arith.mulf %147, %144 : vector<32x8xf32>
    %149 = arith.select %146, %144, %148 : vector<32x8xi1>, vector<32x8xf32>
    %c0_132 = arith.constant 0 : index
    %c0_133 = arith.constant 0 : index
    %150 = vector.load %arg14[%c0_132, %c0_133] : memref<32x32xbf16, #tpu.memory_space<vmem>>, vector<32x32xbf16>
    %151 = arith.truncf %141 : vector<32x8xf32> to vector<32x8xbf16>
    %cst_134 = arith.constant dense<0.000000e+00> : vector<32x8xf32>
    %152 = tpu.matmul %150, %151, %cst_134 {dimension_numbers = #tpu.dot_dimension_numbers<[1], [0], [0], [1], [0, 0, 1, 1], [], []>} : vector<32x32xbf16>, vector<32x8xbf16>, vector<32x8xf32> -> vector<32x8xf32>
    %c0_135 = arith.constant 0 : index
    %c0_136 = arith.constant 0 : index
    %153 = vector.load %arg15[%c0_135, %c0_136] : memref<32x1xf32, #tpu.memory_space<vmem>>, vector<32x1xf32>
    %154 = vector.broadcast %153 : vector<32x1xf32> to vector<32x8xf32>
    %155 = arith.addf %152, %154 : vector<32x8xf32>
    %cst_137 = arith.constant 0.000000e+00 : f32
    %156 = vector.broadcast %cst_137 : f32 to vector<32x8xf32>
    %157 = arith.cmpf ogt, %155, %156 : vector<32x8xf32>
    %cst_138 = arith.constant 2.000000e-01 : f32
    %158 = vector.broadcast %cst_138 : f32 to vector<32x8xf32>
    %159 = arith.mulf %158, %155 : vector<32x8xf32>
    %160 = arith.select %157, %155, %159 : vector<32x8xi1>, vector<32x8xf32>
    %161 = arith.addf %19, %53 : vector<32x8xf32>
    %162 = arith.mulf %149, %161 : vector<32x8xf32>
    %163 = arith.mulf %162, %160 : vector<32x8xf32>
    %164 = arith.negf %163 : vector<32x8xf32>
    %165 = math.exp %164 : vector<32x8xf32>
    %cst_139 = arith.constant 1.000000e+00 : f32
    %166 = vector.broadcast %cst_139 : f32 to vector<32x8xf32>
    %167 = arith.addf %166, %165 : vector<32x8xf32>
    %168 = arith.divf %166, %167 : vector<32x8xf32>
    %169 = arith.addf %168, %19 : vector<32x8xf32>
    %c0_140 = arith.constant 0 : index
    %c0_141 = arith.constant 0 : index
    %170 = vector.load %arg21[%c0_140, %c0_141] : memref<8x32xbf16, #tpu.memory_space<vmem>>, vector<8x32xbf16>
    %171 = arith.truncf %169 : vector<32x8xf32> to vector<32x8xbf16>
    %cst_142 = arith.constant dense<0.000000e+00> : vector<8x8xf32>
    %172 = tpu.matmul %170, %171, %cst_142 {dimension_numbers = #tpu.dot_dimension_numbers<[1], [0], [0], [1], [0, 0, 1, 1], [], []>} : vector<8x32xbf16>, vector<32x8xbf16>, vector<8x8xf32> -> vector<8x8xf32>
    %c0_143 = arith.constant 0 : index
    %c0_144 = arith.constant 0 : index
    %173 = vector.load %arg22[%c0_143, %c0_144] : memref<8x1xf32, #tpu.memory_space<vmem>>, vector<8x1xf32>
    %174 = vector.broadcast %173 : vector<8x1xf32> to vector<8x8xf32>
    %175 = arith.addf %172, %174 : vector<8x8xf32>
    %c0_145 = arith.constant 0 : index
    %c0_146 = arith.constant 0 : index
    %176 = vector.load %arg23[%c0_145, %c0_146] : memref<8x8xf32, #tpu.memory_space<vmem>>, vector<8x8xf32>
    %177 = arith.mulf %175, %176 : vector<8x8xf32>
    %cst_147 = arith.constant dense<0.000000e+00> : vector<8xf32>
    %178 = vector.multi_reduction <add>, %177, %cst_147 [1] : vector<8x8xf32> to vector<8xf32>
    %179 = vector.shape_cast %178 : vector<8xf32> to vector<8x1xf32>
    %180 = tpu.concatenate %6, %179 in 1 : vector<8x1xf32>, vector<8x1xf32> -> vector<8x2xf32>
    %181 = vector.shape_cast %180 : vector<8x2xf32> to vector<1x8x2xf32>
    %c0_148 = arith.constant 0 : index
    %c0_149 = arith.constant 0 : index
    %c0_150 = arith.constant 0 : index
    %182 = vector.load %arg24[%c0_148, %c0_149, %c0_150] : memref<1x8x2xf32, #tpu.memory_space<vmem>>, vector<1x8x2xf32>
    tpu.vector_store %arg24[%c0_148, %c0_149, %c0_150], %181 {strides = array<i32>} : memref<1x8x2xf32, #tpu.memory_space<vmem>>, vector<1x8x2xf32>,
    return
  }
  func.func @transform_0(%arg0: i32) -> (i32, i32, i32) {
    %c0_i32 = arith.constant 0 : i32
    %c0_i32_0 = arith.constant 0 : i32
    %c0_i32_1 = arith.constant 0 : i32
    return %arg0, %c0_i32, %c0_i32_0 : i32, i32, i32
  }
  func.func @transform_1(%arg0: i32) -> (i32, i32) {
    %c0_i32 = arith.constant 0 : i32
    %c0_i32_0 = arith.constant 0 : i32
    %c0_i32_1 = arith.constant 0 : i32
    return %c0_i32, %c0_i32_0 : i32, i32
  }
  func.func @transform_2(%arg0: i32) -> (i32, i32) {
    %c0_i32 = arith.constant 0 : i32
    %c0_i32_0 = arith.constant 0 : i32
    %c0_i32_1 = arith.constant 0 : i32
    return %c0_i32, %c0_i32_0 : i32, i32
  }
  func.func @transform_3(%arg0: i32) -> (i32, i32) {
    %c0_i32 = arith.constant 0 : i32
    %c0_i32_0 = arith.constant 0 : i32
    %c0_i32_1 = arith.constant 0 : i32
    return %c0_i32, %c0_i32_0 : i32, i32
  }
  func.func @transform_4(%arg0: i32) -> (i32, i32) {
    %c0_i32 = arith.constant 0 : i32
    %c0_i32_0 = arith.constant 0 : i32
    %c0_i32_1 = arith.constant 0 : i32
    return %c0_i32, %c0_i32_0 : i32, i32
  }
  func.func @transform_5(%arg0: i32) -> (i32, i32) {
    %c0_i32 = arith.constant 0 : i32
    %c0_i32_0 = arith.constant 0 : i32
    %c0_i32_1 = arith.constant 0 : i32
    return %c0_i32, %c0_i32_0 : i32, i32
  }
  func.func @transform_6(%arg0: i32) -> (i32, i32) {
    %c0_i32 = arith.constant 0 : i32
    %c0_i32_0 = arith.constant 0 : i32
    %c0_i32_1 = arith.constant 0 : i32
    return %c0_i32, %c0_i32_0 : i32, i32
  }
  func.func @transform_7(%arg0: i32) -> (i32, i32) {
    %c0_i32 = arith.constant 0 : i32
    %c0_i32_0 = arith.constant 0 : i32
    %c0_i32_1 = arith.constant 0 : i32
    return %c0_i32, %c0_i32_0 : i32, i32
  }
  func.func @transform_8(%arg0: i32) -> (i32, i32) {
    %c0_i32 = arith.constant 0 : i32
    %c0_i32_0 = arith.constant 0 : i32
    %c0_i32_1 = arith.constant 0 : i32
    return %c0_i32, %c0_i32_0 : i32, i32
  }
  func.func @transform_9(%arg0: i32) -> (i32, i32) {
    %c0_i32 = arith.constant 0 : i32
    %c0_i32_0 = arith.constant 0 : i32
    %c0_i32_1 = arith.constant 0 : i32
    return %c0_i32, %c0_i32_0 : i32, i32
  }
  func.func @transform_10(%arg0: i32) -> (i32, i32) {
    %c0_i32 = arith.constant 0 : i32
    %c0_i32_0 = arith.constant 0 : i32
    %c0_i32_1 = arith.constant 0 : i32
    return %c0_i32, %c0_i32_0 : i32, i32
  }
  func.func @transform_11(%arg0: i32) -> (i32, i32) {
    %c0_i32 = arith.constant 0 : i32
    %c0_i32_0 = arith.constant 0 : i32
    %c0_i32_1 = arith.constant 0 : i32
    return %c0_i32, %c0_i32_0 : i32, i32
  }
  func.func @transform_12(%arg0: i32) -> (i32, i32) {
    %c0_i32 = arith.constant 0 : i32
    %c0_i32_0 = arith.constant 0 : i32
    %c0_i32_1 = arith.constant 0 : i32
    return %c0_i32, %c0_i32_0 : i32, i32
  }
  func.func @transform_13(%arg0: i32) -> (i32, i32) {
    %c0_i32 = arith.constant 0 : i32
    %c0_i32_0 = arith.constant 0 : i32
    %c0_i32_1 = arith.constant 0 : i32
    return %c0_i32, %c0_i32_0 : i32, i32
  }
  func.func @transform_14(%arg0: i32) -> (i32, i32) {
    %c0_i32 = arith.constant 0 : i32
    %c0_i32_0 = arith.constant 0 : i32
    %c0_i32_1 = arith.constant 0 : i32
    return %c0_i32, %c0_i32_0 : i32, i32
  }
  func.func @transform_15(%arg0: i32) -> (i32, i32) {
    %c0_i32 = arith.constant 0 : i32
    %c0_i32_0 = arith.constant 0 : i32
    %c0_i32_1 = arith.constant 0 : i32
    return %c0_i32, %c0_i32_0 : i32, i32
  }
  func.func @transform_16(%arg0: i32) -> (i32, i32) {
    %c0_i32 = arith.constant 0 : i32
    %c0_i32_0 = arith.constant 0 : i32
    %c0_i32_1 = arith.constant 0 : i32
    return %c0_i32, %c0_i32_0 : i32, i32
  }
  func.func @transform_17(%arg0: i32) -> (i32, i32) {
    %c0_i32 = arith.constant 0 : i32
    %c0_i32_0 = arith.constant 0 : i32
    %c0_i32_1 = arith.constant 0 : i32
    return %c0_i32, %c0_i32_0 : i32, i32
  }
  func.func @transform_18(%arg0: i32) -> (i32, i32) {
    %c0_i32 = arith.constant 0 : i32
    %c0_i32_0 = arith.constant 0 : i32
    %c0_i32_1 = arith.constant 0 : i32
    return %c0_i32, %c0_i32_0 : i32, i32
  }
  func.func @transform_19(%arg0: i32) -> (i32, i32) {
    %c0_i32 = arith.constant 0 : i32
    %c0_i32_0 = arith.constant 0 : i32
    %c0_i32_1 = arith.constant 0 : i32
    return %c0_i32, %c0_i32_0 : i32, i32
  }
  func.func @transform_20(%arg0: i32) -> (i32, i32) {
    %c0_i32 = arith.constant 0 : i32
    %c0_i32_0 = arith.constant 0 : i32
    %c0_i32_1 = arith.constant 0 : i32
    return %c0_i32, %c0_i32_0 : i32, i32
  }
  func.func @transform_21(%arg0: i32) -> (i32, i32) {
    %c0_i32 = arith.constant 0 : i32
    %c0_i32_0 = arith.constant 0 : i32
    %c0_i32_1 = arith.constant 0 : i32
    return %c0_i32, %c0_i32_0 : i32, i32
  }
  func.func @transform_22(%arg0: i32) -> (i32, i32) {
    %c0_i32 = arith.constant 0 : i32
    %c0_i32_0 = arith.constant 0 : i32
    %c0_i32_1 = arith.constant 0 : i32
    return %c0_i32, %c0_i32_0 : i32, i32
  }
  func.func @transform_23(%arg0: i32) -> (i32, i32, i32) {
    %c0_i32 = arith.constant 0 : i32
    %c0_i32_0 = arith.constant 0 : i32
    %c0_i32_1 = arith.constant 0 : i32
    return %arg0, %c0_i32, %c0_i32_0 : i32, i32, i32
  }
}

module attributes {stable_mosaic.version = 11 : i64} {
  func.func @m_gcn_kernel(%arg0: i32, %arg1: memref<1x64x64xf32, #tpu.memory_space<vmem>>, %arg2: memref<8x64xbf16, #tpu.memory_space<vmem>>, %arg3: memref<32x64xbf16, #tpu.memory_space<vmem>>, %arg4: memref<32x1xf32, #tpu.memory_space<vmem>>, %arg5: memref<32x32xbf16, #tpu.memory_space<vmem>>, %arg6: memref<32x1xf32, #tpu.memory_space<vmem>>, %arg7: memref<32x1xf32, #tpu.memory_space<vmem>>, %arg8: memref<32x1xf32, #tpu.memory_space<vmem>>, %arg9: memref<32x32xbf16, #tpu.memory_space<vmem>>, %arg10: memref<32x32xbf16, #tpu.memory_space<vmem>>, %arg11: memref<32x1xf32, #tpu.memory_space<vmem>>, %arg12: memref<8x8xbf16, #tpu.memory_space<vmem>>, %arg13: memref<8x8xbf16, #tpu.memory_space<vmem>>, %arg14: memref<32x32xbf16, #tpu.memory_space<vmem>>, %arg15: memref<32x1xf32, #tpu.memory_space<vmem>>, %arg16: memref<8x8xbf16, #tpu.memory_space<vmem>>, %arg17: memref<8x8xbf16, #tpu.memory_space<vmem>>, %arg18: memref<1x8xf32, #tpu.memory_space<vmem>>, %arg19: memref<64x32xbf16, #tpu.memory_space<vmem>>, %arg20: memref<1x32xf32, #tpu.memory_space<vmem>>, %arg21: memref<8x32xbf16, #tpu.memory_space<vmem>>, %arg22: memref<8x1xf32, #tpu.memory_space<vmem>>, %arg23: memref<8x8xf32, #tpu.memory_space<vmem>>, %arg24: memref<1x8x2xf32, #tpu.memory_space<vmem>>, %arg25: memref<32x8xf32, #tpu.memory_space<vmem>>, %arg26: memref<8x64xf32, #tpu.memory_space<vmem>>) attributes {dimension_semantics = [#tpu.dimension_semantics<parallel>], iteration_bounds = array<i64: 2>, scalar_prefetch = 0 : i64, scratch_operands = 2 : i64, tpu.core_type = #tpu.core_type<tc>, window_params = [{transform_indices = @transform_0, window_bounds = array<i64: 1, 64, 64>}, {pipeline_mode = #tpu.pipeline_mode<synchronous>, transform_indices = @transform_1, window_bounds = array<i64: 8, 64>}, {pipeline_mode = #tpu.pipeline_mode<synchronous>, transform_indices = @transform_2, window_bounds = array<i64: 32, 64>}, {pipeline_mode = #tpu.pipeline_mode<synchronous>, transform_indices = @transform_3, window_bounds = array<i64: 32, 1>}, {pipeline_mode = #tpu.pipeline_mode<synchronous>, transform_indices = @transform_4, window_bounds = array<i64: 32, 32>}, {pipeline_mode = #tpu.pipeline_mode<synchronous>, transform_indices = @transform_5, window_bounds = array<i64: 32, 1>}, {pipeline_mode = #tpu.pipeline_mode<synchronous>, transform_indices = @transform_6, window_bounds = array<i64: 32, 1>}, {pipeline_mode = #tpu.pipeline_mode<synchronous>, transform_indices = @transform_7, window_bounds = array<i64: 32, 1>}, {pipeline_mode = #tpu.pipeline_mode<synchronous>, transform_indices = @transform_8, window_bounds = array<i64: 32, 32>}, {pipeline_mode = #tpu.pipeline_mode<synchronous>, transform_indices = @transform_9, window_bounds = array<i64: 32, 32>}, {pipeline_mode = #tpu.pipeline_mode<synchronous>, transform_indices = @transform_10, window_bounds = array<i64: 32, 1>}, {pipeline_mode = #tpu.pipeline_mode<synchronous>, transform_indices = @transform_11, window_bounds = array<i64: 8, 8>}, {pipeline_mode = #tpu.pipeline_mode<synchronous>, transform_indices = @transform_12, window_bounds = array<i64: 8, 8>}, {pipeline_mode = #tpu.pipeline_mode<synchronous>, transform_indices = @transform_13, window_bounds = array<i64: 32, 32>}, {pipeline_mode = #tpu.pipeline_mode<synchronous>, transform_indices = @transform_14, window_bounds = array<i64: 32, 1>}, {pipeline_mode = #tpu.pipeline_mode<synchronous>, transform_indices = @transform_15, window_bounds = array<i64: 8, 8>}, {pipeline_mode = #tpu.pipeline_mode<synchronous>, transform_indices = @transform_16, window_bounds = array<i64: 8, 8>}, {pipeline_mode = #tpu.pipeline_mode<synchronous>, transform_indices = @transform_17, window_bounds = array<i64: 1, 8>}, {pipeline_mode = #tpu.pipeline_mode<synchronous>, transform_indices = @transform_18, window_bounds = array<i64: 64, 32>}, {pipeline_mode = #tpu.pipeline_mode<synchronous>, transform_indices = @transform_19, window_bounds = array<i64: 1, 32>}, {pipeline_mode = #tpu.pipeline_mode<synchronous>, transform_indices = @transform_20, window_bounds = array<i64: 8, 32>}, {pipeline_mode = #tpu.pipeline_mode<synchronous>, transform_indices = @transform_21, window_bounds = array<i64: 8, 1>}, {pipeline_mode = #tpu.pipeline_mode<synchronous>, transform_indices = @transform_22, window_bounds = array<i64: 8, 8>}, {transform_indices = @transform_23, window_bounds = array<i64: 1, 8, 2>}]} {
    %c0 = arith.constant 0 : index
    %c0_0 = arith.constant 0 : index
    %c0_1 = arith.constant 0 : index
    %0 = vector.load %arg1[%c0, %c0_0, %c0_1] : memref<1x64x64xf32, #tpu.memory_space<vmem>>, vector<1x64x64xf32>
    %1 = vector.shape_cast %0 : vector<1x64x64xf32> to vector<64x64xf32>
    %2 = arith.truncf %1 : vector<64x64xf32> to vector<64x64xbf16>
    %c0_2 = arith.constant 0 : index
    %c0_3 = arith.constant 0 : index
    %3 = vector.load %arg2[%c0_2, %c0_3] : memref<8x64xbf16, #tpu.memory_space<vmem>>, vector<8x64xbf16>
    %cst = arith.constant dense<0.000000e+00> : vector<8x64xf32>
    %4 = tpu.matmul %3, %2, %cst {dimension_numbers = #tpu.dot_dimension_numbers<[1], [0], [0], [1], [0, 0, 1, 1], [], []>} : vector<8x64xbf16>, vector<64x64xbf16>, vector<8x64xf32> -> vector<8x64xf32>
    %cst_4 = arith.constant dense<0xFF800000> : vector<8xf32>
    %5 = vector.multi_reduction <maximumf>, %4, %cst_4 [1] : vector<8x64xf32> to vector<8xf32>
    %6 = vector.shape_cast %5 : vector<8xf32> to vector<8x1xf32>
    %7 = arith.negf %4 : vector<8x64xf32>
    %8 = math.exp %7 : vector<8x64xf32>
    %cst_5 = arith.constant 1.000000e+00 : f32
    %9 = vector.broadcast %cst_5 : f32 to vector<8x64xf32>
    %10 = arith.addf %9, %8 : vector<8x64xf32>
    %11 = arith.divf %9, %10 : vector<8x64xf32>
    %c0_6 = arith.constant 0 : index
    %c0_7 = arith.constant 0 : index
    %12 = vector.load %arg3[%c0_6, %c0_7] : memref<32x64xbf16, #tpu.memory_space<vmem>>, vector<32x64xbf16>
    %cst_8 = arith.constant dense<0.000000e+00> : vector<32x64xf32>
    %13 = tpu.matmul %12, %2, %cst_8 {dimension_numbers = #tpu.dot_dimension_numbers<[1], [0], [0], [1], [0, 0, 1, 1], [], []>} : vector<32x64xbf16>, vector<64x64xbf16>, vector<32x64xf32> -> vector<32x64xf32>
    %c0_9 = arith.constant 0 : index
    %c0_10 = arith.constant 0 : index
    %14 = vector.load %arg4[%c0_9, %c0_10] : memref<32x1xf32, #tpu.memory_space<vmem>>, vector<32x1xf32>
    %15 = vector.broadcast %14 : vector<32x1xf32> to vector<32x64xf32>
    %16 = arith.addf %13, %15 : vector<32x64xf32>
    %17 = arith.truncf %16 : vector<32x64xf32> to vector<32x64xbf16>
    %18 = arith.truncf %11 : vector<8x64xf32> to vector<8x64xbf16>
    %cst_11 = arith.constant dense<0.000000e+00> : vector<32x8xf32>
    %19 = tpu.matmul %17, %18, %cst_11 {dimension_numbers = #tpu.dot_dimension_numbers<[1], [1], [0], [0], [0, 0, 1, 0], [], []>} : vector<32x64xbf16>, vector<8x64xbf16>, vector<32x8xf32> -> vector<32x8xf32>
    %20 = arith.truncf %19 : vector<32x8xf32> to vector<32x8xbf16>
    %cst_12 = arith.constant dense<0.000000e+00> : vector<32xf32>
    %21 = vector.multi_reduction <add>, %19, %cst_12 [1] : vector<32x8xf32> to vector<32xf32>
    %22 = vector.shape_cast %21 : vector<32xf32> to vector<32x1xf32>
    %cst_13 = arith.constant 8.000000e+00 : f32
    %23 = vector.broadcast %cst_13 : f32 to vector<32x1xf32>
    %24 = arith.divf %22, %23 : vector<32x1xf32>
    %c0_14 = arith.constant 0 : index
    %c0_15 = arith.constant 0 : index
    %25 = vector.load %arg5[%c0_14, %c0_15] : memref<32x32xbf16, #tpu.memory_space<vmem>>, vector<32x32xbf16>
    %26 = arith.truncf %24 : vector<32x1xf32> to vector<32x1xbf16>
    %cst_16 = arith.constant dense<0.000000e+00> : vector<32x1xf32>
    %27 = tpu.matmul %25, %26, %cst_16 {dimension_numbers = #tpu.dot_dimension_numbers<[1], [0], [0], [1], [0, 0, 1, 1], [], []>} : vector<32x32xbf16>, vector<32x1xbf16>, vector<32x1xf32> -> vector<32x1xf32>
    %c0_17 = arith.constant 0 : index
    %c0_18 = arith.constant 0 : index
    %28 = vector.load %arg6[%c0_17, %c0_18] : memref<32x1xf32, #tpu.memory_space<vmem>>, vector<32x1xf32>
    %29 = arith.addf %27, %28 : vector<32x1xf32>
    %c0_19 = arith.constant 0 : index
    %c0_20 = arith.constant 0 : index
    %30 = vector.load %arg7[%c0_19, %c0_20] : memref<32x1xf32, #tpu.memory_space<vmem>>, vector<32x1xf32>
    %31 = arith.mulf %29, %30 : vector<32x1xf32>
    %c0_21 = arith.constant 0 : index
    %c0_22 = arith.constant 0 : index
    %32 = vector.load %arg8[%c0_21, %c0_22] : memref<32x1xf32, #tpu.memory_space<vmem>>, vector<32x1xf32>
    %33 = arith.addf %31, %32 : vector<32x1xf32>
    %cst_23 = arith.constant 0.000000e+00 : f32
    %34 = vector.broadcast %cst_23 : f32 to vector<32x1xf32>
    %35 = arith.cmpf ogt, %33, %34 : vector<32x1xf32>
    %cst_24 = arith.constant 2.000000e-01 : f32
    %36 = vector.broadcast %cst_24 : f32 to vector<32x1xf32>
    %37 = arith.mulf %36, %33 : vector<32x1xf32>
    %38 = arith.select %35, %33, %37 : vector<32x1xi1>, vector<32x1xf32>
    %c0_25 = arith.constant 0 : index
    %c0_26 = arith.constant 0 : index
    %39 = vector.load %arg9[%c0_25, %c0_26] : memref<32x32xbf16, #tpu.memory_space<vmem>>, vector<32x32xbf16>
    %40 = arith.truncf %38 : vector<32x1xf32> to vector<32x1xbf16>
    %cst_27 = arith.constant dense<0.000000e+00> : vector<32x1xf32>
    %41 = tpu.matmul %39, %40, %cst_27 {dimension_numbers = #tpu.dot_dimension_numbers<[1], [0], [0], [1], [0, 0, 1, 1], [], []>} : vector<32x32xbf16>, vector<32x1xbf16>, vector<32x1xf32> -> vector<32x1xf32>
    %c0_28 = arith.constant 0 : index
    %c0_29 = arith.constant 0 : index
    %42 = vector.load %arg10[%c0_28, %c0_29] : memref<32x32xbf16, #tpu.memory_space<vmem>>, vector<32x32xbf16>
    %cst_30 = arith.constant dense<0.000000e+00> : vector<32x8xf32>
    %43 = tpu.matmul %42, %20, %cst_30 {dimension_numbers = #tpu.dot_dimension_numbers<[1], [0], [0], [1], [0, 0, 1, 1], [], []>} : vector<32x32xbf16>, vector<32x8xbf16>, vector<32x8xf32> -> vector<32x8xf32>
    %44 = vector.broadcast %41 : vector<32x1xf32> to vector<32x8xf32>
    %45 = arith.addf %44, %43 : vector<32x8xf32>
    %c0_31 = arith.constant 0 : index
    %c0_32 = arith.constant 0 : index
    %46 = vector.load %arg11[%c0_31, %c0_32] : memref<32x1xf32, #tpu.memory_space<vmem>>, vector<32x1xf32>
    %47 = vector.broadcast %46 : vector<32x1xf32> to vector<32x8xf32>
    %48 = arith.addf %45, %47 : vector<32x8xf32>
    %49 = arith.negf %48 : vector<32x8xf32>
    %50 = math.exp %49 : vector<32x8xf32>
    %cst_33 = arith.constant 1.000000e+00 : f32
    %51 = vector.broadcast %cst_33 : f32 to vector<32x8xf32>
    %52 = arith.addf %51, %50 : vector<32x8xf32>
    %53 = arith.divf %51, %52 : vector<32x8xf32>
    %c0_34 = arith.constant 0 : index
    %c0_35 = arith.constant 0 : index
    %54 = vector.load %arg12[%c0_34, %c0_35] : memref<8x8xbf16, #tpu.memory_space<vmem>>, vector<8x8xbf16>
    %cst_36 = arith.constant dense<0.000000e+00> : vector<8x32xf32>
    %55 = tpu.matmul %54, %20, %cst_36 {dimension_numbers = #tpu.dot_dimension_numbers<[1], [1], [0], [0], [0, 0, 1, 0], [], []>} : vector<8x8xbf16>, vector<32x8xbf16>, vector<8x32xf32> -> vector<8x32xf32>
    %cst_37 = arith.constant 0.000000e+00 : f32
    %56 = vector.broadcast %cst_37 : f32 to vector<8x32xf32>
    %57 = arith.cmpf ogt, %55, %56 : vector<8x32xf32>
    %cst_38 = arith.constant 2.000000e-01 : f32
    %58 = vector.broadcast %cst_38 : f32 to vector<8x32xf32>
    %59 = arith.mulf %58, %55 : vector<8x32xf32>
    %60 = arith.select %57, %55, %59 : vector<8x32xi1>, vector<8x32xf32>
    %c0_39 = arith.constant 0 : index
    %c0_40 = arith.constant 0 : index
    %61 = vector.load %arg14[%c0_39, %c0_40] : memref<32x32xbf16, #tpu.memory_space<vmem>>, vector<32x32xbf16>
    %62 = arith.truncf %53 : vector<32x8xf32> to vector<32x8xbf16>
    %cst_41 = arith.constant dense<0.000000e+00> : vector<32x8xf32>
    %63 = tpu.matmul %61, %62, %cst_41 {dimension_numbers = #tpu.dot_dimension_numbers<[1], [0], [0], [1], [0, 0, 1, 1], [], []>} : vector<32x32xbf16>, vector<32x8xbf16>, vector<32x8xf32> -> vector<32x8xf32>
    %c0_42 = arith.constant 0 : index
    %c0_43 = arith.constant 0 : index
    %64 = vector.load %arg15[%c0_42, %c0_43] : memref<32x1xf32, #tpu.memory_space<vmem>>, vector<32x1xf32>
    %65 = vector.broadcast %64 : vector<32x1xf32> to vector<32x8xf32>
    %66 = arith.addf %63, %65 : vector<32x8xf32>
    %cst_44 = arith.constant 0.000000e+00 : f32
    %67 = vector.broadcast %cst_44 : f32 to vector<32x8xf32>
    %68 = arith.cmpf ogt, %66, %67 : vector<32x8xf32>
    %cst_45 = arith.constant 2.000000e-01 : f32
    %69 = vector.broadcast %cst_45 : f32 to vector<32x8xf32>
    %70 = arith.mulf %69, %66 : vector<32x8xf32>
    %71 = arith.select %68, %66, %70 : vector<32x8xi1>, vector<32x8xf32>
    %72 = vector.extract_strided_slice %60 {offsets = [0, 0], sizes = [8, 8], strides = [1, 1]} : vector<8x32xf32> to vector<8x8xf32>
    %c0_46 = arith.constant 0 : index
    %c0_47 = arith.constant 0 : index
    %73 = tpu.strided_load %arg25[%c0_46, %c0_47] {strides = array<i32: 4, 1>} : memref<32x8xf32, #tpu.memory_space<vmem>>, vector<8x8xf32>
    tpu.strided_store %arg25[%c0_46, %c0_47], %72 {strides = array<i32: 4, 1>} : memref<32x8xf32, #tpu.memory_space<vmem>>, vector<8x8xf32>
    %74 = vector.extract_strided_slice %60 {offsets = [0, 8], sizes = [8, 8], strides = [1, 1]} : vector<8x32xf32> to vector<8x8xf32>
    %c1 = arith.constant 1 : index
    %c0_48 = arith.constant 0 : index
    %75 = tpu.strided_load %arg25[%c1, %c0_48] {strides = array<i32: 4, 1>} : memref<32x8xf32, #tpu.memory_space<vmem>>, vector<8x8xf32>
    tpu.strided_store %arg25[%c1, %c0_48], %74 {strides = array<i32: 4, 1>} : memref<32x8xf32, #tpu.memory_space<vmem>>, vector<8x8xf32>
    %76 = vector.extract_strided_slice %60 {offsets = [0, 16], sizes = [8, 8], strides = [1, 1]} : vector<8x32xf32> to vector<8x8xf32>
    %c2 = arith.constant 2 : index
    %c0_49 = arith.constant 0 : index
    %77 = tpu.strided_load %arg25[%c2, %c0_49] {strides = array<i32: 4, 1>} : memref<32x8xf32, #tpu.memory_space<vmem>>, vector<8x8xf32>
    tpu.strided_store %arg25[%c2, %c0_49], %76 {strides = array<i32: 4, 1>} : memref<32x8xf32, #tpu.memory_space<vmem>>, vector<8x8xf32>
    %78 = vector.extract_strided_slice %60 {offsets = [0, 24], sizes = [8, 8], strides = [1, 1]} : vector<8x32xf32> to vector<8x8xf32>
    %c3 = arith.constant 3 : index
    %c0_50 = arith.constant 0 : index
    %79 = tpu.strided_load %arg25[%c3, %c0_50] {strides = array<i32: 4, 1>} : memref<32x8xf32, #tpu.memory_space<vmem>>, vector<8x8xf32>
    tpu.strided_store %arg25[%c3, %c0_50], %78 {strides = array<i32: 4, 1>} : memref<32x8xf32, #tpu.memory_space<vmem>>, vector<8x8xf32>
    %c0_51 = arith.constant 0 : index
    %c0_52 = arith.constant 0 : index
    %80 = vector.load %arg25[%c0_51, %c0_52] : memref<32x8xf32, #tpu.memory_space<vmem>>, vector<32x8xf32>
    %81 = arith.truncf %80 : vector<32x8xf32> to vector<32x8xbf16>
    %c0_53 = arith.constant 0 : index
    %c0_54 = arith.constant 0 : index
    %82 = vector.load %arg25[%c0_53, %c0_54] : memref<32x8xf32, #tpu.memory_space<vmem>>, vector<32x8xf32>
    tpu.vector_store %arg25[%c0_53, %c0_54], %53 {strides = array<i32>} : memref<32x8xf32, #tpu.memory_space<vmem>>, vector<32x8xf32>,
    %c0_55 = arith.constant 0 : index
    %c0_56 = arith.constant 0 : index
    %83 = tpu.strided_load %arg25[%c0_55, %c0_56] {strides = array<i32: 4, 1>} : memref<32x8xf32, #tpu.memory_space<vmem>>, vector<8x8xf32>
    %c0_57 = arith.constant 0 : index
    %c0_58 = arith.constant 0 : index
    %84 = vector.load %arg26[%c0_57, %c0_58] : memref<8x64xf32, #tpu.memory_space<vmem>>, vector<8x8xf32>
    tpu.vector_store %arg26[%c0_57, %c0_58], %83 {strides = array<i32>} : memref<8x64xf32, #tpu.memory_space<vmem>>, vector<8x8xf32>,
    %c1_59 = arith.constant 1 : index
    %c0_60 = arith.constant 0 : index
    %85 = tpu.strided_load %arg25[%c1_59, %c0_60] {strides = array<i32: 4, 1>} : memref<32x8xf32, #tpu.memory_space<vmem>>, vector<8x8xf32>
    %c0_61 = arith.constant 0 : index
    %c8 = arith.constant 8 : index
    %86 = vector.load %arg26[%c0_61, %c8] : memref<8x64xf32, #tpu.memory_space<vmem>>, vector<8x8xf32>
    tpu.vector_store %arg26[%c0_61, %c8], %85 {strides = array<i32>} : memref<8x64xf32, #tpu.memory_space<vmem>>, vector<8x8xf32>,
    %c2_62 = arith.constant 2 : index
    %c0_63 = arith.constant 0 : index
    %87 = tpu.strided_load %arg25[%c2_62, %c0_63] {strides = array<i32: 4, 1>} : memref<32x8xf32, #tpu.memory_space<vmem>>, vector<8x8xf32>
    %c0_64 = arith.constant 0 : index
    %c16 = arith.constant 16 : index
    %88 = vector.load %arg26[%c0_64, %c16] : memref<8x64xf32, #tpu.memory_space<vmem>>, vector<8x8xf32>
    tpu.vector_store %arg26[%c0_64, %c16], %87 {strides = array<i32>} : memref<8x64xf32, #tpu.memory_space<vmem>>, vector<8x8xf32>,
    %c3_65 = arith.constant 3 : index
    %c0_66 = arith.constant 0 : index
    %89 = tpu.strided_load %arg25[%c3_65, %c0_66] {strides = array<i32: 4, 1>} : memref<32x8xf32, #tpu.memory_space<vmem>>, vector<8x8xf32>
    %c0_67 = arith.constant 0 : index
    %c24 = arith.constant 24 : index
    %90 = vector.load %arg26[%c0_67, %c24] : memref<8x64xf32, #tpu.memory_space<vmem>>, vector<8x8xf32>
    tpu.vector_store %arg26[%c0_67, %c24], %89 {strides = array<i32>} : memref<8x64xf32, #tpu.memory_space<vmem>>, vector<8x8xf32>,
    %c0_68 = arith.constant 0 : index
    %c0_69 = arith.constant 0 : index
    %91 = vector.load %arg25[%c0_68, %c0_69] : memref<32x8xf32, #tpu.memory_space<vmem>>, vector<32x8xf32>
    tpu.vector_store %arg25[%c0_68, %c0_69], %71 {strides = array<i32>} : memref<32x8xf32, #tpu.memory_space<vmem>>, vector<32x8xf32>,
    %c0_70 = arith.constant 0 : index
    %c0_71 = arith.constant 0 : index
    %92 = tpu.strided_load %arg25[%c0_70, %c0_71] {strides = array<i32: 4, 1>} : memref<32x8xf32, #tpu.memory_space<vmem>>, vector<8x8xf32>
    %c0_72 = arith.constant 0 : index
    %c32 = arith.constant 32 : index
    %93 = vector.load %arg26[%c0_72, %c32] : memref<8x64xf32, #tpu.memory_space<vmem>>, vector<8x8xf32>
    tpu.vector_store %arg26[%c0_72, %c32], %92 {strides = array<i32>} : memref<8x64xf32, #tpu.memory_space<vmem>>, vector<8x8xf32>,
    %c1_73 = arith.constant 1 : index
    %c0_74 = arith.constant 0 : index
    %94 = tpu.strided_load %arg25[%c1_73, %c0_74] {strides = array<i32: 4, 1>} : memref<32x8xf32, #tpu.memory_space<vmem>>, vector<8x8xf32>
    %c0_75 = arith.constant 0 : index
    %c40 = arith.constant 40 : index
    %95 = vector.load %arg26[%c0_75, %c40] : memref<8x64xf32, #tpu.memory_space<vmem>>, vector<8x8xf32>
    tpu.vector_store %arg26[%c0_75, %c40], %94 {strides = array<i32>} : memref<8x64xf32, #tpu.memory_space<vmem>>, vector<8x8xf32>,
    %c2_76 = arith.constant 2 : index
    %c0_77 = arith.constant 0 : index
    %96 = tpu.strided_load %arg25[%c2_76, %c0_77] {strides = array<i32: 4, 1>} : memref<32x8xf32, #tpu.memory_space<vmem>>, vector<8x8xf32>
    %c0_78 = arith.constant 0 : index
    %c48 = arith.constant 48 : index
    %97 = vector.load %arg26[%c0_78, %c48] : memref<8x64xf32, #tpu.memory_space<vmem>>, vector<8x8xf32>
    tpu.vector_store %arg26[%c0_78, %c48], %96 {strides = array<i32>} : memref<8x64xf32, #tpu.memory_space<vmem>>, vector<8x8xf32>,
    %c3_79 = arith.constant 3 : index
    %c0_80 = arith.constant 0 : index
    %98 = tpu.strided_load %arg25[%c3_79, %c0_80] {strides = array<i32: 4, 1>} : memref<32x8xf32, #tpu.memory_space<vmem>>, vector<8x8xf32>
    %c0_81 = arith.constant 0 : index
    %c56 = arith.constant 56 : index
    %99 = vector.load %arg26[%c0_81, %c56] : memref<8x64xf32, #tpu.memory_space<vmem>>, vector<8x8xf32>
    tpu.vector_store %arg26[%c0_81, %c56], %98 {strides = array<i32>} : memref<8x64xf32, #tpu.memory_space<vmem>>, vector<8x8xf32>,
    %c0_82 = arith.constant 0 : index
    %c0_83 = arith.constant 0 : index
    %100 = vector.load %arg26[%c0_82, %c0_83] : memref<8x64xf32, #tpu.memory_space<vmem>>, vector<8x64xf32>
    %101 = vector.extract_strided_slice %100 {offsets = [0, 0], sizes = [8, 32], strides = [1, 1]} : vector<8x64xf32> to vector<8x32xf32>
    %102 = vector.extract_strided_slice %100 {offsets = [0, 32], sizes = [8, 32], strides = [1, 1]} : vector<8x64xf32> to vector<8x32xf32>
    %c0_84 = arith.constant 0 : index
    %c0_85 = arith.constant 0 : index
    %103 = vector.load %arg16[%c0_84, %c0_85] : memref<8x8xbf16, #tpu.memory_space<vmem>>, vector<8x8xbf16>
    %cst_86 = arith.constant dense<0.000000e+00> : vector<32x8xf32>
    %104 = tpu.matmul %20, %103, %cst_86 {dimension_numbers = #tpu.dot_dimension_numbers<[1], [0], [0], [1], [0, 0, 1, 1], [], []>} : vector<32x8xbf16>, vector<8x8xbf16>, vector<32x8xf32> -> vector<32x8xf32>
    %c0_87 = arith.constant 0 : index
    %c0_88 = arith.constant 0 : index
    %105 = vector.load %arg17[%c0_87, %c0_88] : memref<8x8xbf16, #tpu.memory_space<vmem>>, vector<8x8xbf16>
    %cst_89 = arith.constant dense<0.000000e+00> : vector<32x8xf32>
    %106 = tpu.matmul %81, %105, %cst_89 {dimension_numbers = #tpu.dot_dimension_numbers<[1], [0], [0], [1], [0, 0, 1, 1], [], []>} : vector<32x8xbf16>, vector<8x8xbf16>, vector<32x8xf32> -> vector<32x8xf32>
    %107 = arith.addf %104, %106 : vector<32x8xf32>
    %c0_90 = arith.constant 0 : index
    %c0_91 = arith.constant 0 : index
    %108 = vector.load %arg18[%c0_90, %c0_91] : memref<1x8xf32, #tpu.memory_space<vmem>>, vector<1x8xf32>
    %109 = vector.broadcast %108 : vector<1x8xf32> to vector<32x8xf32>
    %110 = arith.addf %107, %109 : vector<32x8xf32>
    %111 = math.tanh %110 : vector<32x8xf32>
    %112 = arith.truncf %100 : vector<8x64xf32> to vector<8x64xbf16>
    %c0_92 = arith.constant 0 : index
    %c0_93 = arith.constant 0 : index
    %113 = vector.load %arg19[%c0_92, %c0_93] : memref<64x32xbf16, #tpu.memory_space<vmem>>, vector<64x32xbf16>
    %cst_94 = arith.constant dense<0.000000e+00> : vector<8x32xf32>
    %114 = tpu.matmul %112, %113, %cst_94 {dimension_numbers = #tpu.dot_dimension_numbers<[1], [0], [0], [1], [0, 0, 1, 1], [], []>} : vector<8x64xbf16>, vector<64x32xbf16>, vector<8x32xf32> -> vector<8x32xf32>
    %c0_95 = arith.constant 0 : index
    %c0_96 = arith.constant 0 : index
    %115 = vector.load %arg20[%c0_95, %c0_96] : memref<1x32xf32, #tpu.memory_space<vmem>>, vector<1x32xf32>
    %116 = vector.broadcast %115 : vector<1x32xf32> to vector<8x32xf32>
    %117 = arith.addf %114, %116 : vector<8x32xf32>
    %118 = math.tanh %117 : vector<8x32xf32>
    %119 = arith.mulf %111, %80 : vector<32x8xf32>
    %120 = arith.addf %19, %119 : vector<32x8xf32>
    %121 = arith.mulf %118, %102 : vector<8x32xf32>
    %122 = arith.addf %101, %121 : vector<8x32xf32>
    %c0_97 = arith.constant 0 : index
    %c0_98 = arith.constant 0 : index
    %123 = vector.load %arg25[%c0_97, %c0_98] : memref<32x8xf32, #tpu.memory_space<vmem>>, vector<32x8xf32>
    tpu.vector_store %arg25[%c0_97, %c0_98], %120 {strides = array<i32>} : memref<32x8xf32, #tpu.memory_space<vmem>>, vector<32x8xf32>,
    %c0_99 = arith.constant 0 : index
    %c0_100 = arith.constant 0 : index
    %124 = tpu.strided_load %arg25[%c0_99, %c0_100] {strides = array<i32: 4, 1>} : memref<32x8xf32, #tpu.memory_space<vmem>>, vector<8x8xf32>
    %c0_101 = arith.constant 0 : index
    %c0_102 = arith.constant 0 : index
    %125 = vector.load %arg26[%c0_101, %c0_102] : memref<8x64xf32, #tpu.memory_space<vmem>>, vector<8x8xf32>
    tpu.vector_store %arg26[%c0_101, %c0_102], %124 {strides = array<i32>} : memref<8x64xf32, #tpu.memory_space<vmem>>, vector<8x8xf32>,
    %c1_103 = arith.constant 1 : index
    %c0_104 = arith.constant 0 : index
    %126 = tpu.strided_load %arg25[%c1_103, %c0_104] {strides = array<i32: 4, 1>} : memref<32x8xf32, #tpu.memory_space<vmem>>, vector<8x8xf32>
    %c0_105 = arith.constant 0 : index
    %c8_106 = arith.constant 8 : index
    %127 = vector.load %arg26[%c0_105, %c8_106] : memref<8x64xf32, #tpu.memory_space<vmem>>, vector<8x8xf32>
    tpu.vector_store %arg26[%c0_105, %c8_106], %126 {strides = array<i32>} : memref<8x64xf32, #tpu.memory_space<vmem>>, vector<8x8xf32>,
    %c2_107 = arith.constant 2 : index
    %c0_108 = arith.constant 0 : index
    %128 = tpu.strided_load %arg25[%c2_107, %c0_108] {strides = array<i32: 4, 1>} : memref<32x8xf32, #tpu.memory_space<vmem>>, vector<8x8xf32>
    %c0_109 = arith.constant 0 : index
    %c16_110 = arith.constant 16 : index
    %129 = vector.load %arg26[%c0_109, %c16_110] : memref<8x64xf32, #tpu.memory_space<vmem>>, vector<8x8xf32>
    tpu.vector_store %arg26[%c0_109, %c16_110], %128 {strides = array<i32>} : memref<8x64xf32, #tpu.memory_space<vmem>>, vector<8x8xf32>,
    %c3_111 = arith.constant 3 : index
    %c0_112 = arith.constant 0 : index
    %130 = tpu.strided_load %arg25[%c3_111, %c0_112] {strides = array<i32: 4, 1>} : memref<32x8xf32, #tpu.memory_space<vmem>>, vector<8x8xf32>
    %c0_113 = arith.constant 0 : index
    %c24_114 = arith.constant 24 : index
    %131 = vector.load %arg26[%c0_113, %c24_114] : memref<8x64xf32, #tpu.memory_space<vmem>>, vector<8x8xf32>
    tpu.vector_store %arg26[%c0_113, %c24_114], %130 {strides = array<i32>} : memref<8x64xf32, #tpu.memory_space<vmem>>, vector<8x8xf32>,
    %c0_115 = arith.constant 0 : index
    %c0_116 = arith.constant 0 : index
    %132 = vector.load %arg26[%c0_115, %c0_116] : memref<8x64xf32, #tpu.memory_space<vmem>>, vector<8x32xf32>
    %133 = vector.extract_strided_slice %122 {offsets = [0, 0], sizes = [8, 8], strides = [1, 1]} : vector<8x32xf32> to vector<8x8xf32>
    %c0_117 = arith.constant 0 : index
    %c0_118 = arith.constant 0 : index
    %134 = tpu.strided_load %arg25[%c0_117, %c0_118] {strides = array<i32: 4, 1>} : memref<32x8xf32, #tpu.memory_space<vmem>>, vector<8x8xf32>
    tpu.strided_store %arg25[%c0_117, %c0_118], %133 {strides = array<i32: 4, 1>} : memref<32x8xf32, #tpu.memory_space<vmem>>, vector<8x8xf32>
    %135 = vector.extract_strided_slice %122 {offsets = [0, 8], sizes = [8, 8], strides = [1, 1]} : vector<8x32xf32> to vector<8x8xf32>
    %c1_119 = arith.constant 1 : index
    %c0_120 = arith.constant 0 : index
    %136 = tpu.strided_load %arg25[%c1_119, %c0_120] {strides = array<i32: 4, 1>} : memref<32x8xf32, #tpu.memory_space<vmem>>, vector<8x8xf32>
    tpu.strided_store %arg25[%c1_119, %c0_120], %135 {strides = array<i32: 4, 1>} : memref<32x8xf32, #tpu.memory_space<vmem>>, vector<8x8xf32>
    %137 = vector.extract_strided_slice %122 {offsets = [0, 16], sizes = [8, 8], strides = [1, 1]} : vector<8x32xf32> to vector<8x8xf32>
    %c2_121 = arith.constant 2 : index
    %c0_122 = arith.constant 0 : index
    %138 = tpu.strided_load %arg25[%c2_121, %c0_122] {strides = array<i32: 4, 1>} : memref<32x8xf32, #tpu.memory_space<vmem>>, vector<8x8xf32>
    tpu.strided_store %arg25[%c2_121, %c0_122], %137 {strides = array<i32: 4, 1>} : memref<32x8xf32, #tpu.memory_space<vmem>>, vector<8x8xf32>
    %139 = vector.extract_strided_slice %122 {offsets = [0, 24], sizes = [8, 8], strides = [1, 1]} : vector<8x32xf32> to vector<8x8xf32>
    %c3_123 = arith.constant 3 : index
    %c0_124 = arith.constant 0 : index
    %140 = tpu.strided_load %arg25[%c3_123, %c0_124] {strides = array<i32: 4, 1>} : memref<32x8xf32, #tpu.memory_space<vmem>>, vector<8x8xf32>
    tpu.strided_store %arg25[%c3_123, %c0_124], %139 {strides = array<i32: 4, 1>} : memref<32x8xf32, #tpu.memory_space<vmem>>, vector<8x8xf32>
    %c0_125 = arith.constant 0 : index
    %c0_126 = arith.constant 0 : index
    %141 = vector.load %arg25[%c0_125, %c0_126] : memref<32x8xf32, #tpu.memory_space<vmem>>, vector<32x8xf32>
    %142 = arith.truncf %132 : vector<8x32xf32> to vector<8x32xbf16>
    %c0_127 = arith.constant 0 : index
    %c0_128 = arith.constant 0 : index
    %143 = vector.load %arg13[%c0_127, %c0_128] : memref<8x8xbf16, #tpu.memory_space<vmem>>, vector<8x8xbf16>
    %cst_129 = arith.constant dense<0.000000e+00> : vector<32x8xf32>
    %144 = tpu.matmul %142, %143, %cst_129 {dimension_numbers = #tpu.dot_dimension_numbers<[0], [0], [1], [1], [0, 1, 1, 1], [], []>} : vector<8x32xbf16>, vector<8x8xbf16>, vector<32x8xf32> -> vector<32x8xf32>
    %cst_130 = arith.constant 0.000000e+00 : f32
    %145 = vector.broadcast %cst_130 : f32 to vector<32x8xf32>
    %146 = arith.cmpf ogt, %144, %145 : vector<32x8xf32>
    %cst_131 = arith.constant 2.000000e-01 : f32
    %147 = vector.broadcast %cst_131 : f32 to vector<32x8xf32>
    %148 = arith.mulf %147, %144 : vector<32x8xf32>
    %149 = arith.select %146, %144, %148 : vector<32x8xi1>, vector<32x8xf32>
    %c0_132 = arith.constant 0 : index
    %c0_133 = arith.constant 0 : index
    %150 = vector.load %arg14[%c0_132, %c0_133] : memref<32x32xbf16, #tpu.memory_space<vmem>>, vector<32x32xbf16>
    %151 = arith.truncf %141 : vector<32x8xf32> to vector<32x8xbf16>
    %cst_134 = arith.constant dense<0.000000e+00> : vector<32x8xf32>
    %152 = tpu.matmul %150, %151, %cst_134 {dimension_numbers = #tpu.dot_dimension_numbers<[1], [0], [0], [1], [0, 0, 1, 1], [], []>} : vector<32x32xbf16>, vector<32x8xbf16>, vector<32x8xf32> -> vector<32x8xf32>
    %c0_135 = arith.constant 0 : index
    %c0_136 = arith.constant 0 : index
    %153 = vector.load %arg15[%c0_135, %c0_136] : memref<32x1xf32, #tpu.memory_space<vmem>>, vector<32x1xf32>
    %154 = vector.broadcast %153 : vector<32x1xf32> to vector<32x8xf32>
    %155 = arith.addf %152, %154 : vector<32x8xf32>
    %cst_137 = arith.constant 0.000000e+00 : f32
    %156 = vector.broadcast %cst_137 : f32 to vector<32x8xf32>
    %157 = arith.cmpf ogt, %155, %156 : vector<32x8xf32>
    %cst_138 = arith.constant 2.000000e-01 : f32
    %158 = vector.broadcast %cst_138 : f32 to vector<32x8xf32>
    %159 = arith.mulf %158, %155 : vector<32x8xf32>
    %160 = arith.select %157, %155, %159 : vector<32x8xi1>, vector<32x8xf32>
    %161 = arith.addf %19, %53 : vector<32x8xf32>
    %162 = arith.mulf %149, %161 : vector<32x8xf32>
    %163 = arith.mulf %162, %160 : vector<32x8xf32>
    %164 = arith.negf %163 : vector<32x8xf32>
    %165 = math.exp %164 : vector<32x8xf32>
    %cst_139 = arith.constant 1.000000e+00 : f32
    %166 = vector.broadcast %cst_139 : f32 to vector<32x8xf32>
    %167 = arith.addf %166, %165 : vector<32x8xf32>
    %168 = arith.divf %166, %167 : vector<32x8xf32>
    %169 = arith.addf %168, %19 : vector<32x8xf32>
    %c0_140 = arith.constant 0 : index
    %c0_141 = arith.constant 0 : index
    %170 = vector.load %arg21[%c0_140, %c0_141] : memref<8x32xbf16, #tpu.memory_space<vmem>>, vector<8x32xbf16>
    %171 = arith.truncf %169 : vector<32x8xf32> to vector<32x8xbf16>
    %cst_142 = arith.constant dense<0.000000e+00> : vector<8x8xf32>
    %172 = tpu.matmul %170, %171, %cst_142 {dimension_numbers = #tpu.dot_dimension_numbers<[1], [0], [0], [1], [0, 0, 1, 1], [], []>} : vector<8x32xbf16>, vector<32x8xbf16>, vector<8x8xf32> -> vector<8x8xf32>
    %c0_143 = arith.constant 0 : index
    %c0_144 = arith.constant 0 : index
    %173 = vector.load %arg22[%c0_143, %c0_144] : memref<8x1xf32, #tpu.memory_space<vmem>>, vector<8x1xf32>
    %174 = vector.broadcast %173 : vector<8x1xf32> to vector<8x8xf32>
    %175 = arith.addf %172, %174 : vector<8x8xf32>
    %c0_145 = arith.constant 0 : index
    %c0_146 = arith.constant 0 : index
    %176 = vector.load %arg23[%c0_145, %c0_146] : memref<8x8xf32, #tpu.memory_space<vmem>>, vector<8x8xf32>
    %177 = arith.mulf %175, %176 : vector<8x8xf32>
    %cst_147 = arith.constant dense<0.000000e+00> : vector<8xf32>
    %178 = vector.multi_reduction <add>, %177, %cst_147 [1] : vector<8x8xf32> to vector<8xf32>
    %179 = vector.shape_cast %178 : vector<8xf32> to vector<8x1xf32>
    %180 = tpu.concatenate %6, %179 in 1 : vector<8x1xf32>, vector<8x1xf32> -> vector<8x2xf32>
    %181 = vector.shape_cast %180 : vector<8x2xf32> to vector<1x8x2xf32>
    %c0_148 = arith.constant 0 : index
    %c0_149 = arith.constant 0 : index
    %c0_150 = arith.constant 0 : index
    %182 = vector.load %arg24[%c0_148, %c0_149, %c0_150] : memref<1x8x2xf32, #tpu.memory_space<vmem>>, vector<1x8x2xf32>
    tpu.vector_store %arg24[%c0_148, %c0_149, %c0_150], %181 {strides = array<i32>} : memref<1x8x2xf32, #tpu.memory_space<vmem>>, vector<1x8x2xf32>,
    return
  }
  func.func @transform_0(%arg0: i32) -> (i32, i32, i32) {
    %c0_i32 = arith.constant 0 : i32
    %c0_i32_0 = arith.constant 0 : i32
    %c0_i32_1 = arith.constant 0 : i32
    return %arg0, %c0_i32, %c0_i32_0 : i32, i32, i32
  }
  func.func @transform_1(%arg0: i32) -> (i32, i32) {
    %c0_i32 = arith.constant 0 : i32
    %c0_i32_0 = arith.constant 0 : i32
    %c0_i32_1 = arith.constant 0 : i32
    return %c0_i32, %c0_i32_0 : i32, i32
  }
  func.func @transform_2(%arg0: i32) -> (i32, i32) {
    %c0_i32 = arith.constant 0 : i32
    %c0_i32_0 = arith.constant 0 : i32
    %c0_i32_1 = arith.constant 0 : i32
    return %c0_i32, %c0_i32_0 : i32, i32
  }
  func.func @transform_3(%arg0: i32) -> (i32, i32) {
    %c0_i32 = arith.constant 0 : i32
    %c0_i32_0 = arith.constant 0 : i32
    %c0_i32_1 = arith.constant 0 : i32
    return %c0_i32, %c0_i32_0 : i32, i32
  }
  func.func @transform_4(%arg0: i32) -> (i32, i32) {
    %c0_i32 = arith.constant 0 : i32
    %c0_i32_0 = arith.constant 0 : i32
    %c0_i32_1 = arith.constant 0 : i32
    return %c0_i32, %c0_i32_0 : i32, i32
  }
  func.func @transform_5(%arg0: i32) -> (i32, i32) {
    %c0_i32 = arith.constant 0 : i32
    %c0_i32_0 = arith.constant 0 : i32
    %c0_i32_1 = arith.constant 0 : i32
    return %c0_i32, %c0_i32_0 : i32, i32
  }
  func.func @transform_6(%arg0: i32) -> (i32, i32) {
    %c0_i32 = arith.constant 0 : i32
    %c0_i32_0 = arith.constant 0 : i32
    %c0_i32_1 = arith.constant 0 : i32
    return %c0_i32, %c0_i32_0 : i32, i32
  }
  func.func @transform_7(%arg0: i32) -> (i32, i32) {
    %c0_i32 = arith.constant 0 : i32
    %c0_i32_0 = arith.constant 0 : i32
    %c0_i32_1 = arith.constant 0 : i32
    return %c0_i32, %c0_i32_0 : i32, i32
  }
  func.func @transform_8(%arg0: i32) -> (i32, i32) {
    %c0_i32 = arith.constant 0 : i32
    %c0_i32_0 = arith.constant 0 : i32
    %c0_i32_1 = arith.constant 0 : i32
    return %c0_i32, %c0_i32_0 : i32, i32
  }
  func.func @transform_9(%arg0: i32) -> (i32, i32) {
    %c0_i32 = arith.constant 0 : i32
    %c0_i32_0 = arith.constant 0 : i32
    %c0_i32_1 = arith.constant 0 : i32
    return %c0_i32, %c0_i32_0 : i32, i32
  }
  func.func @transform_10(%arg0: i32) -> (i32, i32) {
    %c0_i32 = arith.constant 0 : i32
    %c0_i32_0 = arith.constant 0 : i32
    %c0_i32_1 = arith.constant 0 : i32
    return %c0_i32, %c0_i32_0 : i32, i32
  }
  func.func @transform_11(%arg0: i32) -> (i32, i32) {
    %c0_i32 = arith.constant 0 : i32
    %c0_i32_0 = arith.constant 0 : i32
    %c0_i32_1 = arith.constant 0 : i32
    return %c0_i32, %c0_i32_0 : i32, i32
  }
  func.func @transform_12(%arg0: i32) -> (i32, i32) {
    %c0_i32 = arith.constant 0 : i32
    %c0_i32_0 = arith.constant 0 : i32
    %c0_i32_1 = arith.constant 0 : i32
    return %c0_i32, %c0_i32_0 : i32, i32
  }
  func.func @transform_13(%arg0: i32) -> (i32, i32) {
    %c0_i32 = arith.constant 0 : i32
    %c0_i32_0 = arith.constant 0 : i32
    %c0_i32_1 = arith.constant 0 : i32
    return %c0_i32, %c0_i32_0 : i32, i32
  }
  func.func @transform_14(%arg0: i32) -> (i32, i32) {
    %c0_i32 = arith.constant 0 : i32
    %c0_i32_0 = arith.constant 0 : i32
    %c0_i32_1 = arith.constant 0 : i32
    return %c0_i32, %c0_i32_0 : i32, i32
  }
  func.func @transform_15(%arg0: i32) -> (i32, i32) {
    %c0_i32 = arith.constant 0 : i32
    %c0_i32_0 = arith.constant 0 : i32
    %c0_i32_1 = arith.constant 0 : i32
    return %c0_i32, %c0_i32_0 : i32, i32
  }
  func.func @transform_16(%arg0: i32) -> (i32, i32) {
    %c0_i32 = arith.constant 0 : i32
    %c0_i32_0 = arith.constant 0 : i32
    %c0_i32_1 = arith.constant 0 : i32
    return %c0_i32, %c0_i32_0 : i32, i32
  }
  func.func @transform_17(%arg0: i32) -> (i32, i32) {
    %c0_i32 = arith.constant 0 : i32
    %c0_i32_0 = arith.constant 0 : i32
    %c0_i32_1 = arith.constant 0 : i32
    return %c0_i32, %c0_i32_0 : i32, i32
  }
  func.func @transform_18(%arg0: i32) -> (i32, i32) {
    %c0_i32 = arith.constant 0 : i32
    %c0_i32_0 = arith.constant 0 : i32
    %c0_i32_1 = arith.constant 0 : i32
    return %c0_i32, %c0_i32_0 : i32, i32
  }
  func.func @transform_19(%arg0: i32) -> (i32, i32) {
    %c0_i32 = arith.constant 0 : i32
    %c0_i32_0 = arith.constant 0 : i32
    %c0_i32_1 = arith.constant 0 : i32
    return %c0_i32, %c0_i32_0 : i32, i32
  }
  func.func @transform_20(%arg0: i32) -> (i32, i32) {
    %c0_i32 = arith.constant 0 : i32
    %c0_i32_0 = arith.constant 0 : i32
    %c0_i32_1 = arith.constant 0 : i32
    return %c0_i32, %c0_i32_0 : i32, i32
  }
  func.func @transform_21(%arg0: i32) -> (i32, i32) {
    %c0_i32 = arith.constant 0 : i32
    %c0_i32_0 = arith.constant 0 : i32
    %c0_i32_1 = arith.constant 0 : i32
    return %c0_i32, %c0_i32_0 : i32, i32
  }
  func.func @transform_22(%arg0: i32) -> (i32, i32) {
    %c0_i32 = arith.constant 0 : i32
    %c0_i32_0 = arith.constant 0 : i32
    %c0_i32_1 = arith.constant 0 : i32
    return %c0_i32, %c0_i32_0 : i32, i32
  }
  func.func @transform_23(%arg0: i32) -> (i32, i32, i32) {
    %c0_i32 = arith.constant 0 : i32
    %c0_i32_0 = arith.constant 0 : i32
    %c0_i32_1 = arith.constant 0 : i32
    return %arg0, %c0_i32, %c0_i32_0 : i32, i32, i32
  }
}

</mosaic_0001>

<bundles_post_ra>
// kernel: m_gcn_forward.1
= control target key start
LH: loop header
LB: loop body
LE: loop exit
PB: predicated region body
PF: predicated region fallthrough
CT: control target
= control target key end

     0   :  { %s2954_s0 = inlined_call_operand.vmem [shape: f32[2,64,64], index: 0, kind: input, shape index: {}]   ;;  %s2955_s1 = inlined_call_operand.vmem [shape: bf16[8,64], index: 1, kind: input, shape index: {}]   ;;  %s2956_s2 = inlined_call_operand.vmem [shape: bf16[32,64], index: 2, kind: input, shape index: {}]   ;;  %s2957_s3 = inlined_call_operand.vmem [shape: f32[32,1], index: 3, kind: input, shape index: {}]   ;;  %s2958_s4 = inlined_call_operand.vmem [shape: bf16[32,32], index: 4, kind: input, shape index: {}]   ;;  %s2959_s5 = inlined_call_operand.vmem [shape: f32[32,1], index: 5, kind: input, shape index: {}]   ;;  %s2960_s6 = inlined_call_operand.vmem [shape: f32[32,1], index: 6, kind: input, shape index: {}]   ;;  %s2961_s7 = inlined_call_operand.vmem [shape: f32[32,1], index: 7, kind: input, shape index: {}]   ;;  %s2962_s8 = inlined_call_operand.vmem [shape: bf16[32,32], index: 8, kind: input, shape index: {}]   ;;  %s2963_s9 = inlined_call_operand.vmem [shape: bf16[32,32], index: 9, kind: input, shape index: {}]   ;;  %s2964_s10 = inlined_call_operand.vmem [shape: f32[32,1], index: 10, kind: input, shape index: {}]   ;;  %s2965_s11 = inlined_call_operand.vmem [shape: bf16[8,8], index: 11, kind: input, shape index: {}]   ;;  %s2966_s12 = inlined_call_operand.vmem [shape: bf16[8,8], index: 12, kind: input, shape index: {}]   ;;  %s2967_s13 = inlined_call_operand.vmem [shape: bf16[32,32], index: 13, kind: input, shape index: {}]   ;;  %s2968_s14 = inlined_call_operand.vmem [shape: f32[32,1], index: 14, kind: input, shape index: {}]   ;;  %s2969_s15 = inlined_call_operand.vmem [shape: bf16[8,8], index: 15, kind: input, shape index: {}]   ;;  %s2970_s16 = inlined_call_operand.vmem [shape: bf16[8,8], index: 16, kind: input, shape index: {}]   ;;  %s2971_s17 = inlined_call_operand.vmem [shape: f32[1,8], index: 17, kind: input, shape index: {}]   ;;  %s2972_s18 = inlined_call_operand.vmem [shape: bf16[64,32], index: 18, kind: input, shape index: {}]   ;;  %s2973_s19 = inlined_call_operand.vmem [shape: f32[1,32], index: 19, kind: input, shape index: {}]   ;;  %s2974_s20 = inlined_call_operand.vmem [shape: bf16[8,32], index: 20, kind: input, shape index: {}]   ;;  %s2975_s21 = inlined_call_operand.vmem [shape: f32[8,1], index: 21, kind: input, shape index: {}]   ;;  %s2976_s22 = inlined_call_operand.vmem [shape: f32[8,8], index: 22, kind: input, shape index: {}]   ;;  %s2977_s23 = inlined_call_operand.vmem [shape: f32[2,8,2], index: 23, kind: output, shape index: {}]  }
   0x1   :  { %2989 = sst [smem:[#allocation5_spill]] %s2954_s0 }
   0x2   :  { %2990 = sst [smem:[#allocation6_spill]] %s2955_s1 }
   0x3   :  { %2991 = sst [smem:[#allocation7_spill]] %s2956_s2 }
   0x4   :  { %2992 = sst [smem:[#allocation8_spill]] %s2957_s3 }
   0x5   :  { %2993 = sst [smem:[#allocation9_spill]] %s2958_s4  ;;  %s2595_s4 = smov 0  }
   0x6   :  { %2994 = sst [smem:[#allocation10_spill]] %s2959_s5 }
   0x7   :  { %2995 = sst [smem:[#allocation11_spill]] %s2960_s6 }
   0x8   :  { %2996 = sst [smem:[#allocation12_spill]] %s2961_s7 }
   0x9 LB: > { %2997 = sst [smem:[#allocation4_spill]] %s2459_s4  ;;  %s2131_s30 = sadd.s32 4294967295, %s2459_s4   ;;  %s2459_s4 = sphi %s2595_s4, %s33_s4  }
   0xa   : > { %p2135_p0 = scmp.ge.s32.totalorder %s2459_s4, 1  ;;  %p637_p1 = scmp.lt.s32.totalorder %s2459_s4, 3 }
   0xc   : > { %p638_p2 = pnand %p2135_p0, %p637_p1 }
   0xd   : > { %p700_p3 = scmp.lt.s32.totalorder (!%p638_p2), %s2131_s30, 1  ;;  %s2998_s5 = sld [smem:[#allocation7_spill]] (!%p638_p2) }
   0xe   : > { %641 = sbr.rel (%p638_p2) target bundleno = 2494 (0x9be), region = 112  ;;  %s2999_s2 = sld [smem:[#allocation8_spill]] (!%p638_p2) }
   0xf   : > { %s3000_s4 = sld [smem:[#allocation5_spill]] (!%p638_p2)  ;;  %s2988_s27 = smov (!%p638_p2), 112  }
  0x10   : > { %s3001_s6 = sld [smem:[#allocation6_spill]] (!%p638_p2)  ;;  %s2465_s7 = smov (!%p638_p2), 120  }
  0x11   : > { %s3003_s25 = sld [smem:[#allocation10_spill]] (!%p638_p2)  ;;  %s2467_s28 = smov (!%p638_p2), 16  }
  0x12   : > { %s3005_s3 = sld [smem:[#allocation12_spill]] (!%p638_p2)  ;;  %s2471_s26 = smov (!%p638_p2), 32  }
  0x13   : > { %v2461_v0 = vmov 0.0   ;;  %vm2462_vm0 = vmmov 0   ;;  %v2391_v1 = vld [vmem:[%s2998_s5] sm:$0xff]   ;;  %s3010_s30 = smov (!%p700_p3, %s2131_s30), 1  ;;  %vm723_vm1 = vcmask 523264   ;;  %v2463_v2 = vmov 0  }
  0x14   : > { %2247 = vmatprep.subr.bf16.mxu0 %v2461_v0  ;;  %2255 = vmatprep.mubr.msk.bf16.mxu0 %vm2462_vm0, %v2461_v0  ;;  %v782_v3 = vld [vmem:[%s2999_s2 + $0x10] sm:$0xff]  ;;  %v780_v4 = vld [vmem:[%s2999_s2] sm:$0xff]  ;;  %v783_v5 = vld [vmem:[%s2999_s2 + $0x18] sm:$0xff]  ;;  %s2192_s29 = sshll.u32 %s3010_s30, 6  ;;  %vm932_vm2 = vcmask 64512   ;;  %vm970_vm3 = vcmask 261120  }
  0x15   : > { %2390 = vset.pattern.permute.xlu1 %v2463_v2  ;;  %2389 = vset.pattern.permute.xlu0 %v2463_v2  ;;  %v781_v6 = vld [vmem:[%s2999_s2 + $0x8] sm:$0xff]  ;;  %s704_s1 = scalar_lea.vmem %s3000_s4, %s2192_s29  ;;  %v1220_v53 = vld [vmem:[%s2964_s10 + $0x10] sm:$0xff]  ;;  %v1221_v54 = vld [vmem:[%s2964_s10 + $0x18] sm:$0xff]  ;;  %vm1521_vm8 = vcmask 1043456   ;;  %s2987_s2 = smov 104   ;;  %vm1464_vm10 = vcmask 130112  }
  0x16   : > { %2267 = vmatprep.mubr.msk.bf16.mxu1 %vm723_vm1, %v2391_v1  ;;  %796 = vperm.xlu1 %2390, %v782_v3   ;;  %v716_v7 = vld [vmem:[%s704_s1 + $0x30] sm:$0xff]  ;;  %v717_v8 = vld [vmem:[%s704_s1 + $0x38] sm:$0xff]  ;;  %v714_v9 = vld [vmem:[%s704_s1 + $0x20] sm:$0xff]  ;;  %s2468_s29 = smov 8   ;;  %vm1471_vm11 = vcmask 195712   ;;  %vm1478_vm12 = vcmask 261312  }
  0x17   : > { %786 = vperm.xlu0 %2389, %v780_v4   ;;  %v721_v10 = vpack.c.bf16 %v717_v8, %v716_v7  ;;  %v715_v11 = vld [vmem:[%s704_s1 + $0x28] sm:$0xff]  ;;  %v712_v12 = vld [vmem:[%s704_s1 + $0x10] sm:$0xff]  ;;  %v713_v13 = vld [vmem:[%s704_s1 + $0x18] sm:$0xff]  ;;  %s2470_s4 = smov 40   ;;  %s3006_s0 = smov 112  }
  0x18   : > { %v720_v14 = vpack.c.bf16 %v715_v11, %v714_v9  ;;  %v710_v15 = vld [vmem:[%s704_s1] sm:$0xff]  ;;  %v711_v16 = vld [vmem:[%s704_s1 + $0x8] sm:$0xff]  ;;  %v719_v17 = vpack.c.bf16 %v713_v13, %v712_v12  ;;  %s3002_s1 = sld [smem:[#allocation9_spill]]  ;;  %v958_v9 = vld [vmem:[%s3003_s25 + $0x10] sm:$0xff]  ;;  %s3007_s24 = smov 104  }
  0x19   : > { %2248 = vmatpush3.bf16.msra.mxu0 %v721_v10  ;;  %2259 = vmatprep.subr.bf16.mxu1 %v721_v10  ;;  %v718_v18 = vpack.c.bf16 %v711_v16, %v710_v15  ;;  %v722_v19 = vld [vmem:[%s3001_s6] sm:$0xf]  ;;  %v2392_v20 = vld [vmem:[%s2998_s5 + $0x8] sm:$0xff]   ;;  %s3004_s6 = sld [smem:[#allocation11_spill]] }
  0x1a   : > { %801 = vperm.xlu1 %2390, %v783_v5   ;;  %2249 = vmatprep.subr.bf16.mxu0 %v2461_v0  ;;  %v2397_v7 = vld [vmem:[%s2963_s9] sm:$0xff]   ;;  %v2398_v8 = vld [vmem:[%s2963_s9 + $0x8] sm:$0xff]  }
  0x1b   : > { %791 = vperm.xlu0 %2389, %v781_v6   ;;  %2260 = vmatpush3.bf16.msra.mxu1 %v721_v10  ;;  %v2395_v6 = vld [vmem:[%s2962_s8] sm:$0xff]  }
  0x1c   : > { %2261 = vmatprep.subr.bf16.mxu1 %v720_v14  ;;  %v956_v12 = vld [vmem:[%s3003_s25] sm:$0xff] }
  0x1d   : > { %2250 = vmatpush3.bf16.msra.mxu0 %v720_v14 }
  0x1e   : > { %2251 = vmatprep.subr.bf16.mxu0 %v2461_v0  ;;  %v2393_v55 = vld [vmem:[%s3002_s1] sm:$0xff]   ;;  %v2394_v4 = vld [vmem:[%s3002_s1 + $0x8] sm:$0xff]   ;;  %s2469_s1 = smov 24  }
  0x1f   : > { %2262 = vmatpush3.bf16.msra.mxu1 %v720_v14  ;;  %v1028_v11 = vld [vmem:[%s3004_s6 + $0x10] sm:$0xff]  ;;  %v1026_v16 = vld [vmem:[%s3004_s6] sm:$0xff] }
  0x20   : > { %2263 = vmatprep.subr.bf16.mxu1 %v719_v17  ;;  %v1036_v14 = vld [vmem:[%s3005_s3 + $0x10] sm:$0xff] }
  0x21   : > { %2252 = vmatpush3.bf16.msra.mxu0 %v719_v17 }
  0x22   : > { %2253 = vmatprep.subr.bf16.mxu0 %v2461_v0 }
  0x23   : > { %2264 = vmatpush3.bf16.msra.mxu1 %v719_v17  ;;  %v959_v17 = vld [vmem:[%s3003_s25 + $0x18] sm:$0xff] }
  0x24   : > { %2265 = vmatprep.subr.bf16.mxu1 %v718_v18 }
  0x25   : > { %2254 = vmatpush3.bf16.msra.mxu0 %v718_v18 }
  0x27   : > { %2266 = vmatpush3.bf16.msra.mxu1 %v718_v18 }
  0x28   : > { %2256 = vmatmul.mubr.msk.bf16.vlgmr.msra.gmra.mxu0 %vm723_vm1, %v722_v19 }
  0x2a   : > { %2268 = vmatmul.mubr.msk.bf16.vlgmr.msra.gmra.mxu1 %vm723_vm1, %v2392_v20  ;;  %v1034_v20 = vld [vmem:[%s3005_s3] sm:$0xff] }
  0x2b   : > { %2281 = vmatprep.mubr.msk.bf16.mxu1 %vm970_vm3, %v2393_v55 }
  0x91   : > { %v797_v37 = vpop.permute.xlu1 %796 }
  0x92   : > { %v787_v21 = vpop.permute.xlu0 %786 }
  0x95   : > { %v802_v40 = vpop.permute.xlu1 %801 }
  0x96   : > { %v792_v29 = vpop.permute.xlu0 %791 }
  0xe8   : > { %v2639_v22 = vpop.f32.mrf.mxu0 }
  0xe9   : > { %v2140_v23 = vmul.f32 -1.442695, %v2639_v22 }
  0xea   : > { %v2269_v24 = vpop.f32.mrf.mxu1  ;;  %v2257_v25 = vpop.f32.mrf.mxu0 }
  0xeb   : > { %2407 = vpow2.f32 %v2140_v23  ;;  %v863_v42 = vadd.f32 %v2269_v24, %v797_v37  ;;  %v1029_v23 = vld [vmem:[%s3004_s6 + $0x18] sm:$0xff]  ;;  %v957_v24 = vld [vmem:[%s3003_s25 + $0x8] sm:$0xff] }
  0xec   : > { %v854_v26 = vpop.f32.mrf.mxu1  ;;  %v764_v27 = vpop.f32.mrf.mxu0 }
  0xed   : > { %v855_v31 = vadd.f32 %v854_v26, %v787_v21 }
  0xee   : > { %v2270_v28 = vpop.f32.mrf.mxu1  ;;  %v2258_v30 = vpop.f32.mrf.mxu0 }
  0xef   : > { %v866_v43 = vadd.f32 %v2270_v28, %v802_v40  ;;  %v1037_v28 = vld [vmem:[%s3005_s3 + $0x18] sm:$0xff]  ;;  %v1027_v30 = vld [vmem:[%s3004_s6 + $0x8] sm:$0xff] }
  0xf0   : > { %v857_v32 = vpop.f32.mrf.mxu1 }
  0xf1   : > { %v858_v33 = vadd.f32 %v857_v32, %v792_v29  ;;  %v870_v44 = vpack.c.bf16 %v866_v43, %v863_v42 }
  0xf3   : > { %v869_v34 = vpack.c.bf16 %v858_v33, %v855_v31 }
  0xf5   : > { %2273 = vmatprep.mubr.msk.bf16.mxu0 %vm723_vm1, %v869_v34  ;;  %v1035_v34 = vld [vmem:[%s3005_s3 + $0x8] sm:$0xff] }
  0xf8   : > { %v2408_v35 = vpop.eup %2407 }
  0xf9   : > { %v773_v36 = vadd.f32 1.0, %v2408_v35 }
  0xfb   : > { %2409 = vrcp.f32 %v773_v36 }
 0x108   : > { %v2410_v38 = vpop.eup %2409 }
 0x109   : > { %v871_v39 = vpack.c.bf16 %v2410_v38, %v2410_v38 }
 0x10b   : > { %2363 = vmatprep.subr.msk.bf16.mxu0 %vm723_vm1, %v871_v39  ;;  %v879_v41 = vsel %vm723_vm1, %v871_v39, 0 }
 0x10c   : > { %2272 = vmatpush3.bf16.xpose.msra.mxu0 %v879_v41 }
 0x113   : > { %2274 = vmatmul.mubr.msk.bf16.vlgmr.msra.gmra.mxu0 %vm723_vm1, %v870_v44 }
 0x114   : > { %2289 = vmatprep.mubr.msk.bf16.mxu0 %vm970_vm3, %v2395_v6  ;;  %v2772_v6 = vld [vmem:[%s2968_s14] sm:$0xff] }
 0x1d3   : > { %v2646_v45 = vpop.f32.mrf.mxu0 }
 0x1d4   : > { %v939_v46 = vsel %vm932_vm2, %v2646_v45, 0.0 }
 0x1d5   : > { %940 = vadd.xlane.f32.xlu0 %v939_v46  ;;  %v2650_v47 = vpop.f32.mrf.mxu0 }
 0x1d6   : > { %v933_v49 = vsel %vm932_vm2, %v2650_v47, 0.0 }
 0x1d7   : > { %v2652_v48 = vpop.f32.mrf.mxu0 }
 0x1d8   : > { %v942_v50 = vsel %vm932_vm2, %v2652_v48, 0.0  ;;  %v2674_v3 = vpack.c.bf16 %v2652_v48, %v2646_v45 }
 0x1d9   : > { %934 = vadd.xlane.f32.xlu0 %v933_v49  ;;  %943 = vadd.xlane.f32.xlu1 %v942_v50  ;;  %v2658_v51 = vpop.f32.mrf.mxu0 }
 0x1da   : > { %v936_v52 = vsel %vm932_vm2, %v2658_v51, 0.0  ;;  %v2683_v5 = vpack.c.bf16 %v2658_v51, %v2650_v47 }
 0x1dc   : > { %v1275_v55 = vsel %vm932_vm2, %v2683_v5, 0 }
 0x1dd   : > { %937 = vadd.xlane.f32.xlu0 %v936_v52  ;;  %v2396_v52 = vld [vmem:[%s2962_s8 + $0x8] sm:$0xff]  }
 0x1ea   : > { %1234 = vperm.xlu1 %2390, %v1220_v53   ;;  %v1278_v53 = vsel %vm932_vm2, %v2674_v3, 0 }
 0x1ee   : > { %1239 = vperm.xlu1 %2390, %v1221_v54   ;;  %v1513_v54 = vld [vmem:[%s2969_s15] sm:$0xf] }
 0x25e   : > { %v941_v56 = vpop.xlane.xlu0 %940 }
 0x25f   : > { %v948_v59 = vmul.f32 0.125, %v941_v56  ;;  %v1270_v56 = vld [vmem:[%s2965_s11] sm:$0xf] }
 0x262   : > { %v935_v57 = vpop.xlane.xlu0 %934  ;;  %v944_v58 = vpop.xlane.xlu1 %943 }
 0x263   : > { %v949_v60 = vmul.f32 0.125, %v944_v58  ;;  %v946_v63 = vmul.f32 0.125, %v935_v57  ;;  %v1575_v57 = vsel %vm1521_vm8, %v1513_v54, 0 }
 0x265   : > { %v955_v61 = vpack.c.bf16 %v949_v60, %v948_v59 }
 0x266   : > { %v938_v62 = vpop.xlane.xlu0 %937 }
 0x267   : > { %v947_v1 = vmul.f32 0.125, %v938_v62  ;;  %2277 = vmatprep.subr.bf16.mxu1 %v955_v61  ;;  %v1219_v62 = vld [vmem:[%s2964_s10 + $0x8] sm:$0xff] }
 0x268   : > { %2278 = vmatpush3.bf16.msra.mxu1 %v955_v61 }
 0x269   : > { %v954_v2 = vpack.c.bf16 %v947_v1, %v946_v63  ;;  %v1218_v63 = vld [vmem:[%s2964_s10] sm:$0xff] }
 0x26b   : > { %2279 = vmatprep.subr.bf16.mxu1 %v954_v2 }
 0x26c   : > { %2280 = vmatpush3.bf16.msra.mxu1 %v954_v2 }
 0x26d   : > { %2293 = vmatprep.subr.bf16.mxu1 %v2674_v3 }
 0x26f   : > { %2282 = vmatmul.mubr.msk.bf16.vlgmr.msra.gmra.mxu1 %vm970_vm3, %v2394_v4 }
 0x270   : > { %2294 = vmatpush3.bf16.msra.mxu1 %v2674_v3  ;;  %2297 = vmatprep.mubr.msk.bf16.mxu1 %vm970_vm3, %v2397_v7 }
 0x271   : > { %2295 = vmatprep.subr.bf16.mxu1 %v2683_v5 }
 0x274   : > { %2296 = vmatpush3.bf16.msra.mxu1 %v2683_v5 }
 0x277   : > { %2298 = vmatmul.mubr.msk.bf16.vlgmr.msra.gmra.mxu1 %vm970_vm3, %v2398_v8  ;;  %v2779_v8 = vld [vmem:[%s2968_s14 + $0x10] sm:$0xff] }
 0x32f   : > { %v2283_v10 = vpop.f32.mrf.mxu1 }
 0x330   : > { %v1020_v13 = vadd.f32 %v2283_v10, %v958_v9  ;;  %v2784_v9 = vld [vmem:[%s2968_s14 + $0x8] sm:$0xff]  ;;  %v2791_v10 = vld [vmem:[%s2968_s14 + $0x18] sm:$0xff] }
 0x331   : > { %v1011_v15 = vpop.f32.mrf.mxu1 }
 0x332   : > { %v1032_v18 = vmul.f32 %v1028_v11, %v1020_v13  ;;  %v1012_v19 = vadd.f32 %v1011_v15, %v956_v12  ;;  %v2399_v11 = vld [vmem:[%s2967_s13] sm:$0xff]   ;;  %v1235_v12 = vpop.permute.xlu1 %1234 }
 0x333   : > { %v2284_v21 = vpop.f32.mrf.mxu1  ;;  %2313 = vmatprep.mubr.msk.bf16.mxu1 %vm970_vm3, %v2399_v11 }
 0x334   : > { %v1040_v25 = vadd.f32 %v1036_v14, %v1032_v18  ;;  %v1030_v26 = vmul.f32 %v1026_v16, %v1012_v19  ;;  %v1023_v27 = vadd.f32 %v2284_v21, %v959_v17 }
 0x335   : > { %v1014_v29 = vpop.f32.mrf.mxu1 }
 0x336   : > { %v1038_v31 = vadd.f32 %v1034_v20, %v1030_v26  ;;  %v1033_v32 = vmul.f32 %v1029_v23, %v1023_v27  ;;  %v1015_v33 = vadd.f32 %v1014_v29, %v957_v24  ;;  %v1048_v35 = vmul.f32 0.2, %v1040_v25  ;;  %v1240_v13 = vpop.permute.xlu1 %1239 }
 0x337   : > { %vm1044_vm4 = vcmp.gt.f32.partialorder %v1040_v25, 0.0  ;;  %v2299_v14 = vpop.f32.mrf.mxu1 }
 0x338   : > { %v1041_v36 = vadd.f32 %v1037_v28, %v1033_v32  ;;  %v1031_v37 = vmul.f32 %v1027_v30, %v1015_v33  ;;  %v1046_v38 = vmul.f32 0.2, %v1038_v31  ;;  %vm1042_vm6 = vcmp.gt.f32.partialorder %v1038_v31, 0.0 }
 0x339   : > { %v1052_v42 = vsel %vm1044_vm4, %v1040_v25, %v1048_v35  ;;  %v1179_v15 = vpop.f32.mrf.mxu1 }
 0x33a   : > { %v1049_v39 = vmul.f32 0.2, %v1041_v36  ;;  %v1039_v40 = vadd.f32 %v1035_v34, %v1031_v37  ;;  %vm1045_vm5 = vcmp.gt.f32.partialorder %v1041_v36, 0.0  ;;  %v1050_v46 = vsel %vm1042_vm6, %v1038_v31, %v1046_v38 }
 0x33b   : > { %v2300_v19 = vpop.f32.mrf.mxu1  ;;  %vm1496_vm6 = vcmask 392512  }
 0x33c   : > { %v1047_v41 = vmul.f32 0.2, %v1039_v40  ;;  %v1053_v43 = vsel %vm1045_vm5, %v1041_v36, %v1049_v39  ;;  %vm1043_vm7 = vcmp.gt.f32.partialorder %v1039_v40, 0.0  ;;  %vm1489_vm5 = vcmask 326912  }
 0x33d   : > { %v1059_v44 = vpack.c.bf16 %v1053_v43, %v1052_v42  ;;  %v1182_v26 = vpop.f32.mrf.mxu1 }
 0x33e   : > { %v1051_v49 = vsel %vm1043_vm7, %v1039_v40, %v1047_v41  ;;  %vm1503_vm7 = vcmask 458112  }
 0x33f   : > { %2285 = vmatprep.subr.bf16.mxu0 %v1059_v44  ;;  %v1058_v50 = vpack.c.bf16 %v1051_v49, %v1050_v46 }
 0x340   : > { %2286 = vmatpush3.bf16.msra.mxu0 %v1059_v44 }
 0x341   : > { %2287 = vmatprep.subr.bf16.mxu0 %v1058_v50 }
 0x344   : > { %2288 = vmatpush3.bf16.msra.mxu0 %v1058_v50 }
 0x345   : > { %2301 = vmatprep.subr.bf16.mxu0 %v2461_v0 }
 0x347   : > { %2290 = vmatmul.mubr.msk.bf16.vlgmr.msra.gmra.mxu0 %vm970_vm3, %v2396_v52 }
 0x348   : > { %2302 = vmatpush3.bf16.xpose.msra.mxu0 %v1278_v53  ;;  %2305 = vmatprep.mubr.msk.bf16.mxu0 %vm2462_vm0, %v2461_v0 }
 0x349   : > { %2303 = vmatprep.subr.bf16.mxu0 %v2461_v0 }
 0x350   : > { %2304 = vmatpush3.bf16.xpose.msra.mxu0 %v1275_v55 }
 0x351   : > { %2365 = vmatprep.subr.msk.bf16.mxu0 %vm1521_vm8, %v1513_v54 }
 0x357   : > { %2306 = vmatmul.mubr.msk.bf16.vlgmr.msra.gmra.mxu0 %vm932_vm2, %v1270_v56 }
 0x358   : > { %2325 = vmatprep.mubr.msk.bf16.mxu0 %vm932_vm2, %v2683_v5  ;;  %2324 = vmatpush3.bf16.msra.mxu0 %v1575_v57 }
 0x35f   : > { %2326 = vmatmul.mubr.msk.bf16.vlgmr.msra.gmra.mxu0 %vm932_vm2, %v2674_v3 }
 0x407   : > { %v2291_v58 = vpop.f32.mrf.mxu0 }
 0x408   : > { %1206 = vperm.xlu1 %2390, %v2291_v58  }
 0x409   : > { %v1110_v59 = vpop.f32.mrf.mxu0 }
 0x40b   : > { %v2292_v60 = vpop.f32.mrf.mxu0 }
 0x40c   : > { %1211 = vperm.xlu0 %2389, %v2292_v60  }
 0x40d   : > { %v1113_v61 = vpop.f32.mrf.mxu0 }
 0x40e   : > { %1201 = vperm.xlu1 %2390, %v1113_v61  }
 0x410   : > { %1196 = vperm.xlu0 %2389, %v1110_v59  }
 0x412   : > { %1229 = vperm.xlu1 %2390, %v1219_v62   ;;  %v1514_v62 = vld [vmem:[%s2970_s16] sm:$0xf] }
 0x414   : > { %1224 = vperm.xlu0 %2389, %v1218_v63   ;;  %v2400_v63 = vld [vmem:[%s2967_s13 + $0x8] sm:$0xff]  }
 0x417   : > { %v1314_v1 = vpop.f32.mrf.mxu0 }
 0x418   : > { %vm1320_vm9 = vcmp.gt.f32.partialorder %v1314_v1, 0.0  ;;  %v1321_v2 = vmul.f32 0.2, %v1314_v1 }
 0x419   : > { %v2307_v3 = vpop.f32.mrf.mxu0 }
 0x41a   : > { %v1322_v4 = vsel %vm1320_vm9, %v1314_v1, %v1321_v2  ;;  %v1523_v2 = vsel %vm1521_vm8, %v1514_v62, 0  ;;  %vm1510_vm9 = vcmask 523712  }
 0x41b   : > { %1437 = vrot.lane.b32.xlu1 %v1322_v4, %s2988_s27  ;;  %1430 = vst [vmem:[#allocation2] ss:$4 sm:$0xff] %v1322_v4  ;;  %1432 = vrot.lane.b32.xlu0 %v1322_v4, %s2465_s7  ;;  %v1317_v5 = vpop.f32.mrf.mxu0  ;;  %s2473_s27 = smov 48  }
 0x41d   : > { %v2308_v7 = vpop.f32.mrf.mxu0 }
 0x41f   : > { %1335 = vperm.xlu1 %2390, %v2772_v6   ;;  %1442 = vrot.lane.b32.xlu0 %v1322_v4, %s2987_s2  ;;  %s2472_s2 = smov 56  }
 0x423   : > { %1345 = vperm.xlu1 %2390, %v2779_v8   ;;  %1340 = vperm.xlu0 %2389, %v2784_v9  }
 0x427   : > { %1350 = vperm.xlu0 %2389, %v2791_v10  }
 0x483   : > { %v1207_v16 = vpop.permute.xlu1 %1206 }
 0x484   : > { %v1216_v17 = vadd.f32 %v2299_v14, %v1207_v16 }
 0x486   : > { %v1244_v18 = vadd.f32 %v1235_v12, %v1216_v17 }
 0x487   : > { %v1212_v20 = vpop.permute.xlu0 %1211 }
 0x488   : > { %v2161_v21 = vmul.f32 -1.442695, %v1244_v18  ;;  %v1217_v23 = vadd.f32 %v2300_v19, %v1212_v20 }
 0x489   : > { %v1202_v24 = vpop.permute.xlu1 %1201 }
 0x48a   : > { %2411 = vpow2.f32 %v2161_v21  ;;  %v1245_v25 = vadd.f32 %v1240_v13, %v1217_v23  ;;  %v1215_v29 = vadd.f32 %v1202_v24, %v1182_v26  ;;  %v2327_v21 = vpop.f32.mrf.mxu0 }
 0x48b   : > { %v1197_v27 = vpop.permute.xlu0 %1196 }
 0x48c   : > { %v2162_v28 = vmul.f32 -1.442695, %v1245_v25  ;;  %v1214_v31 = vadd.f32 %v1197_v27, %v1179_v15 }
 0x48d   : > { %v1230_v30 = vpop.permute.xlu1 %1229 }
 0x48e   : > { %2413 = vpow2.f32 %v2162_v28  ;;  %v1243_v32 = vadd.f32 %v1230_v30, %v1215_v29  ;;  %v1611_v30 = vpop.f32.mrf.mxu0 }
 0x48f   : > { %v1225_v33 = vpop.permute.xlu0 %1224 }
 0x490   : > { %v2160_v34 = vmul.f32 -1.442695, %v1243_v32  ;;  %v1242_v35 = vadd.f32 %v1225_v33, %v1214_v31  ;;  %v2401_v32 = vld [vmem:[%s2972_s18 + $0x18] sm:$0xff]  }
 0x491   : > { %v1438_v36 = vpop.permute.xlu1 %1437 }
 0x492   : > { %2415 = vpow2.f32 %v2160_v34  ;;  %v2159_v37 = vmul.f32 -1.442695, %v1242_v35  ;;  %1441 = vst [vmem:[#allocation2 + $0x2] ss:$4 sm:$0xff] %v1438_v36 }
 0x493   : > { %v1433_v38 = vpop.permute.xlu0 %1432 }
 0x494   : > { %2417 = vpow2.f32 %v2159_v37  ;;  %1436 = vst [vmem:[#allocation2 + $0x1] ss:$4 sm:$0xff] %v1433_v38  ;;  %v2172_v37 = vld [vmem:[%s2971_s17] ss:$0 sm:$0xff] }
 0x497   : > { %v2412_v39 = vpop.eup %2411  ;;  %v1443_v40 = vpop.permute.xlu0 %1442 }
 0x498   : > { %v1260_v41 = vadd.f32 1.0, %v2412_v39  ;;  %1446 = vst [vmem:[#allocation2 + $0x3] ss:$4 sm:$0xff] %v1443_v40 }
 0x49a   : > { %2419 = vrcp.f32 %v1260_v41  ;;  %v1336_v12 = vpop.permute.xlu1 %1335  ;;  %v2328_v41 = vpop.f32.mrf.mxu0 }
 0x49b   : > { %v2414_v42 = vpop.eup %2413 }
 0x49c   : > { %v1261_v43 = vadd.f32 1.0, %v2414_v42 }
 0x49e   : > { %2421 = vrcp.f32 %v1261_v43  ;;  %v1341_v13 = vpop.permute.xlu0 %1340  ;;  %v1346_v14 = vpop.permute.xlu1 %1345  ;;  %v2402_v43 = vld [vmem:[%s2972_s18 + $0x10] sm:$0xff]  }
 0x49f   : > { %v2416_v44 = vpop.eup %2415  ;;  %v2798_v52 = vld [vmem:[#allocation2 + $0x10] sm:$0xff]  ;;  %v2804_v54 = vld [vmem:[#allocation2 + $0x18] sm:$0xff]  ;;  %v2812_v57 = vld [vmem:[#allocation2 + $0x8] sm:$0xff] }
 0x4a0   : > { %v1259_v46 = vadd.f32 1.0, %v2416_v44  ;;  %v2816_v59 = vld [vmem:[#allocation2] sm:$0xff]  ;;  %v1452_v7 = vpack.c.bf16 %v2804_v54, %v2798_v52 }
 0x4a1   : > { %v2418_v49 = vpop.eup %2417  ;;  %v1451_v1 = vpack.c.bf16 %v2812_v57, %v2816_v59 }
 0x4a2   : > { %2423 = vrcp.f32 %v1259_v46  ;;  %v1258_v50 = vadd.f32 1.0, %v2418_v49  ;;  %v1351_v15 = vpop.permute.xlu0 %1350 }
 0x4a4   : > { %2425 = vrcp.f32 %v1258_v50 }
 0x4a7   : > { %v2800_v53 = vpop.eup %2419 }
 0x4a8   : > { %1455 = vst.msk [vmem:[#allocation2 + $0x10] sm:$0xff] %vm932_vm2, %v2800_v53 }
 0x4ab   : > { %v2806_v55 = vpop.eup %2421 }
 0x4ac   : > { %1456 = vst.msk [vmem:[#allocation2 + $0x18] sm:$0xff] %vm932_vm2, %v2806_v55  ;;  %v1328_v56 = vpack.c.bf16 %v2806_v55, %v2800_v53 }
 0x4ae   : > { %2309 = vmatprep.subr.bf16.mxu1 %v1328_v56 }
 0x4af   : > { %v2814_v58 = vpop.eup %2423  ;;  %2310 = vmatpush3.bf16.msra.mxu1 %v1328_v56  ;;  %v2403_v56 = vld [vmem:[%s2972_s18 + $0x8] sm:$0xff]  }
 0x4b0   : > { %1454 = vst.msk [vmem:[#allocation2 + $0x8] sm:$0xff] %vm932_vm2, %v2814_v58 }
 0x4b1   : > { %v2820_v60 = vpop.eup %2425 }
 0x4b2   : > { %1453 = vst.msk [vmem:[#allocation2] sm:$0xff] %vm932_vm2, %v2820_v60  ;;  %v1327_v61 = vpack.c.bf16 %v2814_v58, %v2820_v60 }
 0x4b4   : > { %2311 = vmatprep.subr.bf16.mxu1 %v1327_v61 }
 0x4b5   : > { %2312 = vmatpush3.bf16.msra.mxu1 %v1327_v61 }
 0x4b6   : > { %2364 = vmatprep.subr.msk.bf16.mxu1 %vm1521_vm8, %v1514_v62 }
 0x4b8   : > { %2314 = vmatmul.mubr.msk.bf16.vlgmr.msra.gmra.mxu1 %vm970_vm3, %v2400_v63  ;;  %v1614_v63 = vpop.f32.mrf.mxu0 }
 0x4b9   : > { %v1466_v3 = vld [vmem:[#allocation2 + $0x2] ss:$4 sm:$0xff]  ;;  %v1459_v4 = vld [vmem:[#allocation2 + $0x1] ss:$4 sm:$0xff]  ;;  %2318 = vmatpush3.bf16.msra.mxu1 %v1523_v2  ;;  %2319 = vmatprep.mubr.msk.bf16.mxu1 %vm932_vm2, %v1451_v1  ;;  %v1457_v5 = vld [vmem:[#allocation2] ss:$4 sm:$0xff] }
 0x4ba   : > { %1468 = vrot.lane.b32.xlu0 %v1466_v3, %s2467_s28  ;;  %1461 = vrot.lane.b32.xlu1 %v1459_v4, %s2468_s29  ;;  %1458 = vst.msk [vmem:[#allocation3] sm:$0xff] %vm932_vm2, %v1457_v5  ;;  %v1473_v11 = vld [vmem:[#allocation2 + $0x3] ss:$4 sm:$0xff] }
 0x4bb   : > { %2329 = vmatprep.subr.bf16.mxu1 %v2461_v0  ;;  %v2404_v5 = vld [vmem:[%s2972_s18] sm:$0xff]  }
 0x4be   : > { %1475 = vrot.lane.b32.xlu1 %v1473_v11, %s2469_s1 }
 0x4c0   : > { %2320 = vmatmul.mubr.msk.bf16.vlgmr.msra.gmra.mxu1 %vm932_vm2, %v1452_v7 }
 0x4c1   : > { %2337 = vmatprep.mubr.msk.bf16.mxu1 %vm2462_vm0, %v2461_v0  ;;  %2330 = vmatpush3.bf16.msra.mxu1 %v2401_v32 }
 0x4c2   : > { %2331 = vmatprep.subr.bf16.mxu1 %v2461_v0 }
 0x4c5   : > { %2332 = vmatpush3.bf16.msra.mxu1 %v2402_v43  ;;  %v1783_v43 = vld [vmem:[%s2966_s12] sm:$0xf] }
 0x4c6   : > { %2333 = vmatprep.subr.bf16.mxu1 %v2461_v0  ;;  %2366 = vmatprep.subr.msk.bf16.mxu0 %vm1521_vm8, %v1783_v43 }
 0x4c9   : > { %2334 = vmatpush3.bf16.msra.mxu1 %v2403_v56  ;;  %v2020_v56 = vld [vmem:[%s2975_s21] sm:$0xff] }
 0x4ca   : > { %2335 = vmatprep.subr.bf16.mxu1 %v2461_v0 }
 0x4cd   : > { %2336 = vmatpush3.bf16.msra.mxu1 %v2404_v5 }
 0x4ce   : > { %2355 = vmatprep.subr.bf16.mxu1 %v2461_v0 }
 0x52c   : > { %v1469_v16 = vpop.permute.xlu0 %1468  ;;  %v1462_v17 = vpop.permute.xlu1 %1461 }
 0x52d   : > { %1465 = vst.msk [vmem:[#allocation3] sm:$0xff] %vm1464_vm10, %v1462_v17 }
 0x52e   : > { %1472 = vst.msk [vmem:[#allocation3] sm:$0xff] %vm1471_vm11, %v1469_v16 }
 0x530   : > { %v1476_v18 = vpop.permute.xlu1 %1475 }
 0x531   : > { %1479 = vst.msk [vmem:[#allocation3] sm:$0xff] %vm1478_vm12, %v1476_v18 }
 0x578   : > { %v2315_v19 = vpop.f32.mrf.mxu1 }
 0x579   : > { %v1412_v20 = vadd.f32 %v2315_v19, %v1346_v14 }
 0x57a   : > { %v1403_v23 = vpop.f32.mrf.mxu1 }
 0x57b   : > { %vm1420_vm13 = vcmp.gt.f32.partialorder %v1412_v20, 0.0  ;;  %v1424_v24 = vmul.f32 0.2, %v1412_v20  ;;  %v1404_v25 = vadd.f32 %v1403_v23, %v1336_v12 }
 0x57c   : > { %v2316_v26 = vpop.f32.mrf.mxu1 }
 0x57d   : > { %v1428_v27 = vsel %vm1420_vm13, %v1412_v20, %v1424_v24  ;;  %vm1418_vm14 = vcmp.gt.f32.partialorder %v1404_v25, 0.0  ;;  %v1422_v28 = vmul.f32 0.2, %v1404_v25  ;;  %v1415_v29 = vadd.f32 %v2316_v26, %v1351_v15 }
 0x57e   : > { %1482 = vst.msk [vmem:[#allocation2 + $0x10] sm:$0xff] %vm932_vm2, %v1428_v27  ;;  %v1406_v31 = vpop.f32.mrf.mxu1 }
 0x57f   : > { %v1426_v33 = vsel %vm1418_vm14, %v1404_v25, %v1422_v28  ;;  %vm1421_vm15 = vcmp.gt.f32.partialorder %v1415_v29, 0.0  ;;  %v1425_v34 = vmul.f32 0.2, %v1415_v29  ;;  %v1407_v35 = vadd.f32 %v1406_v31, %v1341_v13 }
 0x580   : > { %1480 = vst.msk [vmem:[#allocation2] sm:$0xff] %vm932_vm2, %v1426_v33  ;;  %v2321_v36 = vpop.f32.mrf.mxu1 }
 0x581   : > { %v1429_v38 = vsel %vm1421_vm15, %v1415_v29, %v1425_v34  ;;  %vm1419_vm4 = vcmp.gt.f32.partialorder %v1407_v35, 0.0  ;;  %v1423_v39 = vmul.f32 0.2, %v1407_v35  ;;  %v1620_v40 = vadd.f32 %v2327_v21, %v2321_v36 }
 0x582   : > { %1483 = vst.msk [vmem:[#allocation2 + $0x18] sm:$0xff] %vm932_vm2, %v1429_v38  ;;  %v1559_v42 = vpop.f32.mrf.mxu1  ;;  %vm2074_vm15 = vcmask 7168  }
 0x583   : > { %v1427_v44 = vsel %vm1419_vm4, %v1407_v35, %v1423_v39  ;;  %v1635_v46 = vadd.f32 %v2172_v37, %v1620_v40  ;;  %v1612_v49 = vadd.f32 %v1611_v30, %v1559_v42 }
 0x584   : > { %1481 = vst.msk [vmem:[#allocation2 + $0x8] sm:$0xff] %vm932_vm2, %v1427_v44  ;;  %v2322_v50 = vpop.f32.mrf.mxu1  ;;  %v1807_v44 = vsel %vm1521_vm8, %v1783_v43, 0 }
 0x585   : > { %2427 = vtanh.f32 %v1635_v46  ;;  %v1633_v61 = vadd.f32 %v2172_v37, %v1612_v49  ;;  %v1623_v62 = vadd.f32 %v2328_v41, %v2322_v50  ;;  %2342 = vmatpush3.bf16.msra.mxu0 %v1807_v44 }
 0x586   : > { %v1562_v1 = vpop.f32.mrf.mxu1 }
 0x587   : > { %2429 = vtanh.f32 %v1633_v61  ;;  %v1636_v2 = vadd.f32 %v2172_v37, %v1623_v62  ;;  %v1615_v3 = vadd.f32 %v1614_v63, %v1562_v1  ;;  %v767_v63 = vsel %vm723_vm1, %v2639_v22, -inf  ;;  %v2405_v22 = vld [vmem:[%s2967_s13] sm:$0xff]  }
 0x589   : > { %2431 = vtanh.f32 %v1636_v2  ;;  %v1634_v4 = vadd.f32 %v2172_v37, %v1615_v3  ;;  %v2173_v37 = vld [vmem:[%s2973_s19] ss:$0 sm:$0xff] }
 0x58b   : > { %2433 = vtanh.f32 %v1634_v4  ;;  %v1491_v7 = vld [vmem:[#allocation2 + $0x1] ss:$4 sm:$0xff]  ;;  %v1484_v11 = vld [vmem:[#allocation2] ss:$4 sm:$0xff]  ;;  %v1505_v12 = vld [vmem:[#allocation2 + $0x3] ss:$4 sm:$0xff] }
 0x58c   : > { %1493 = vrot.lane.b32.xlu1 %v1491_v7, %s2470_s4  ;;  %1486 = vrot.lane.b32.xlu0 %v1484_v11, %s2471_s26  ;;  %v1498_v13 = vld [vmem:[#allocation2 + $0x2] ss:$4 sm:$0xff]  ;;  %s2138_s4 = sshll.u32 %s3010_s30, 3 }
 0x590   : > { %1507 = vrot.lane.b32.xlu1 %v1505_v12, %s2472_s2  ;;  %1500 = vrot.lane.b32.xlu0 %v1498_v13, %s2473_s27  ;;  %s2474_s27 = smov 96   ;;  %v2406_v12 = vld [vmem:[%s2967_s13 + $0x8] sm:$0xff]  }
 0x592   : > { %v2428_v14 = vpop.eup %2427 }
 0x593   : > { %v1727_v15 = vmul.f32 %v2428_v14, %v2798_v52 }
 0x594   : > { %v2430_v16 = vpop.eup %2429 }
 0x595   : > { %v1731_v17 = vadd.f32 %v2646_v45, %v1727_v15  ;;  %v1725_v18 = vmul.f32 %v2430_v16, %v2816_v59 }
 0x596   : > { %v2432_v19 = vpop.eup %2431 }
 0x597   : > { %v1729_v20 = vadd.f32 %v1725_v18, %v2650_v47  ;;  %v1728_v21 = vmul.f32 %v2432_v19, %v2804_v54  ;;  %1741 = vst.msk [vmem:[#allocation2 + $0x10] sm:$0xff] %vm932_vm2, %v1731_v17 }
 0x598   : > { %v2434_v23 = vpop.eup %2433 }
 0x599   : > { %v1732_v24 = vadd.f32 %v2652_v48, %v1728_v21  ;;  %v1726_v25 = vmul.f32 %v2434_v23, %v2812_v57  ;;  %1739 = vst.msk [vmem:[#allocation2] sm:$0xff] %vm932_vm2, %v1729_v20 }
 0x59b   : > { %v1730_v52 = vadd.f32 %v1726_v25, %v2658_v51  ;;  %1742 = vst.msk [vmem:[#allocation2 + $0x18] sm:$0xff] %vm932_vm2, %v1732_v24 }
 0x59d   : > { %1740 = vst.msk [vmem:[#allocation2 + $0x8] sm:$0xff] %vm932_vm2, %v1730_v52 }
 0x5a4   : > { %v1745_v59 = vld [vmem:[#allocation2 + $0x1] ss:$4 sm:$0xff]  ;;  %v1757_v26 = vld [vmem:[#allocation2 + $0x3] ss:$4 sm:$0xff]  ;;  %v1743_v30 = vld [vmem:[#allocation2] ss:$4 sm:$0xff] }
 0x5a5   : > { %1747 = vrot.lane.b32.xlu1 %v1745_v59, %s2468_s29  ;;  %v1751_v32 = vld [vmem:[#allocation2 + $0x2] ss:$4 sm:$0xff]  ;;  %v1979_v59 = vadd.f32 %v2800_v53, %v2646_v45  ;;  %v1980_v53 = vadd.f32 %v2806_v55, %v2652_v48 }
 0x5a9   : > { %1759 = vrot.lane.b32.xlu1 %v1757_v26, %s2469_s1 }
 0x5fe   : > { %v1494_v54 = vpop.permute.xlu1 %1493  ;;  %v1487_v27 = vpop.permute.xlu0 %1486 }
 0x5ff   : > { %1490 = vst.msk [vmem:[#allocation3] sm:$0xff] %vm1489_vm5, %v1487_v27 }
 0x600   : > { %1497 = vst.msk [vmem:[#allocation3] sm:$0xff] %vm1496_vm6, %v1494_v54 }
 0x602   : > { %v1508_v57 = vpop.permute.xlu1 %1507  ;;  %v1501_v28 = vpop.permute.xlu0 %1500 }
 0x603   : > { %1504 = vst.msk [vmem:[#allocation3] sm:$0xff] %vm1503_vm7, %v1501_v28 }
 0x604   : > { %1511 = vst.msk [vmem:[#allocation3] sm:$0xff] %vm1510_vm9, %v1508_v57 }
 0x60b   : > { %v1512_v29 = vld [vmem:[#allocation3] sm:$0xff] }
 0x60c   : > { %1734 = vrot.lane.b32.xlu0 %v1512_v29, %s2474_s27  ;;  %v1641_v31 = vpack.c.bf16 %v1512_v29, %v1512_v29  ;;  %1744 = vst.msk [vmem:[#allocation3] sm:$0xff] %vm932_vm2, %v1743_v30  ;;  %v1977_v30 = vadd.f32 %v2820_v60, %v2650_v47  ;;  %v1978_v60 = vadd.f32 %v2814_v58, %v2658_v51  ;;  %s708_s27 = scalar_lea.vmem %s2977_s23, %s2138_s4 }
 0x60e   : > { %2338 = vmatmul.mubr.msk.bf16.vlgmr.msra.gmra.mxu1 %vm723_vm1, %v1641_v31 }
 0x60f   : > { %2359 = vmatprep.mubr.msk.bf16.mxu1 %vm2462_vm0, %v2461_v0 }
 0x610   : > { %1753 = vrot.lane.b32.xlu0 %v1751_v32, %s2467_s28 }
 0x617   : > { %v1748_v33 = vpop.permute.xlu1 %1747 }
 0x618   : > { %1750 = vst.msk [vmem:[#allocation3] sm:$0xff] %vm1464_vm10, %v1748_v33 }
 0x61b   : > { %v1760_v36 = vpop.permute.xlu1 %1759 }
 0x67e   : > { %v1735_v34 = vpop.permute.xlu0 %1734 }
 0x682   : > { %v1754_v35 = vpop.permute.xlu0 %1753 }
 0x683   : > { %1756 = vst.msk [vmem:[#allocation3] sm:$0xff] %vm1471_vm11, %v1754_v35 }
 0x684   : > { %1762 = vst.msk [vmem:[#allocation3] sm:$0xff] %vm1478_vm12, %v1760_v36 }
 0x68b   : > { %v1763_v61 = vld [vmem:[#allocation3] sm:$0xff] }
 0x68c   : > { %v1782_v62 = vpack.c.bf16 %v1763_v61, %v1763_v61 }
 0x6ce   : > { %v1718_v38 = vpop.f32.mrf.mxu1 }
 0x6cf   : > { %v1719_v39 = vadd.f32 %v2173_v37, %v1718_v38 }
 0x6d0   : > { %v2339_v40 = vpop.f32.mrf.mxu1 }
 0x6d1   : > { %2435 = vtanh.f32 %v1719_v39 }
 0x6d2   : > { %v1721_v41 = vpop.f32.mrf.mxu1 }
 0x6d4   : > { %v2340_v42 = vpop.f32.mrf.mxu1 }
 0x6de   : > { %v2436_v46 = vpop.eup %2435 }
 0x6df   : > { %v1737_v49 = vmul.f32 %v2436_v46, %v1735_v34 }
 0x6e1   : > { %v1738_v50 = vadd.f32 %v1737_v49, %v1512_v29 }
 0x6e3   : > { %1766 = vrot.lane.b32.xlu0 %v1738_v50, %s2465_s7  ;;  %1764 = vst [vmem:[#allocation2] ss:$4 sm:$0xff] %v1738_v50  ;;  %1770 = vrot.lane.b32.xlu1 %v1738_v50, %s3006_s0 }
 0x6e7   : > { %1774 = vrot.lane.b32.xlu0 %v1738_v50, %s3007_s24 }
 0x6eb   : > { %1892 = vperm.xlu0 %2389, %v2779_v8  }
 0x6ef   : > { %1897 = vperm.xlu0 %2389, %v2791_v10  }
 0x6f3   : > { %1882 = vperm.xlu0 %2389, %v2772_v6  }
 0x6f7   : > { %1887 = vperm.xlu0 %2389, %v2784_v9  }
 0x6fb   : > { %2023 = vperm.xlu0 %2389, %v2020_v56  }
 0x706   : > { %1784 = vxpose.xlu1.c.b16.start.end [1/1] (short) (narrow) %v1782_v62, 32 }
 0x71a   : > { %768 = vmax.xlane.f32.xlu0 %v767_v63 }
 0x755   : > { %v1767_v1 = vpop.permute.xlu0 %1766  ;;  %v1771_v8 = vpop.permute.xlu1 %1770 }
 0x756   : > { %1769 = vst [vmem:[#allocation2 + $0x1] ss:$4 sm:$0xff] %v1767_v1  ;;  %1773 = vst [vmem:[#allocation2 + $0x2] ss:$4 sm:$0xff] %v1771_v8 }
 0x759   : > { %v1775_v10 = vpop.permute.xlu0 %1774 }
 0x75a   : > { %1777 = vst [vmem:[#allocation2 + $0x3] ss:$4 sm:$0xff] %v1775_v10 }
 0x761   : > { %v1780_v6 = vld [vmem:[#allocation2 + $0x10] sm:$0xff]  ;;  %v1781_v9 = vld [vmem:[#allocation2 + $0x18] sm:$0xff]  ;;  %v1778_v4 = vld [vmem:[#allocation2] sm:$0xff] }
 0x762   : > { %v1875_v2 = vpack.c.bf16 %v1781_v9, %v1780_v6  ;;  %v1779_v5 = vld [vmem:[#allocation2 + $0x8] sm:$0xff] }
 0x763   : > { %v1874_v11 = vpack.c.bf16 %v1779_v5, %v1778_v4 }
 0x764   : > { %2347 = vmatprep.subr.bf16.mxu0 %v1875_v2 }
 0x766   : > { %v1893_v13 = vpop.permute.xlu0 %1892 }
 0x768   : > { %v1792_v3 = vpop.trf.xlu1 }
 0x769   : > { %2343 = vmatprep.mubr.msk.bf16.mxu0 %vm932_vm2, %v1792_v3 }
 0x76a   : > { %v1898_v15 = vpop.permute.xlu0 %1897 }
 0x76c   : > { %v1793_v7 = vpop.trf.xlu1 }
 0x76d   : > { %2344 = vmatmul.mubr.msk.bf16.vlgmr.msra.gmra.mxu0 %vm932_vm2, %v1793_v7 }
 0x76e   : > { %2348 = vmatpush3.bf16.msra.mxu0 %v1875_v2  ;;  %2351 = vmatprep.mubr.msk.bf16.mxu0 %vm970_vm3, %v2405_v22  ;;  %v1883_v21 = vpop.permute.xlu0 %1882 }
 0x76f   : > { %2349 = vmatprep.subr.bf16.mxu0 %v1874_v11 }
 0x772   : > { %2350 = vmatpush3.bf16.msra.mxu0 %v1874_v11  ;;  %v1888_v36 = vpop.permute.xlu0 %1887 }
 0x775   : > { %2352 = vmatmul.mubr.msk.bf16.vlgmr.msra.gmra.mxu0 %vm970_vm3, %v2406_v12 }
 0x82d   : > { %v2345_v14 = vpop.f32.mrf.mxu0 }
 0x82e   : > { %v1864_v18 = vmul.f32 0.2, %v2345_v14  ;;  %vm1860_vm0 = vcmp.gt.f32.partialorder %v2345_v14, 0.0 }
 0x82f   : > { %v1843_v16 = vpop.f32.mrf.mxu0 }
 0x830   : > { %v1862_v19 = vmul.f32 0.2, %v1843_v16  ;;  %vm1858_vm1 = vcmp.gt.f32.partialorder %v1843_v16, 0.0  ;;  %v1868_v25 = vsel %vm1860_vm0, %v2345_v14, %v1864_v18 }
 0x831   : > { %v2346_v17 = vpop.f32.mrf.mxu0  ;;  %v1983_v29 = vmul.f32 %v1979_v59, %v1868_v25 }
 0x832   : > { %v1865_v23 = vmul.f32 0.2, %v2346_v17  ;;  %vm1861_vm8 = vcmp.gt.f32.partialorder %v2346_v17, 0.0  ;;  %v1866_v26 = vsel %vm1858_vm1, %v1843_v16, %v1862_v19 }
 0x833   : > { %v1846_v20 = vpop.f32.mrf.mxu0  ;;  %v1981_v37 = vmul.f32 %v1977_v30, %v1866_v26 }
 0x834   : > { %v1863_v54 = vmul.f32 0.2, %v1846_v20  ;;  %vm1859_vm10 = vcmp.gt.f32.partialorder %v1846_v20, 0.0  ;;  %v1869_v31 = vsel %vm1861_vm8, %v2346_v17, %v1865_v23 }
 0x835   : > { %v2353_v24 = vpop.f32.mrf.mxu0  ;;  %v1984_v44 = vmul.f32 %v1980_v53, %v1869_v31 }
 0x836   : > { %v1959_v52 = vadd.f32 %v2353_v24, %v1893_v13  ;;  %v1867_v38 = vsel %vm1859_vm10, %v1846_v20, %v1863_v54  ;;  %v2017_v20 = vld [vmem:[%s2974_s20] sm:$0xf] }
 0x837   : > { %v1950_v27 = vpop.f32.mrf.mxu0  ;;  %v1982_v61 = vmul.f32 %v1978_v60, %v1867_v38 }
 0x838   : > { %vm1967_vm11 = vcmp.gt.f32.partialorder %v1959_v52, 0.0  ;;  %v1971_v57 = vmul.f32 0.2, %v1959_v52  ;;  %v1951_v28 = vadd.f32 %v1950_v27, %v1883_v21 }
 0x839   : > { %v2354_v32 = vpop.f32.mrf.mxu0 }
 0x83a   : > { %v1975_v33 = vsel %vm1967_vm11, %v1959_v52, %v1971_v57  ;;  %vm1965_vm12 = vcmp.gt.f32.partialorder %v1951_v28, 0.0  ;;  %v1969_v34 = vmul.f32 0.2, %v1951_v28  ;;  %v1962_v35 = vadd.f32 %v2354_v32, %v1898_v15 }
 0x83b   : > { %v1987_v39 = vmul.f32 %v1983_v29, %v1975_v33  ;;  %v1953_v40 = vpop.f32.mrf.mxu0 }
 0x83c   : > { %v1973_v41 = vsel %vm1965_vm12, %v1951_v28, %v1969_v34  ;;  %vm1968_vm13 = vcmp.gt.f32.partialorder %v1962_v35, 0.0  ;;  %v1972_v42 = vmul.f32 0.2, %v1962_v35  ;;  %v1954_v43 = vadd.f32 %v1953_v40, %v1888_v36 }
 0x83d   : > { %v2187_v46 = vmul.f32 -1.442695, %v1987_v39  ;;  %v1985_v49 = vmul.f32 %v1981_v37, %v1973_v41 }
 0x83e   : > { %v1976_v50 = vsel %vm1968_vm13, %v1962_v35, %v1972_v42  ;;  %vm1966_vm14 = vcmp.gt.f32.partialorder %v1954_v43, 0.0  ;;  %v1970_v56 = vmul.f32 0.2, %v1954_v43 }
 0x83f   : > { %2437 = vpow2.f32 %v2187_v46  ;;  %v2185_v62 = vmul.f32 -1.442695, %v1985_v49  ;;  %v1988_v55 = vmul.f32 %v1984_v44, %v1976_v50 }
 0x840   : > { %v1974_v63 = vsel %vm1966_vm14, %v1954_v43, %v1970_v56 }
 0x841   : > { %2439 = vpow2.f32 %v2185_v62  ;;  %v2188_v1 = vmul.f32 -1.442695, %v1988_v55  ;;  %v1986_v8 = vmul.f32 %v1982_v61, %v1974_v63 }
 0x843   : > { %2441 = vpow2.f32 %v2188_v1  ;;  %v2186_v10 = vmul.f32 -1.442695, %v1986_v8 }
 0x845   : > { %2443 = vpow2.f32 %v2186_v10 }
 0x84c   : > { %v2438_v6 = vpop.eup %2437 }
 0x84d   : > { %v2003_v9 = vadd.f32 1.0, %v2438_v6 }
 0x84e   : > { %v2440_v2 = vpop.eup %2439 }
 0x84f   : > { %v2001_v58 = vadd.f32 1.0, %v2440_v2  ;;  %2445 = vrcp.f32 %v2003_v9 }
 0x850   : > { %v2442_v3 = vpop.eup %2441 }
 0x851   : > { %v2004_v4 = vadd.f32 1.0, %v2442_v3  ;;  %2447 = vrcp.f32 %v2001_v58 }
 0x852   : > { %v2444_v5 = vpop.eup %2443 }
 0x853   : > { %2449 = vrcp.f32 %v2004_v4  ;;  %v2002_v22 = vadd.f32 1.0, %v2444_v5 }
 0x855   : > { %2451 = vrcp.f32 %v2002_v22 }
 0x85c   : > { %v2446_v7 = vpop.eup %2445 }
 0x85d   : > { %v2015_v13 = vadd.f32 %v2446_v7, %v2646_v45  ;;  %v2024_v45 = vpop.permute.xlu0 %2023 }
 0x85e   : > { %v2448_v11 = vpop.eup %2447 }
 0x85f   : > { %v2013_v17 = vadd.f32 %v2448_v11, %v2650_v47  ;;  %v2069_v47 = vld [vmem:[%s2976_s22] sm:$0xff] }
 0x860   : > { %v2450_v12 = vpop.eup %2449 }
 0x861   : > { %v2016_v14 = vadd.f32 %v2450_v12, %v2652_v48  ;;  %v769_v52 = vpop.xlane.xlu0 %768 }
 0x862   : > { %v2452_v15 = vpop.eup %2451 }
 0x863   : > { %v2019_v16 = vpack.c.bf16 %v2016_v14, %v2015_v13  ;;  %v2014_v18 = vadd.f32 %v2452_v15, %v2658_v51 }
 0x865   : > { %2356 = vmatpush3.bf16.msra.mxu1 %v2019_v16  ;;  %v2018_v19 = vpack.c.bf16 %v2014_v18, %v2013_v17 }
 0x866   : > { %2357 = vmatprep.subr.bf16.mxu1 %v2461_v0 }
 0x869   : > { %2358 = vmatpush3.bf16.msra.mxu1 %v2018_v19 }
 0x86c   : > { %2360 = vmatmul.mubr.msk.bf16.vlgmr.msra.gmra.mxu1 %vm970_vm3, %v2017_v20  ;;  %vm2076_vm3 = vcmask 15360  }
 0x92c   : > { %v2063_v48 = vpop.f32.mrf.mxu1 }
 0x92d   : > { %v2064_v21 = vadd.f32 %v2063_v48, %v2024_v45 }
 0x92e   : > { %v2361_v51 = vpop.f32.mrf.mxu1 }
 0x92f   : > { %v2070_v23 = vmul.f32 %v2069_v47, %v2064_v21 }
 0x930   : > { %v2066_v24 = vpop.f32.mrf.mxu1 }
 0x931   : > { %v2071_v25 = vsel %vm932_vm2, %v2070_v23, 0.0 }
 0x932   : > { %2072 = vadd.xlane.f32.xlu1 %v2071_v25  ;;  %v2362_v0 = vpop.f32.mrf.mxu1 }
 0x9bb   : > { %v2073_v59 = vpop.xlane.xlu1 %2072 }
 0x9bc   : > { %v2075_v26 = vsel %vm2074_vm15, %v769_v52, %v2073_v59 }
 0x9bd   : > { %2077 = vst.msk [vmem:[%s708_s27] sm:$0xff] %vm2076_vm3, %v2075_v26 }
 0x9be PF: > { %s3008_s2 = sld [smem:[#allocation4_spill]] }
 0x9c4   : > { %s33_s4 = sadd.s32 1, %s3008_s2  }
 0x9c5   : > { %p30_p4 = scmp.ge.s32.totalorder %s33_s4, 4  }
 0x9c7   :  { %32 = sbr.rel (!%p30_p4) target bundleno = 9 (0x9), region = 145 }

// kernel: m_gcn_forward.1
= control target key start
LH: loop header
LB: loop body
LE: loop exit
PB: predicated region body
PF: predicated region fallthrough
CT: control target
= control target key end

     0   :  { %s2954_s0 = inlined_call_operand.vmem [shape: f32[2,64,64], index: 0, kind: input, shape index: {}]   ;;  %s2955_s1 = inlined_call_operand.vmem [shape: bf16[8,64], index: 1, kind: input, shape index: {}]   ;;  %s2956_s2 = inlined_call_operand.vmem [shape: bf16[32,64], index: 2, kind: input, shape index: {}]   ;;  %s2957_s3 = inlined_call_operand.vmem [shape: f32[32,1], index: 3, kind: input, shape index: {}]   ;;  %s2958_s4 = inlined_call_operand.vmem [shape: bf16[32,32], index: 4, kind: input, shape index: {}]   ;;  %s2959_s5 = inlined_call_operand.vmem [shape: f32[32,1], index: 5, kind: input, shape index: {}]   ;;  %s2960_s6 = inlined_call_operand.vmem [shape: f32[32,1], index: 6, kind: input, shape index: {}]   ;;  %s2961_s7 = inlined_call_operand.vmem [shape: f32[32,1], index: 7, kind: input, shape index: {}]   ;;  %s2962_s8 = inlined_call_operand.vmem [shape: bf16[32,32], index: 8, kind: input, shape index: {}]   ;;  %s2963_s9 = inlined_call_operand.vmem [shape: bf16[32,32], index: 9, kind: input, shape index: {}]   ;;  %s2964_s10 = inlined_call_operand.vmem [shape: f32[32,1], index: 10, kind: input, shape index: {}]   ;;  %s2965_s11 = inlined_call_operand.vmem [shape: bf16[8,8], index: 11, kind: input, shape index: {}]   ;;  %s2966_s12 = inlined_call_operand.vmem [shape: bf16[8,8], index: 12, kind: input, shape index: {}]   ;;  %s2967_s13 = inlined_call_operand.vmem [shape: bf16[32,32], index: 13, kind: input, shape index: {}]   ;;  %s2968_s14 = inlined_call_operand.vmem [shape: f32[32,1], index: 14, kind: input, shape index: {}]   ;;  %s2969_s15 = inlined_call_operand.vmem [shape: bf16[8,8], index: 15, kind: input, shape index: {}]   ;;  %s2970_s16 = inlined_call_operand.vmem [shape: bf16[8,8], index: 16, kind: input, shape index: {}]   ;;  %s2971_s17 = inlined_call_operand.vmem [shape: f32[1,8], index: 17, kind: input, shape index: {}]   ;;  %s2972_s18 = inlined_call_operand.vmem [shape: bf16[64,32], index: 18, kind: input, shape index: {}]   ;;  %s2973_s19 = inlined_call_operand.vmem [shape: f32[1,32], index: 19, kind: input, shape index: {}]   ;;  %s2974_s20 = inlined_call_operand.vmem [shape: bf16[8,32], index: 20, kind: input, shape index: {}]   ;;  %s2975_s21 = inlined_call_operand.vmem [shape: f32[8,1], index: 21, kind: input, shape index: {}]   ;;  %s2976_s22 = inlined_call_operand.vmem [shape: f32[8,8], index: 22, kind: input, shape index: {}]   ;;  %s2977_s23 = inlined_call_operand.vmem [shape: f32[2,8,2], index: 23, kind: output, shape index: {}]  }
   0x1   :  { %2989 = sst [smem:[#allocation5_spill]] %s2954_s0 }
   0x2   :  { %2990 = sst [smem:[#allocation6_spill]] %s2955_s1 }
   0x3   :  { %2991 = sst [smem:[#allocation7_spill]] %s2956_s2 }
   0x4   :  { %2992 = sst [smem:[#allocation8_spill]] %s2957_s3 }
   0x5   :  { %2993 = sst [smem:[#allocation9_spill]] %s2958_s4  ;;  %s2595_s4 = smov 0  }
   0x6   :  { %2994 = sst [smem:[#allocation10_spill]] %s2959_s5 }
   0x7   :  { %2995 = sst [smem:[#allocation11_spill]] %s2960_s6 }
   0x8   :  { %2996 = sst [smem:[#allocation12_spill]] %s2961_s7 }
   0x9 LB: > { %2997 = sst [smem:[#allocation4_spill]] %s2459_s4  ;;  %s2131_s30 = sadd.s32 4294967295, %s2459_s4   ;;  %s2459_s4 = sphi %s2595_s4, %s33_s4  }
   0xa   : > { %p2135_p0 = scmp.ge.s32.totalorder %s2459_s4, 1  ;;  %p637_p1 = scmp.lt.s32.totalorder %s2459_s4, 3 }
   0xc   : > { %p638_p2 = pnand %p2135_p0, %p637_p1 }
   0xd   : > { %p700_p3 = scmp.lt.s32.totalorder (!%p638_p2), %s2131_s30, 1  ;;  %s2998_s5 = sld [smem:[#allocation7_spill]] (!%p638_p2) }
   0xe   : > { %641 = sbr.rel (%p638_p2) target bundleno = 2494 (0x9be), region = 112  ;;  %s2999_s2 = sld [smem:[#allocation8_spill]] (!%p638_p2) }
   0xf   : > { %s3000_s4 = sld [smem:[#allocation5_spill]] (!%p638_p2)  ;;  %s2988_s27 = smov (!%p638_p2), 112  }
  0x10   : > { %s3001_s6 = sld [smem:[#allocation6_spill]] (!%p638_p2)  ;;  %s2465_s7 = smov (!%p638_p2), 120  }
  0x11   : > { %s3003_s25 = sld [smem:[#allocation10_spill]] (!%p638_p2)  ;;  %s2467_s28 = smov (!%p638_p2), 16  }
  0x12   : > { %s3005_s3 = sld [smem:[#allocation12_spill]] (!%p638_p2)  ;;  %s2471_s26 = smov (!%p638_p2), 32  }
  0x13   : > { %v2461_v0 = vmov 0.0   ;;  %vm2462_vm0 = vmmov 0   ;;  %v2391_v1 = vld [vmem:[%s2998_s5] sm:$0xff]   ;;  %s3010_s30 = smov (!%p700_p3, %s2131_s30), 1  ;;  %vm723_vm1 = vcmask 523264   ;;  %v2463_v2 = vmov 0  }
  0x14   : > { %2247 = vmatprep.subr.bf16.mxu0 %v2461_v0  ;;  %2255 = vmatprep.mubr.msk.bf16.mxu0 %vm2462_vm0, %v2461_v0  ;;  %v782_v3 = vld [vmem:[%s2999_s2 + $0x10] sm:$0xff]  ;;  %v780_v4 = vld [vmem:[%s2999_s2] sm:$0xff]  ;;  %v783_v5 = vld [vmem:[%s2999_s2 + $0x18] sm:$0xff]  ;;  %s2192_s29 = sshll.u32 %s3010_s30, 6  ;;  %vm932_vm2 = vcmask 64512   ;;  %vm970_vm3 = vcmask 261120  }
  0x15   : > { %2390 = vset.pattern.permute.xlu1 %v2463_v2  ;;  %2389 = vset.pattern.permute.xlu0 %v2463_v2  ;;  %v781_v6 = vld [vmem:[%s2999_s2 + $0x8] sm:$0xff]  ;;  %s704_s1 = scalar_lea.vmem %s3000_s4, %s2192_s29  ;;  %v1220_v53 = vld [vmem:[%s2964_s10 + $0x10] sm:$0xff]  ;;  %v1221_v54 = vld [vmem:[%s2964_s10 + $0x18] sm:$0xff]  ;;  %vm1521_vm8 = vcmask 1043456   ;;  %s2987_s2 = smov 104   ;;  %vm1464_vm10 = vcmask 130112  }
  0x16   : > { %2267 = vmatprep.mubr.msk.bf16.mxu1 %vm723_vm1, %v2391_v1  ;;  %796 = vperm.xlu1 %2390, %v782_v3   ;;  %v716_v7 = vld [vmem:[%s704_s1 + $0x30] sm:$0xff]  ;;  %v717_v8 = vld [vmem:[%s704_s1 + $0x38] sm:$0xff]  ;;  %v714_v9 = vld [vmem:[%s704_s1 + $0x20] sm:$0xff]  ;;  %s2468_s29 = smov 8   ;;  %vm1471_vm11 = vcmask 195712   ;;  %vm1478_vm12 = vcmask 261312  }
  0x17   : > { %786 = vperm.xlu0 %2389, %v780_v4   ;;  %v721_v10 = vpack.c.bf16 %v717_v8, %v716_v7  ;;  %v715_v11 = vld [vmem:[%s704_s1 + $0x28] sm:$0xff]  ;;  %v712_v12 = vld [vmem:[%s704_s1 + $0x10] sm:$0xff]  ;;  %v713_v13 = vld [vmem:[%s704_s1 + $0x18] sm:$0xff]  ;;  %s2470_s4 = smov 40   ;;  %s3006_s0 = smov 112  }
  0x18   : > { %v720_v14 = vpack.c.bf16 %v715_v11, %v714_v9  ;;  %v710_v15 = vld [vmem:[%s704_s1] sm:$0xff]  ;;  %v711_v16 = vld [vmem:[%s704_s1 + $0x8] sm:$0xff]  ;;  %v719_v17 = vpack.c.bf16 %v713_v13, %v712_v12  ;;  %s3002_s1 = sld [smem:[#allocation9_spill]]  ;;  %v958_v9 = vld [vmem:[%s3003_s25 + $0x10] sm:$0xff]  ;;  %s3007_s24 = smov 104  }
  0x19   : > { %2248 = vmatpush3.bf16.msra.mxu0 %v721_v10  ;;  %2259 = vmatprep.subr.bf16.mxu1 %v721_v10  ;;  %v718_v18 = vpack.c.bf16 %v711_v16, %v710_v15  ;;  %v722_v19 = vld [vmem:[%s3001_s6] sm:$0xf]  ;;  %v2392_v20 = vld [vmem:[%s2998_s5 + $0x8] sm:$0xff]   ;;  %s3004_s6 = sld [smem:[#allocation11_spill]] }
  0x1a   : > { %801 = vperm.xlu1 %2390, %v783_v5   ;;  %2249 = vmatprep.subr.bf16.mxu0 %v2461_v0  ;;  %v2397_v7 = vld [vmem:[%s2963_s9] sm:$0xff]   ;;  %v2398_v8 = vld [vmem:[%s2963_s9 + $0x8] sm:$0xff]  }
  0x1b   : > { %791 = vperm.xlu0 %2389, %v781_v6   ;;  %2260 = vmatpush3.bf16.msra.mxu1 %v721_v10  ;;  %v2395_v6 = vld [vmem:[%s2962_s8] sm:$0xff]  }
  0x1c   : > { %2261 = vmatprep.subr.bf16.mxu1 %v720_v14  ;;  %v956_v12 = vld [vmem:[%s3003_s25] sm:$0xff] }
  0x1d   : > { %2250 = vmatpush3.bf16.msra.mxu0 %v720_v14 }
  0x1e   : > { %2251 = vmatprep.subr.bf16.mxu0 %v2461_v0  ;;  %v2393_v55 = vld [vmem:[%s3002_s1] sm:$0xff]   ;;  %v2394_v4 = vld [vmem:[%s3002_s1 + $0x8] sm:$0xff]   ;;  %s2469_s1 = smov 24  }
  0x1f   : > { %2262 = vmatpush3.bf16.msra.mxu1 %v720_v14  ;;  %v1028_v11 = vld [vmem:[%s3004_s6 + $0x10] sm:$0xff]  ;;  %v1026_v16 = vld [vmem:[%s3004_s6] sm:$0xff] }
  0x20   : > { %2263 = vmatprep.subr.bf16.mxu1 %v719_v17  ;;  %v1036_v14 = vld [vmem:[%s3005_s3 + $0x10] sm:$0xff] }
  0x21   : > { %2252 = vmatpush3.bf16.msra.mxu0 %v719_v17 }
  0x22   : > { %2253 = vmatprep.subr.bf16.mxu0 %v2461_v0 }
  0x23   : > { %2264 = vmatpush3.bf16.msra.mxu1 %v719_v17  ;;  %v959_v17 = vld [vmem:[%s3003_s25 + $0x18] sm:$0xff] }
  0x24   : > { %2265 = vmatprep.subr.bf16.mxu1 %v718_v18 }
  0x25   : > { %2254 = vmatpush3.bf16.msra.mxu0 %v718_v18 }
  0x27   : > { %2266 = vmatpush3.bf16.msra.mxu1 %v718_v18 }
  0x28   : > { %2256 = vmatmul.mubr.msk.bf16.vlgmr.msra.gmra.mxu0 %vm723_vm1, %v722_v19 }
  0x2a   : > { %2268 = vmatmul.mubr.msk.bf16.vlgmr.msra.gmra.mxu1 %vm723_vm1, %v2392_v20  ;;  %v1034_v20 = vld [vmem:[%s3005_s3] sm:$0xff] }
  0x2b   : > { %2281 = vmatprep.mubr.msk.bf16.mxu1 %vm970_vm3, %v2393_v55 }
  0x91   : > { %v797_v37 = vpop.permute.xlu1 %796 }
  0x92   : > { %v787_v21 = vpop.permute.xlu0 %786 }
  0x95   : > { %v802_v40 = vpop.permute.xlu1 %801 }
  0x96   : > { %v792_v29 = vpop.permute.xlu0 %791 }
  0xe8   : > { %v2639_v22 = vpop.f32.mrf.mxu0 }
  0xe9   : > { %v2140_v23 = vmul.f32 -1.442695, %v2639_v22 }
  0xea   : > { %v2269_v24 = vpop.f32.mrf.mxu1  ;;  %v2257_v25 = vpop.f32.mrf.mxu0 }
  0xeb   : > { %2407 = vpow2.f32 %v2140_v23  ;;  %v863_v42 = vadd.f32 %v2269_v24, %v797_v37  ;;  %v1029_v23 = vld [vmem:[%s3004_s6 + $0x18] sm:$0xff]  ;;  %v957_v24 = vld [vmem:[%s3003_s25 + $0x8] sm:$0xff] }
  0xec   : > { %v854_v26 = vpop.f32.mrf.mxu1  ;;  %v764_v27 = vpop.f32.mrf.mxu0 }
  0xed   : > { %v855_v31 = vadd.f32 %v854_v26, %v787_v21 }
  0xee   : > { %v2270_v28 = vpop.f32.mrf.mxu1  ;;  %v2258_v30 = vpop.f32.mrf.mxu0 }
  0xef   : > { %v866_v43 = vadd.f32 %v2270_v28, %v802_v40  ;;  %v1037_v28 = vld [vmem:[%s3005_s3 + $0x18] sm:$0xff]  ;;  %v1027_v30 = vld [vmem:[%s3004_s6 + $0x8] sm:$0xff] }
  0xf0   : > { %v857_v32 = vpop.f32.mrf.mxu1 }
  0xf1   : > { %v858_v33 = vadd.f32 %v857_v32, %v792_v29  ;;  %v870_v44 = vpack.c.bf16 %v866_v43, %v863_v42 }
  0xf3   : > { %v869_v34 = vpack.c.bf16 %v858_v33, %v855_v31 }
  0xf5   : > { %2273 = vmatprep.mubr.msk.bf16.mxu0 %vm723_vm1, %v869_v34  ;;  %v1035_v34 = vld [vmem:[%s3005_s3 + $0x8] sm:$0xff] }
  0xf8   : > { %v2408_v35 = vpop.eup %2407 }
  0xf9   : > { %v773_v36 = vadd.f32 1.0, %v2408_v35 }
  0xfb   : > { %2409 = vrcp.f32 %v773_v36 }
 0x108   : > { %v2410_v38 = vpop.eup %2409 }
 0x109   : > { %v871_v39 = vpack.c.bf16 %v2410_v38, %v2410_v38 }
 0x10b   : > { %2363 = vmatprep.subr.msk.bf16.mxu0 %vm723_vm1, %v871_v39  ;;  %v879_v41 = vsel %vm723_vm1, %v871_v39, 0 }
 0x10c   : > { %2272 = vmatpush3.bf16.xpose.msra.mxu0 %v879_v41 }
 0x113   : > { %2274 = vmatmul.mubr.msk.bf16.vlgmr.msra.gmra.mxu0 %vm723_vm1, %v870_v44 }
 0x114   : > { %2289 = vmatprep.mubr.msk.bf16.mxu0 %vm970_vm3, %v2395_v6  ;;  %v2772_v6 = vld [vmem:[%s2968_s14] sm:$0xff] }
 0x1d3   : > { %v2646_v45 = vpop.f32.mrf.mxu0 }
 0x1d4   : > { %v939_v46 = vsel %vm932_vm2, %v2646_v45, 0.0 }
 0x1d5   : > { %940 = vadd.xlane.f32.xlu0 %v939_v46  ;;  %v2650_v47 = vpop.f32.mrf.mxu0 }
 0x1d6   : > { %v933_v49 = vsel %vm932_vm2, %v2650_v47, 0.0 }
 0x1d7   : > { %v2652_v48 = vpop.f32.mrf.mxu0 }
 0x1d8   : > { %v942_v50 = vsel %vm932_vm2, %v2652_v48, 0.0  ;;  %v2674_v3 = vpack.c.bf16 %v2652_v48, %v2646_v45 }
 0x1d9   : > { %934 = vadd.xlane.f32.xlu0 %v933_v49  ;;  %943 = vadd.xlane.f32.xlu1 %v942_v50  ;;  %v2658_v51 = vpop.f32.mrf.mxu0 }
 0x1da   : > { %v936_v52 = vsel %vm932_vm2, %v2658_v51, 0.0  ;;  %v2683_v5 = vpack.c.bf16 %v2658_v51, %v2650_v47 }
 0x1dc   : > { %v1275_v55 = vsel %vm932_vm2, %v2683_v5, 0 }
 0x1dd   : > { %937 = vadd.xlane.f32.xlu0 %v936_v52  ;;  %v2396_v52 = vld [vmem:[%s2962_s8 + $0x8] sm:$0xff]  }
 0x1ea   : > { %1234 = vperm.xlu1 %2390, %v1220_v53   ;;  %v1278_v53 = vsel %vm932_vm2, %v2674_v3, 0 }
 0x1ee   : > { %1239 = vperm.xlu1 %2390, %v1221_v54   ;;  %v1513_v54 = vld [vmem:[%s2969_s15] sm:$0xf] }
 0x25e   : > { %v941_v56 = vpop.xlane.xlu0 %940 }
 0x25f   : > { %v948_v59 = vmul.f32 0.125, %v941_v56  ;;  %v1270_v56 = vld [vmem:[%s2965_s11] sm:$0xf] }
 0x262   : > { %v935_v57 = vpop.xlane.xlu0 %934  ;;  %v944_v58 = vpop.xlane.xlu1 %943 }
 0x263   : > { %v949_v60 = vmul.f32 0.125, %v944_v58  ;;  %v946_v63 = vmul.f32 0.125, %v935_v57  ;;  %v1575_v57 = vsel %vm1521_vm8, %v1513_v54, 0 }
 0x265   : > { %v955_v61 = vpack.c.bf16 %v949_v60, %v948_v59 }
 0x266   : > { %v938_v62 = vpop.xlane.xlu0 %937 }
 0x267   : > { %v947_v1 = vmul.f32 0.125, %v938_v62  ;;  %2277 = vmatprep.subr.bf16.mxu1 %v955_v61  ;;  %v1219_v62 = vld [vmem:[%s2964_s10 + $0x8] sm:$0xff] }
 0x268   : > { %2278 = vmatpush3.bf16.msra.mxu1 %v955_v61 }
 0x269   : > { %v954_v2 = vpack.c.bf16 %v947_v1, %v946_v63  ;;  %v1218_v63 = vld [vmem:[%s2964_s10] sm:$0xff] }
 0x26b   : > { %2279 = vmatprep.subr.bf16.mxu1 %v954_v2 }
 0x26c   : > { %2280 = vmatpush3.bf16.msra.mxu1 %v954_v2 }
 0x26d   : > { %2293 = vmatprep.subr.bf16.mxu1 %v2674_v3 }
 0x26f   : > { %2282 = vmatmul.mubr.msk.bf16.vlgmr.msra.gmra.mxu1 %vm970_vm3, %v2394_v4 }
 0x270   : > { %2294 = vmatpush3.bf16.msra.mxu1 %v2674_v3  ;;  %2297 = vmatprep.mubr.msk.bf16.mxu1 %vm970_vm3, %v2397_v7 }
 0x271   : > { %2295 = vmatprep.subr.bf16.mxu1 %v2683_v5 }
 0x274   : > { %2296 = vmatpush3.bf16.msra.mxu1 %v2683_v5 }
 0x277   : > { %2298 = vmatmul.mubr.msk.bf16.vlgmr.msra.gmra.mxu1 %vm970_vm3, %v2398_v8  ;;  %v2779_v8 = vld [vmem:[%s2968_s14 + $0x10] sm:$0xff] }
 0x32f   : > { %v2283_v10 = vpop.f32.mrf.mxu1 }
 0x330   : > { %v1020_v13 = vadd.f32 %v2283_v10, %v958_v9  ;;  %v2784_v9 = vld [vmem:[%s2968_s14 + $0x8] sm:$0xff]  ;;  %v2791_v10 = vld [vmem:[%s2968_s14 + $0x18] sm:$0xff] }
 0x331   : > { %v1011_v15 = vpop.f32.mrf.mxu1 }
 0x332   : > { %v1032_v18 = vmul.f32 %v1028_v11, %v1020_v13  ;;  %v1012_v19 = vadd.f32 %v1011_v15, %v956_v12  ;;  %v2399_v11 = vld [vmem:[%s2967_s13] sm:$0xff]   ;;  %v1235_v12 = vpop.permute.xlu1 %1234 }
 0x333   : > { %v2284_v21 = vpop.f32.mrf.mxu1  ;;  %2313 = vmatprep.mubr.msk.bf16.mxu1 %vm970_vm3, %v2399_v11 }
 0x334   : > { %v1040_v25 = vadd.f32 %v1036_v14, %v1032_v18  ;;  %v1030_v26 = vmul.f32 %v1026_v16, %v1012_v19  ;;  %v1023_v27 = vadd.f32 %v2284_v21, %v959_v17 }
 0x335   : > { %v1014_v29 = vpop.f32.mrf.mxu1 }
 0x336   : > { %v1038_v31 = vadd.f32 %v1034_v20, %v1030_v26  ;;  %v1033_v32 = vmul.f32 %v1029_v23, %v1023_v27  ;;  %v1015_v33 = vadd.f32 %v1014_v29, %v957_v24  ;;  %v1048_v35 = vmul.f32 0.2, %v1040_v25  ;;  %v1240_v13 = vpop.permute.xlu1 %1239 }
 0x337   : > { %vm1044_vm4 = vcmp.gt.f32.partialorder %v1040_v25, 0.0  ;;  %v2299_v14 = vpop.f32.mrf.mxu1 }
 0x338   : > { %v1041_v36 = vadd.f32 %v1037_v28, %v1033_v32  ;;  %v1031_v37 = vmul.f32 %v1027_v30, %v1015_v33  ;;  %v1046_v38 = vmul.f32 0.2, %v1038_v31  ;;  %vm1042_vm6 = vcmp.gt.f32.partialorder %v1038_v31, 0.0 }
 0x339   : > { %v1052_v42 = vsel %vm1044_vm4, %v1040_v25, %v1048_v35  ;;  %v1179_v15 = vpop.f32.mrf.mxu1 }
 0x33a   : > { %v1049_v39 = vmul.f32 0.2, %v1041_v36  ;;  %v1039_v40 = vadd.f32 %v1035_v34, %v1031_v37  ;;  %vm1045_vm5 = vcmp.gt.f32.partialorder %v1041_v36, 0.0  ;;  %v1050_v46 = vsel %vm1042_vm6, %v1038_v31, %v1046_v38 }
 0x33b   : > { %v2300_v19 = vpop.f32.mrf.mxu1  ;;  %vm1496_vm6 = vcmask 392512  }
 0x33c   : > { %v1047_v41 = vmul.f32 0.2, %v1039_v40  ;;  %v1053_v43 = vsel %vm1045_vm5, %v1041_v36, %v1049_v39  ;;  %vm1043_vm7 = vcmp.gt.f32.partialorder %v1039_v40, 0.0  ;;  %vm1489_vm5 = vcmask 326912  }
 0x33d   : > { %v1059_v44 = vpack.c.bf16 %v1053_v43, %v1052_v42  ;;  %v1182_v26 = vpop.f32.mrf.mxu1 }
 0x33e   : > { %v1051_v49 = vsel %vm1043_vm7, %v1039_v40, %v1047_v41  ;;  %vm1503_vm7 = vcmask 458112  }
 0x33f   : > { %2285 = vmatprep.subr.bf16.mxu0 %v1059_v44  ;;  %v1058_v50 = vpack.c.bf16 %v1051_v49, %v1050_v46 }
 0x340   : > { %2286 = vmatpush3.bf16.msra.mxu0 %v1059_v44 }
 0x341   : > { %2287 = vmatprep.subr.bf16.mxu0 %v1058_v50 }
 0x344   : > { %2288 = vmatpush3.bf16.msra.mxu0 %v1058_v50 }
 0x345   : > { %2301 = vmatprep.subr.bf16.mxu0 %v2461_v0 }
 0x347   : > { %2290 = vmatmul.mubr.msk.bf16.vlgmr.msra.gmra.mxu0 %vm970_vm3, %v2396_v52 }
 0x348   : > { %2302 = vmatpush3.bf16.xpose.msra.mxu0 %v1278_v53  ;;  %2305 = vmatprep.mubr.msk.bf16.mxu0 %vm2462_vm0, %v2461_v0 }
 0x349   : > { %2303 = vmatprep.subr.bf16.mxu0 %v2461_v0 }
 0x350   : > { %2304 = vmatpush3.bf16.xpose.msra.mxu0 %v1275_v55 }
 0x351   : > { %2365 = vmatprep.subr.msk.bf16.mxu0 %vm1521_vm8, %v1513_v54 }
 0x357   : > { %2306 = vmatmul.mubr.msk.bf16.vlgmr.msra.gmra.mxu0 %vm932_vm2, %v1270_v56 }
 0x358   : > { %2325 = vmatprep.mubr.msk.bf16.mxu0 %vm932_vm2, %v2683_v5  ;;  %2324 = vmatpush3.bf16.msra.mxu0 %v1575_v57 }
 0x35f   : > { %2326 = vmatmul.mubr.msk.bf16.vlgmr.msra.gmra.mxu0 %vm932_vm2, %v2674_v3 }
 0x407   : > { %v2291_v58 = vpop.f32.mrf.mxu0 }
 0x408   : > { %1206 = vperm.xlu1 %2390, %v2291_v58  }
 0x409   : > { %v1110_v59 = vpop.f32.mrf.mxu0 }
 0x40b   : > { %v2292_v60 = vpop.f32.mrf.mxu0 }
 0x40c   : > { %1211 = vperm.xlu0 %2389, %v2292_v60  }
 0x40d   : > { %v1113_v61 = vpop.f32.mrf.mxu0 }
 0x40e   : > { %1201 = vperm.xlu1 %2390, %v1113_v61  }
 0x410   : > { %1196 = vperm.xlu0 %2389, %v1110_v59  }
 0x412   : > { %1229 = vperm.xlu1 %2390, %v1219_v62   ;;  %v1514_v62 = vld [vmem:[%s2970_s16] sm:$0xf] }
 0x414   : > { %1224 = vperm.xlu0 %2389, %v1218_v63   ;;  %v2400_v63 = vld [vmem:[%s2967_s13 + $0x8] sm:$0xff]  }
 0x417   : > { %v1314_v1 = vpop.f32.mrf.mxu0 }
 0x418   : > { %vm1320_vm9 = vcmp.gt.f32.partialorder %v1314_v1, 0.0  ;;  %v1321_v2 = vmul.f32 0.2, %v1314_v1 }
 0x419   : > { %v2307_v3 = vpop.f32.mrf.mxu0 }
 0x41a   : > { %v1322_v4 = vsel %vm1320_vm9, %v1314_v1, %v1321_v2  ;;  %v1523_v2 = vsel %vm1521_vm8, %v1514_v62, 0  ;;  %vm1510_vm9 = vcmask 523712  }
 0x41b   : > { %1437 = vrot.lane.b32.xlu1 %v1322_v4, %s2988_s27  ;;  %1430 = vst [vmem:[#allocation2] ss:$4 sm:$0xff] %v1322_v4  ;;  %1432 = vrot.lane.b32.xlu0 %v1322_v4, %s2465_s7  ;;  %v1317_v5 = vpop.f32.mrf.mxu0  ;;  %s2473_s27 = smov 48  }
 0x41d   : > { %v2308_v7 = vpop.f32.mrf.mxu0 }
 0x41f   : > { %1335 = vperm.xlu1 %2390, %v2772_v6   ;;  %1442 = vrot.lane.b32.xlu0 %v1322_v4, %s2987_s2  ;;  %s2472_s2 = smov 56  }
 0x423   : > { %1345 = vperm.xlu1 %2390, %v2779_v8   ;;  %1340 = vperm.xlu0 %2389, %v2784_v9  }
 0x427   : > { %1350 = vperm.xlu0 %2389, %v2791_v10  }
 0x483   : > { %v1207_v16 = vpop.permute.xlu1 %1206 }
 0x484   : > { %v1216_v17 = vadd.f32 %v2299_v14, %v1207_v16 }
 0x486   : > { %v1244_v18 = vadd.f32 %v1235_v12, %v1216_v17 }
 0x487   : > { %v1212_v20 = vpop.permute.xlu0 %1211 }
 0x488   : > { %v2161_v21 = vmul.f32 -1.442695, %v1244_v18  ;;  %v1217_v23 = vadd.f32 %v2300_v19, %v1212_v20 }
 0x489   : > { %v1202_v24 = vpop.permute.xlu1 %1201 }
 0x48a   : > { %2411 = vpow2.f32 %v2161_v21  ;;  %v1245_v25 = vadd.f32 %v1240_v13, %v1217_v23  ;;  %v1215_v29 = vadd.f32 %v1202_v24, %v1182_v26  ;;  %v2327_v21 = vpop.f32.mrf.mxu0 }
 0x48b   : > { %v1197_v27 = vpop.permute.xlu0 %1196 }
 0x48c   : > { %v2162_v28 = vmul.f32 -1.442695, %v1245_v25  ;;  %v1214_v31 = vadd.f32 %v1197_v27, %v1179_v15 }
 0x48d   : > { %v1230_v30 = vpop.permute.xlu1 %1229 }
 0x48e   : > { %2413 = vpow2.f32 %v2162_v28  ;;  %v1243_v32 = vadd.f32 %v1230_v30, %v1215_v29  ;;  %v1611_v30 = vpop.f32.mrf.mxu0 }
 0x48f   : > { %v1225_v33 = vpop.permute.xlu0 %1224 }
 0x490   : > { %v2160_v34 = vmul.f32 -1.442695, %v1243_v32  ;;  %v1242_v35 = vadd.f32 %v1225_v33, %v1214_v31  ;;  %v2401_v32 = vld [vmem:[%s2972_s18 + $0x18] sm:$0xff]  }
 0x491   : > { %v1438_v36 = vpop.permute.xlu1 %1437 }
 0x492   : > { %2415 = vpow2.f32 %v2160_v34  ;;  %v2159_v37 = vmul.f32 -1.442695, %v1242_v35  ;;  %1441 = vst [vmem:[#allocation2 + $0x2] ss:$4 sm:$0xff] %v1438_v36 }
 0x493   : > { %v1433_v38 = vpop.permute.xlu0 %1432 }
 0x494   : > { %2417 = vpow2.f32 %v2159_v37  ;;  %1436 = vst [vmem:[#allocation2 + $0x1] ss:$4 sm:$0xff] %v1433_v38  ;;  %v2172_v37 = vld [vmem:[%s2971_s17] ss:$0 sm:$0xff] }
 0x497   : > { %v2412_v39 = vpop.eup %2411  ;;  %v1443_v40 = vpop.permute.xlu0 %1442 }
 0x498   : > { %v1260_v41 = vadd.f32 1.0, %v2412_v39  ;;  %1446 = vst [vmem:[#allocation2 + $0x3] ss:$4 sm:$0xff] %v1443_v40 }
 0x49a   : > { %2419 = vrcp.f32 %v1260_v41  ;;  %v1336_v12 = vpop.permute.xlu1 %1335  ;;  %v2328_v41 = vpop.f32.mrf.mxu0 }
 0x49b   : > { %v2414_v42 = vpop.eup %2413 }
 0x49c   : > { %v1261_v43 = vadd.f32 1.0, %v2414_v42 }
 0x49e   : > { %2421 = vrcp.f32 %v1261_v43  ;;  %v1341_v13 = vpop.permute.xlu0 %1340  ;;  %v1346_v14 = vpop.permute.xlu1 %1345  ;;  %v2402_v43 = vld [vmem:[%s2972_s18 + $0x10] sm:$0xff]  }
 0x49f   : > { %v2416_v44 = vpop.eup %2415  ;;  %v2798_v52 = vld [vmem:[#allocation2 + $0x10] sm:$0xff]  ;;  %v2804_v54 = vld [vmem:[#allocation2 + $0x18] sm:$0xff]  ;;  %v2812_v57 = vld [vmem:[#allocation2 + $0x8] sm:$0xff] }
 0x4a0   : > { %v1259_v46 = vadd.f32 1.0, %v2416_v44  ;;  %v2816_v59 = vld [vmem:[#allocation2] sm:$0xff]  ;;  %v1452_v7 = vpack.c.bf16 %v2804_v54, %v2798_v52 }
 0x4a1   : > { %v2418_v49 = vpop.eup %2417  ;;  %v1451_v1 = vpack.c.bf16 %v2812_v57, %v2816_v59 }
 0x4a2   : > { %2423 = vrcp.f32 %v1259_v46  ;;  %v1258_v50 = vadd.f32 1.0, %v2418_v49  ;;  %v1351_v15 = vpop.permute.xlu0 %1350 }
 0x4a4   : > { %2425 = vrcp.f32 %v1258_v50 }
 0x4a7   : > { %v2800_v53 = vpop.eup %2419 }
 0x4a8   : > { %1455 = vst.msk [vmem:[#allocation2 + $0x10] sm:$0xff] %vm932_vm2, %v2800_v53 }
 0x4ab   : > { %v2806_v55 = vpop.eup %2421 }
 0x4ac   : > { %1456 = vst.msk [vmem:[#allocation2 + $0x18] sm:$0xff] %vm932_vm2, %v2806_v55  ;;  %v1328_v56 = vpack.c.bf16 %v2806_v55, %v2800_v53 }
 0x4ae   : > { %2309 = vmatprep.subr.bf16.mxu1 %v1328_v56 }
 0x4af   : > { %v2814_v58 = vpop.eup %2423  ;;  %2310 = vmatpush3.bf16.msra.mxu1 %v1328_v56  ;;  %v2403_v56 = vld [vmem:[%s2972_s18 + $0x8] sm:$0xff]  }
 0x4b0   : > { %1454 = vst.msk [vmem:[#allocation2 + $0x8] sm:$0xff] %vm932_vm2, %v2814_v58 }
 0x4b1   : > { %v2820_v60 = vpop.eup %2425 }
 0x4b2   : > { %1453 = vst.msk [vmem:[#allocation2] sm:$0xff] %vm932_vm2, %v2820_v60  ;;  %v1327_v61 = vpack.c.bf16 %v2814_v58, %v2820_v60 }
 0x4b4   : > { %2311 = vmatprep.subr.bf16.mxu1 %v1327_v61 }
 0x4b5   : > { %2312 = vmatpush3.bf16.msra.mxu1 %v1327_v61 }
 0x4b6   : > { %2364 = vmatprep.subr.msk.bf16.mxu1 %vm1521_vm8, %v1514_v62 }
 0x4b8   : > { %2314 = vmatmul.mubr.msk.bf16.vlgmr.msra.gmra.mxu1 %vm970_vm3, %v2400_v63  ;;  %v1614_v63 = vpop.f32.mrf.mxu0 }
 0x4b9   : > { %v1466_v3 = vld [vmem:[#allocation2 + $0x2] ss:$4 sm:$0xff]  ;;  %v1459_v4 = vld [vmem:[#allocation2 + $0x1] ss:$4 sm:$0xff]  ;;  %2318 = vmatpush3.bf16.msra.mxu1 %v1523_v2  ;;  %2319 = vmatprep.mubr.msk.bf16.mxu1 %vm932_vm2, %v1451_v1  ;;  %v1457_v5 = vld [vmem:[#allocation2] ss:$4 sm:$0xff] }
 0x4ba   : > { %1468 = vrot.lane.b32.xlu0 %v1466_v3, %s2467_s28  ;;  %1461 = vrot.lane.b32.xlu1 %v1459_v4, %s2468_s29  ;;  %1458 = vst.msk [vmem:[#allocation3] sm:$0xff] %vm932_vm2, %v1457_v5  ;;  %v1473_v11 = vld [vmem:[#allocation2 + $0x3] ss:$4 sm:$0xff] }
 0x4bb   : > { %2329 = vmatprep.subr.bf16.mxu1 %v2461_v0  ;;  %v2404_v5 = vld [vmem:[%s2972_s18] sm:$0xff]  }
 0x4be   : > { %1475 = vrot.lane.b32.xlu1 %v1473_v11, %s2469_s1 }
 0x4c0   : > { %2320 = vmatmul.mubr.msk.bf16.vlgmr.msra.gmra.mxu1 %vm932_vm2, %v1452_v7 }
 0x4c1   : > { %2337 = vmatprep.mubr.msk.bf16.mxu1 %vm2462_vm0, %v2461_v0  ;;  %2330 = vmatpush3.bf16.msra.mxu1 %v2401_v32 }
 0x4c2   : > { %2331 = vmatprep.subr.bf16.mxu1 %v2461_v0 }
 0x4c5   : > { %2332 = vmatpush3.bf16.msra.mxu1 %v2402_v43  ;;  %v1783_v43 = vld [vmem:[%s2966_s12] sm:$0xf] }
 0x4c6   : > { %2333 = vmatprep.subr.bf16.mxu1 %v2461_v0  ;;  %2366 = vmatprep.subr.msk.bf16.mxu0 %vm1521_vm8, %v1783_v43 }
 0x4c9   : > { %2334 = vmatpush3.bf16.msra.mxu1 %v2403_v56  ;;  %v2020_v56 = vld [vmem:[%s2975_s21] sm:$0xff] }
 0x4ca   : > { %2335 = vmatprep.subr.bf16.mxu1 %v2461_v0 }
 0x4cd   : > { %2336 = vmatpush3.bf16.msra.mxu1 %v2404_v5 }
 0x4ce   : > { %2355 = vmatprep.subr.bf16.mxu1 %v2461_v0 }
 0x52c   : > { %v1469_v16 = vpop.permute.xlu0 %1468  ;;  %v1462_v17 = vpop.permute.xlu1 %1461 }
 0x52d   : > { %1465 = vst.msk [vmem:[#allocation3] sm:$0xff] %vm1464_vm10, %v1462_v17 }
 0x52e   : > { %1472 = vst.msk [vmem:[#allocation3] sm:$0xff] %vm1471_vm11, %v1469_v16 }
 0x530   : > { %v1476_v18 = vpop.permute.xlu1 %1475 }
 0x531   : > { %1479 = vst.msk [vmem:[#allocation3] sm:$0xff] %vm1478_vm12, %v1476_v18 }
 0x578   : > { %v2315_v19 = vpop.f32.mrf.mxu1 }
 0x579   : > { %v1412_v20 = vadd.f32 %v2315_v19, %v1346_v14 }
 0x57a   : > { %v1403_v23 = vpop.f32.mrf.mxu1 }
 0x57b   : > { %vm1420_vm13 = vcmp.gt.f32.partialorder %v1412_v20, 0.0  ;;  %v1424_v24 = vmul.f32 0.2, %v1412_v20  ;;  %v1404_v25 = vadd.f32 %v1403_v23, %v1336_v12 }
 0x57c   : > { %v2316_v26 = vpop.f32.mrf.mxu1 }
 0x57d   : > { %v1428_v27 = vsel %vm1420_vm13, %v1412_v20, %v1424_v24  ;;  %vm1418_vm14 = vcmp.gt.f32.partialorder %v1404_v25, 0.0  ;;  %v1422_v28 = vmul.f32 0.2, %v1404_v25  ;;  %v1415_v29 = vadd.f32 %v2316_v26, %v1351_v15 }
 0x57e   : > { %1482 = vst.msk [vmem:[#allocation2 + $0x10] sm:$0xff] %vm932_vm2, %v1428_v27  ;;  %v1406_v31 = vpop.f32.mrf.mxu1 }
 0x57f   : > { %v1426_v33 = vsel %vm1418_vm14, %v1404_v25, %v1422_v28  ;;  %vm1421_vm15 = vcmp.gt.f32.partialorder %v1415_v29, 0.0  ;;  %v1425_v34 = vmul.f32 0.2, %v1415_v29  ;;  %v1407_v35 = vadd.f32 %v1406_v31, %v1341_v13 }
 0x580   : > { %1480 = vst.msk [vmem:[#allocation2] sm:$0xff] %vm932_vm2, %v1426_v33  ;;  %v2321_v36 = vpop.f32.mrf.mxu1 }
 0x581   : > { %v1429_v38 = vsel %vm1421_vm15, %v1415_v29, %v1425_v34  ;;  %vm1419_vm4 = vcmp.gt.f32.partialorder %v1407_v35, 0.0  ;;  %v1423_v39 = vmul.f32 0.2, %v1407_v35  ;;  %v1620_v40 = vadd.f32 %v2327_v21, %v2321_v36 }
 0x582   : > { %1483 = vst.msk [vmem:[#allocation2 + $0x18] sm:$0xff] %vm932_vm2, %v1429_v38  ;;  %v1559_v42 = vpop.f32.mrf.mxu1  ;;  %vm2074_vm15 = vcmask 7168  }
 0x583   : > { %v1427_v44 = vsel %vm1419_vm4, %v1407_v35, %v1423_v39  ;;  %v1635_v46 = vadd.f32 %v2172_v37, %v1620_v40  ;;  %v1612_v49 = vadd.f32 %v1611_v30, %v1559_v42 }
 0x584   : > { %1481 = vst.msk [vmem:[#allocation2 + $0x8] sm:$0xff] %vm932_vm2, %v1427_v44  ;;  %v2322_v50 = vpop.f32.mrf.mxu1  ;;  %v1807_v44 = vsel %vm1521_vm8, %v1783_v43, 0 }
 0x585   : > { %2427 = vtanh.f32 %v1635_v46  ;;  %v1633_v61 = vadd.f32 %v2172_v37, %v1612_v49  ;;  %v1623_v62 = vadd.f32 %v2328_v41, %v2322_v50  ;;  %2342 = vmatpush3.bf16.msra.mxu0 %v1807_v44 }
 0x586   : > { %v1562_v1 = vpop.f32.mrf.mxu1 }
 0x587   : > { %2429 = vtanh.f32 %v1633_v61  ;;  %v1636_v2 = vadd.f32 %v2172_v37, %v1623_v62  ;;  %v1615_v3 = vadd.f32 %v1614_v63, %v1562_v1  ;;  %v767_v63 = vsel %vm723_vm1, %v2639_v22, -inf  ;;  %v2405_v22 = vld [vmem:[%s2967_s13] sm:$0xff]  }
 0x589   : > { %2431 = vtanh.f32 %v1636_v2  ;;  %v1634_v4 = vadd.f32 %v2172_v37, %v1615_v3  ;;  %v2173_v37 = vld [vmem:[%s2973_s19] ss:$0 sm:$0xff] }
 0x58b   : > { %2433 = vtanh.f32 %v1634_v4  ;;  %v1491_v7 = vld [vmem:[#allocation2 + $0x1] ss:$4 sm:$0xff]  ;;  %v1484_v11 = vld [vmem:[#allocation2] ss:$4 sm:$0xff]  ;;  %v1505_v12 = vld [vmem:[#allocation2 + $0x3] ss:$4 sm:$0xff] }
 0x58c   : > { %1493 = vrot.lane.b32.xlu1 %v1491_v7, %s2470_s4  ;;  %1486 = vrot.lane.b32.xlu0 %v1484_v11, %s2471_s26  ;;  %v1498_v13 = vld [vmem:[#allocation2 + $0x2] ss:$4 sm:$0xff]  ;;  %s2138_s4 = sshll.u32 %s3010_s30, 3 }
 0x590   : > { %1507 = vrot.lane.b32.xlu1 %v1505_v12, %s2472_s2  ;;  %1500 = vrot.lane.b32.xlu0 %v1498_v13, %s2473_s27  ;;  %s2474_s27 = smov 96   ;;  %v2406_v12 = vld [vmem:[%s2967_s13 + $0x8] sm:$0xff]  }
 0x592   : > { %v2428_v14 = vpop.eup %2427 }
 0x593   : > { %v1727_v15 = vmul.f32 %v2428_v14, %v2798_v52 }
 0x594   : > { %v2430_v16 = vpop.eup %2429 }
 0x595   : > { %v1731_v17 = vadd.f32 %v2646_v45, %v1727_v15  ;;  %v1725_v18 = vmul.f32 %v2430_v16, %v2816_v59 }
 0x596   : > { %v2432_v19 = vpop.eup %2431 }
 0x597   : > { %v1729_v20 = vadd.f32 %v1725_v18, %v2650_v47  ;;  %v1728_v21 = vmul.f32 %v2432_v19, %v2804_v54  ;;  %1741 = vst.msk [vmem:[#allocation2 + $0x10] sm:$0xff] %vm932_vm2, %v1731_v17 }
 0x598   : > { %v2434_v23 = vpop.eup %2433 }
 0x599   : > { %v1732_v24 = vadd.f32 %v2652_v48, %v1728_v21  ;;  %v1726_v25 = vmul.f32 %v2434_v23, %v2812_v57  ;;  %1739 = vst.msk [vmem:[#allocation2] sm:$0xff] %vm932_vm2, %v1729_v20 }
 0x59b   : > { %v1730_v52 = vadd.f32 %v1726_v25, %v2658_v51  ;;  %1742 = vst.msk [vmem:[#allocation2 + $0x18] sm:$0xff] %vm932_vm2, %v1732_v24 }
 0x59d   : > { %1740 = vst.msk [vmem:[#allocation2 + $0x8] sm:$0xff] %vm932_vm2, %v1730_v52 }
 0x5a4   : > { %v1745_v59 = vld [vmem:[#allocation2 + $0x1] ss:$4 sm:$0xff]  ;;  %v1757_v26 = vld [vmem:[#allocation2 + $0x3] ss:$4 sm:$0xff]  ;;  %v1743_v30 = vld [vmem:[#allocation2] ss:$4 sm:$0xff] }
 0x5a5   : > { %1747 = vrot.lane.b32.xlu1 %v1745_v59, %s2468_s29  ;;  %v1751_v32 = vld [vmem:[#allocation2 + $0x2] ss:$4 sm:$0xff]  ;;  %v1979_v59 = vadd.f32 %v2800_v53, %v2646_v45  ;;  %v1980_v53 = vadd.f32 %v2806_v55, %v2652_v48 }
 0x5a9   : > { %1759 = vrot.lane.b32.xlu1 %v1757_v26, %s2469_s1 }
 0x5fe   : > { %v1494_v54 = vpop.permute.xlu1 %1493  ;;  %v1487_v27 = vpop.permute.xlu0 %1486 }
 0x5ff   : > { %1490 = vst.msk [vmem:[#allocation3] sm:$0xff] %vm1489_vm5, %v1487_v27 }
 0x600   : > { %1497 = vst.msk [vmem:[#allocation3] sm:$0xff] %vm1496_vm6, %v1494_v54 }
 0x602   : > { %v1508_v57 = vpop.permute.xlu1 %1507  ;;  %v1501_v28 = vpop.permute.xlu0 %1500 }
 0x603   : > { %1504 = vst.msk [vmem:[#allocation3] sm:$0xff] %vm1503_vm7, %v1501_v28 }
 0x604   : > { %1511 = vst.msk [vmem:[#allocation3] sm:$0xff] %vm1510_vm9, %v1508_v57 }
 0x60b   : > { %v1512_v29 = vld [vmem:[#allocation3] sm:$0xff] }
 0x60c   : > { %1734 = vrot.lane.b32.xlu0 %v1512_v29, %s2474_s27  ;;  %v1641_v31 = vpack.c.bf16 %v1512_v29, %v1512_v29  ;;  %1744 = vst.msk [vmem:[#allocation3] sm:$0xff] %vm932_vm2, %v1743_v30  ;;  %v1977_v30 = vadd.f32 %v2820_v60, %v2650_v47  ;;  %v1978_v60 = vadd.f32 %v2814_v58, %v2658_v51  ;;  %s708_s27 = scalar_lea.vmem %s2977_s23, %s2138_s4 }
 0x60e   : > { %2338 = vmatmul.mubr.msk.bf16.vlgmr.msra.gmra.mxu1 %vm723_vm1, %v1641_v31 }
 0x60f   : > { %2359 = vmatprep.mubr.msk.bf16.mxu1 %vm2462_vm0, %v2461_v0 }
 0x610   : > { %1753 = vrot.lane.b32.xlu0 %v1751_v32, %s2467_s28 }
 0x617   : > { %v1748_v33 = vpop.permute.xlu1 %1747 }
 0x618   : > { %1750 = vst.msk [vmem:[#allocation3] sm:$0xff] %vm1464_vm10, %v1748_v33 }
 0x61b   : > { %v1760_v36 = vpop.permute.xlu1 %1759 }
 0x67e   : > { %v1735_v34 = vpop.permute.xlu0 %1734 }
 0x682   : > { %v1754_v35 = vpop.permute.xlu0 %1753 }
 0x683   : > { %1756 = vst.msk [vmem:[#allocation3] sm:$0xff] %vm1471_vm11, %v1754_v35 }
 0x684   : > { %1762 = vst.msk [vmem:[#allocation3] sm:$0xff] %vm1478_vm12, %v1760_v36 }
 0x68b   : > { %v1763_v61 = vld [vmem:[#allocation3] sm:$0xff] }
 0x68c   : > { %v1782_v62 = vpack.c.bf16 %v1763_v61, %v1763_v61 }
 0x6ce   : > { %v1718_v38 = vpop.f32.mrf.mxu1 }
 0x6cf   : > { %v1719_v39 = vadd.f32 %v2173_v37, %v1718_v38 }
 0x6d0   : > { %v2339_v40 = vpop.f32.mrf.mxu1 }
 0x6d1   : > { %2435 = vtanh.f32 %v1719_v39 }
 0x6d2   : > { %v1721_v41 = vpop.f32.mrf.mxu1 }
 0x6d4   : > { %v2340_v42 = vpop.f32.mrf.mxu1 }
 0x6de   : > { %v2436_v46 = vpop.eup %2435 }
 0x6df   : > { %v1737_v49 = vmul.f32 %v2436_v46, %v1735_v34 }
 0x6e1   : > { %v1738_v50 = vadd.f32 %v1737_v49, %v1512_v29 }
 0x6e3   : > { %1766 = vrot.lane.b32.xlu0 %v1738_v50, %s2465_s7  ;;  %1764 = vst [vmem:[#allocation2] ss:$4 sm:$0xff] %v1738_v50  ;;  %1770 = vrot.lane.b32.xlu1 %v1738_v50, %s3006_s0 }
 0x6e7   : > { %1774 = vrot.lane.b32.xlu0 %v1738_v50, %s3007_s24 }
 0x6eb   : > { %1892 = vperm.xlu0 %2389, %v2779_v8  }
 0x6ef   : > { %1897 = vperm.xlu0 %2389, %v2791_v10  }
 0x6f3   : > { %1882 = vperm.xlu0 %2389, %v2772_v6  }
 0x6f7   : > { %1887 = vperm.xlu0 %2389, %v2784_v9  }
 0x6fb   : > { %2023 = vperm.xlu0 %2389, %v2020_v56  }
 0x706   : > { %1784 = vxpose.xlu1.c.b16.start.end [1/1] (short) (narrow) %v1782_v62, 32 }
 0x71a   : > { %768 = vmax.xlane.f32.xlu0 %v767_v63 }
 0x755   : > { %v1767_v1 = vpop.permute.xlu0 %1766  ;;  %v1771_v8 = vpop.permute.xlu1 %1770 }
 0x756   : > { %1769 = vst [vmem:[#allocation2 + $0x1] ss:$4 sm:$0xff] %v1767_v1  ;;  %1773 = vst [vmem:[#allocation2 + $0x2] ss:$4 sm:$0xff] %v1771_v8 }
 0x759   : > { %v1775_v10 = vpop.permute.xlu0 %1774 }
 0x75a   : > { %1777 = vst [vmem:[#allocation2 + $0x3] ss:$4 sm:$0xff] %v1775_v10 }
 0x761   : > { %v1780_v6 = vld [vmem:[#allocation2 + $0x10] sm:$0xff]  ;;  %v1781_v9 = vld [vmem:[#allocation2 + $0x18] sm:$0xff]  ;;  %v1778_v4 = vld [vmem:[#allocation2] sm:$0xff] }
 0x762   : > { %v1875_v2 = vpack.c.bf16 %v1781_v9, %v1780_v6  ;;  %v1779_v5 = vld [vmem:[#allocation2 + $0x8] sm:$0xff] }
 0x763   : > { %v1874_v11 = vpack.c.bf16 %v1779_v5, %v1778_v4 }
 0x764   : > { %2347 = vmatprep.subr.bf16.mxu0 %v1875_v2 }
 0x766   : > { %v1893_v13 = vpop.permute.xlu0 %1892 }
 0x768   : > { %v1792_v3 = vpop.trf.xlu1 }
 0x769   : > { %2343 = vmatprep.mubr.msk.bf16.mxu0 %vm932_vm2, %v1792_v3 }
 0x76a   : > { %v1898_v15 = vpop.permute.xlu0 %1897 }
 0x76c   : > { %v1793_v7 = vpop.trf.xlu1 }
 0x76d   : > { %2344 = vmatmul.mubr.msk.bf16.vlgmr.msra.gmra.mxu0 %vm932_vm2, %v1793_v7 }
 0x76e   : > { %2348 = vmatpush3.bf16.msra.mxu0 %v1875_v2  ;;  %2351 = vmatprep.mubr.msk.bf16.mxu0 %vm970_vm3, %v2405_v22  ;;  %v1883_v21 = vpop.permute.xlu0 %1882 }
 0x76f   : > { %2349 = vmatprep.subr.bf16.mxu0 %v1874_v11 }
 0x772   : > { %2350 = vmatpush3.bf16.msra.mxu0 %v1874_v11  ;;  %v1888_v36 = vpop.permute.xlu0 %1887 }
 0x775   : > { %2352 = vmatmul.mubr.msk.bf16.vlgmr.msra.gmra.mxu0 %vm970_vm3, %v2406_v12 }
 0x82d   : > { %v2345_v14 = vpop.f32.mrf.mxu0 }
 0x82e   : > { %v1864_v18 = vmul.f32 0.2, %v2345_v14  ;;  %vm1860_vm0 = vcmp.gt.f32.partialorder %v2345_v14, 0.0 }
 0x82f   : > { %v1843_v16 = vpop.f32.mrf.mxu0 }
 0x830   : > { %v1862_v19 = vmul.f32 0.2, %v1843_v16  ;;  %vm1858_vm1 = vcmp.gt.f32.partialorder %v1843_v16, 0.0  ;;  %v1868_v25 = vsel %vm1860_vm0, %v2345_v14, %v1864_v18 }
 0x831   : > { %v2346_v17 = vpop.f32.mrf.mxu0  ;;  %v1983_v29 = vmul.f32 %v1979_v59, %v1868_v25 }
 0x832   : > { %v1865_v23 = vmul.f32 0.2, %v2346_v17  ;;  %vm1861_vm8 = vcmp.gt.f32.partialorder %v2346_v17, 0.0  ;;  %v1866_v26 = vsel %vm1858_vm1, %v1843_v16, %v1862_v19 }
 0x833   : > { %v1846_v20 = vpop.f32.mrf.mxu0  ;;  %v1981_v37 = vmul.f32 %v1977_v30, %v1866_v26 }
 0x834   : > { %v1863_v54 = vmul.f32 0.2, %v1846_v20  ;;  %vm1859_vm10 = vcmp.gt.f32.partialorder %v1846_v20, 0.0  ;;  %v1869_v31 = vsel %vm1861_vm8, %v2346_v17, %v1865_v23 }
 0x835   : > { %v2353_v24 = vpop.f32.mrf.mxu0  ;;  %v1984_v44 = vmul.f32 %v1980_v53, %v1869_v31 }
 0x836   : > { %v1959_v52 = vadd.f32 %v2353_v24, %v1893_v13  ;;  %v1867_v38 = vsel %vm1859_vm10, %v1846_v20, %v1863_v54  ;;  %v2017_v20 = vld [vmem:[%s2974_s20] sm:$0xf] }
 0x837   : > { %v1950_v27 = vpop.f32.mrf.mxu0  ;;  %v1982_v61 = vmul.f32 %v1978_v60, %v1867_v38 }
 0x838   : > { %vm1967_vm11 = vcmp.gt.f32.partialorder %v1959_v52, 0.0  ;;  %v1971_v57 = vmul.f32 0.2, %v1959_v52  ;;  %v1951_v28 = vadd.f32 %v1950_v27, %v1883_v21 }
 0x839   : > { %v2354_v32 = vpop.f32.mrf.mxu0 }
 0x83a   : > { %v1975_v33 = vsel %vm1967_vm11, %v1959_v52, %v1971_v57  ;;  %vm1965_vm12 = vcmp.gt.f32.partialorder %v1951_v28, 0.0  ;;  %v1969_v34 = vmul.f32 0.2, %v1951_v28  ;;  %v1962_v35 = vadd.f32 %v2354_v32, %v1898_v15 }
 0x83b   : > { %v1987_v39 = vmul.f32 %v1983_v29, %v1975_v33  ;;  %v1953_v40 = vpop.f32.mrf.mxu0 }
 0x83c   : > { %v1973_v41 = vsel %vm1965_vm12, %v1951_v28, %v1969_v34  ;;  %vm1968_vm13 = vcmp.gt.f32.partialorder %v1962_v35, 0.0  ;;  %v1972_v42 = vmul.f32 0.2, %v1962_v35  ;;  %v1954_v43 = vadd.f32 %v1953_v40, %v1888_v36 }
 0x83d   : > { %v2187_v46 = vmul.f32 -1.442695, %v1987_v39  ;;  %v1985_v49 = vmul.f32 %v1981_v37, %v1973_v41 }
 0x83e   : > { %v1976_v50 = vsel %vm1968_vm13, %v1962_v35, %v1972_v42  ;;  %vm1966_vm14 = vcmp.gt.f32.partialorder %v1954_v43, 0.0  ;;  %v1970_v56 = vmul.f32 0.2, %v1954_v43 }
 0x83f   : > { %2437 = vpow2.f32 %v2187_v46  ;;  %v2185_v62 = vmul.f32 -1.442695, %v1985_v49  ;;  %v1988_v55 = vmul.f32 %v1984_v44, %v1976_v50 }
 0x840   : > { %v1974_v63 = vsel %vm1966_vm14, %v1954_v43, %v1970_v56 }
 0x841   : > { %2439 = vpow2.f32 %v2185_v62  ;;  %v2188_v1 = vmul.f32 -1.442695, %v1988_v55  ;;  %v1986_v8 = vmul.f32 %v1982_v61, %v1974_v63 }
 0x843   : > { %2441 = vpow2.f32 %v2188_v1  ;;  %v2186_v10 = vmul.f32 -1.442695, %v1986_v8 }
 0x845   : > { %2443 = vpow2.f32 %v2186_v10 }
 0x84c   : > { %v2438_v6 = vpop.eup %2437 }
 0x84d   : > { %v2003_v9 = vadd.f32 1.0, %v2438_v6 }
 0x84e   : > { %v2440_v2 = vpop.eup %2439 }
 0x84f   : > { %v2001_v58 = vadd.f32 1.0, %v2440_v2  ;;  %2445 = vrcp.f32 %v2003_v9 }
 0x850   : > { %v2442_v3 = vpop.eup %2441 }
 0x851   : > { %v2004_v4 = vadd.f32 1.0, %v2442_v3  ;;  %2447 = vrcp.f32 %v2001_v58 }
 0x852   : > { %v2444_v5 = vpop.eup %2443 }
 0x853   : > { %2449 = vrcp.f32 %v2004_v4  ;;  %v2002_v22 = vadd.f32 1.0, %v2444_v5 }
 0x855   : > { %2451 = vrcp.f32 %v2002_v22 }
 0x85c   : > { %v2446_v7 = vpop.eup %2445 }
 0x85d   : > { %v2015_v13 = vadd.f32 %v2446_v7, %v2646_v45  ;;  %v2024_v45 = vpop.permute.xlu0 %2023 }
 0x85e   : > { %v2448_v11 = vpop.eup %2447 }
 0x85f   : > { %v2013_v17 = vadd.f32 %v2448_v11, %v2650_v47  ;;  %v2069_v47 = vld [vmem:[%s2976_s22] sm:$0xff] }
 0x860   : > { %v2450_v12 = vpop.eup %2449 }
 0x861   : > { %v2016_v14 = vadd.f32 %v2450_v12, %v2652_v48  ;;  %v769_v52 = vpop.xlane.xlu0 %768 }
 0x862   : > { %v2452_v15 = vpop.eup %2451 }
 0x863   : > { %v2019_v16 = vpack.c.bf16 %v2016_v14, %v2015_v13  ;;  %v2014_v18 = vadd.f32 %v2452_v15, %v2658_v51 }
 0x865   : > { %2356 = vmatpush3.bf16.msra.mxu1 %v2019_v16  ;;  %v2018_v19 = vpack.c.bf16 %v2014_v18, %v2013_v17 }
 0x866   : > { %2357 = vmatprep.subr.bf16.mxu1 %v2461_v0 }
 0x869   : > { %2358 = vmatpush3.bf16.msra.mxu1 %v2018_v19 }
 0x86c   : > { %2360 = vmatmul.mubr.msk.bf16.vlgmr.msra.gmra.mxu1 %vm970_vm3, %v2017_v20  ;;  %vm2076_vm3 = vcmask 15360  }
 0x92c   : > { %v2063_v48 = vpop.f32.mrf.mxu1 }
 0x92d   : > { %v2064_v21 = vadd.f32 %v2063_v48, %v2024_v45 }
 0x92e   : > { %v2361_v51 = vpop.f32.mrf.mxu1 }
 0x92f   : > { %v2070_v23 = vmul.f32 %v2069_v47, %v2064_v21 }
 0x930   : > { %v2066_v24 = vpop.f32.mrf.mxu1 }
 0x931   : > { %v2071_v25 = vsel %vm932_vm2, %v2070_v23, 0.0 }
 0x932   : > { %2072 = vadd.xlane.f32.xlu1 %v2071_v25  ;;  %v2362_v0 = vpop.f32.mrf.mxu1 }
 0x9bb   : > { %v2073_v59 = vpop.xlane.xlu1 %2072 }
 0x9bc   : > { %v2075_v26 = vsel %vm2074_vm15, %v769_v52, %v2073_v59 }
 0x9bd   : > { %2077 = vst.msk [vmem:[%s708_s27] sm:$0xff] %vm2076_vm3, %v2075_v26 }
 0x9be PF: > { %s3008_s2 = sld [smem:[#allocation4_spill]] }
 0x9c4   : > { %s33_s4 = sadd.s32 1, %s3008_s2  }
 0x9c5   : > { %p30_p4 = scmp.ge.s32.totalorder %s33_s4, 4  }
 0x9c7   :  { %32 = sbr.rel (!%p30_p4) target bundleno = 9 (0x9), region = 145 }

</bundles_post_ra>
